<compile_context>
chip_gen: v6e
topology: v6e:2x2x1
jax: 0.10.0
libtpu: 0.0.40
codegen_flags: <defaults>
</compile_context>

<pallas_src>
import jax
import jax.numpy as jnp
from jax import lax
from jax.experimental import pallas as pl
from jax.experimental.pallas import tpu as pltpu

HIDDEN = 128


def _round_up(n, m):
    return (n + m - 1) // m * m


def _num_tensorcores():
    # v7x has 2 TensorCores per chip; v5e/v6e have 1.  Best-effort detection so
    # the batch-parallel grid axis can feed both cores; neutral elsewhere.
    try:
        kind = jax.devices()[0].device_kind.lower()
        if "v7" in kind:
            return 2
    except Exception:
        pass
    return 1


# ----------------------------------------------------------------------------
# Pallas kernel: 2-layer LSTM recurrence over one (batch-tile, seq-chunk) block
# with online linear projection of the top-layer hidden state.
# ----------------------------------------------------------------------------
def _lstm_kernel(x_ref,       # (Sc, B)  f32  : raw scalar inputs, time-major
                 wih0_ref,    # (1, 4H)  f32  : layer-0 input weight row (input_size=1)
                 b0_ref,      # (1, 4H)  f32  : b_ih0 + b_hh0
                 whh0_ref,    # (H, 4H)  bf16 : W_hh0^T
                 w1_ref,      # (2H, 4H) bf16 : [W_ih1^T ; W_hh1^T]
                 b1_ref,      # (1, 4H)  f32  : b_ih1 + b_hh1
                 wlin_ref,    # (1, H)   f32  : linear weight row
                 blin_ref,    # (1, 1)   f32  : linear bias
                 out_ref,     # (Sc, B)  f32  : projected outputs, time-major
                 c0_ref,      # (B, H)   f32  scratch : layer-0 cell state (carried over chunks)
                 c1_ref,      # (B, H)   f32  scratch : layer-1 cell state
                 hcat_ref):   # (B, 2H)  bf16 scratch : [h0 | h1] (carried over chunks)
    s_chunk, B = x_ref.shape
    H = whh0_ref.shape[0]

    # Reset the recurrent state at the first sequence chunk of each batch tile.
    @pl.when(pl.program_id(1) == 0)
    def _init():
        c0_ref[...] = jnp.zeros_like(c0_ref)
        c1_ref[...] = jnp.zeros_like(c1_ref)
        hcat_ref[...] = jnp.zeros_like(hcat_ref)

    wih0 = wih0_ref[...]          # (1, 4H)
    b0 = b0_ref[...]              # (1, 4H)
    b1 = b1_ref[...]              # (1, 4H)
    wlin = wlin_ref[...]          # (1, H)
    blin = blin_ref[0]            # (1,)

    def sigmoid(z):
        # single EUP push (tanh) instead of exp + reciprocal
        return 0.5 * jnp.tanh(0.5 * z) + 0.5

    def cell(gates, c_prev):
        # PyTorch gate order: i, f, g, o
        i = sigmoid(gates[:, 0 * H:1 * H])
        f = sigmoid(gates[:, 1 * H:2 * H])
        g = jnp.tanh(gates[:, 2 * H:3 * H])
        o = sigmoid(gates[:, 3 * H:4 * H])
        c = f * c_prev + i * g
        h = o * jnp.tanh(c)
        return h, c

    def step(t, carry):
        c0, c1 = carry

        # ---- layer 0: input projection (broadcast, VPU) + recurrent matmul (MXU)
        x_t = x_ref[t]                                             # (B,)
        g0 = (x_t[:, None] * wih0 + b0
              + jnp.dot(hcat_ref[:, :H], whh0_ref[...],
                        preferred_element_type=jnp.float32))       # (B, 4H)
        h0n, c0n = cell(g0, c0)
        hcat_ref[:, :H] = h0n.astype(jnp.bfloat16)                 # update [h0 | .]

        # ---- layer 1: single fused K=2H matmul over [h0_new | h1_prev]
        g1 = jnp.dot(hcat_ref[...], w1_ref[...],
                     preferred_element_type=jnp.float32) + b1      # (B, 4H)
        h1n, c1n = cell(g1, c1)
        hcat_ref[:, H:] = h1n.astype(jnp.bfloat16)                 # update [. | h1]

        # ---- online linear projection: one lane-dense (B,) row per step
        out_ref[t] = jnp.sum(h1n * wlin, axis=-1) + blin
        return (c0n, c1n)

    # Unroll co-tuned with tile width: wide tiles keep too many gate vregs live.
    if B <= 32:
        unroll = 8
    elif B <= 64:
        unroll = 4
    else:
        unroll = 2
    unroll = max(1, min(unroll, s_chunk))

    carry0 = (c0_ref[...], c1_ref[...])
    c0f, c1f = lax.fori_loop(0, s_chunk, step, carry0, unroll=unroll)
    c0_ref[...] = c0f
    c1_ref[...] = c1f


# ----------------------------------------------------------------------------
# Wrapper: weight prep (transpose / fuse / cast), batch & seq tiling, pallas_call.
# ----------------------------------------------------------------------------
def lstm_forward(x, params):
    """x: (B, S, 1) float32 -> (B, S, 1) float32."""
    (wih0, whh0, bih0, bhh0,
     wih1, whh1, bih1, bhh1,
     wlin, blin) = params  # PyTorch-layout weights

    B, S, E = x.shape
    assert E == 1
    H = whh0.shape[1]

    # ---- batch tiling: pad to a multiple of 8 sublanes; split across TensorCores
    # when the chip has more than one (v7x); one big tile otherwise (v5e/v6e serial).
    n_cores = _num_tensorcores()
    b_pad8 = _round_up(B, 8)
    if n_cores > 1 and b_pad8 >= 16:
        b_tile = min(128, _round_up(-(-b_pad8 // n_cores), 8))
    else:
        b_tile = min(128, b_pad8)
    b_pad = _round_up(B, b_tile)
    n_bt = b_pad // b_tile

    # ---- sequence chunking (innermost "arbitrary" grid axis, state carried in scratch)
    S_CHUNK = 512
    if S <= S_CHUNK:
        s_chunk = _round_up(S, 8)
    else:
        s_chunk = S_CHUNK
    s_pad = _round_up(S, s_chunk)
    n_sc = s_pad // s_chunk

    # ---- raw input, time-major, tiled: (n_bt, s_pad, b_tile)
    x2d = jnp.transpose(x[..., 0].astype(jnp.float32))                 # (S, B)
    x2d = jnp.pad(x2d, ((0, s_pad - S), (0, b_pad - B)))               # (s_pad, b_pad)
    x_tiles = x2d.reshape(s_pad, n_bt, b_tile).transpose(1, 0, 2)      # (n_bt, s_pad, b_tile)

    # ---- weight prep: layer-0 biases fused, recurrent weights bf16, layer-1 fused along K
    wih0_row = wih0.reshape(1, 4 * H).astype(jnp.float32)              # (1, 4H)
    b0 = (bih0 + bhh0).reshape(1, 4 * H).astype(jnp.float32)           # (1, 4H)
    whh0_bf = whh0.T.astype(jnp.bfloat16)                              # (H, 4H)
    w1cat_bf = jnp.concatenate([wih1.T, whh1.T],
                               axis=0).astype(jnp.bfloat16)            # (2H, 4H)
    b1 = (bih1 + bhh1).reshape(1, 4 * H).astype(jnp.float32)           # (1, 4H)
    wlin_row = wlin.reshape(1, H).astype(jnp.float32)                  # (1, H)
    blin_2d = blin.reshape(1, 1).astype(jnp.float32)                   # (1, 1)

    resident = lambda i, j: (0, 0)

    out = pl.pallas_call(
        _lstm_kernel,
        out_shape=jax.ShapeDtypeStruct((n_bt, s_pad, b_tile), jnp.float32),
        grid=(n_bt, n_sc),
        in_specs=[
            pl.BlockSpec((None, s_chunk, b_tile), lambda i, j: (i, j, 0)),  # x (streamed)
            pl.BlockSpec((1, 4 * H), resident),                             # wih0 row
            pl.BlockSpec((1, 4 * H), resident),                             # b0
            pl.BlockSpec((H, 4 * H), resident),                             # whh0 (bf16)
            pl.BlockSpec((2 * H, 4 * H), resident),                         # fused layer-1 W
            pl.BlockSpec((1, 4 * H), resident),                             # b1
            pl.BlockSpec((1, H), resident),                                  # wlin
            pl.BlockSpec((1, 1), resident),                                  # blin
        ],
        out_specs=pl.BlockSpec((None, s_chunk, b_tile), lambda i, j: (i, j, 0)),
        scratch_shapes=[
            pltpu.VMEM((b_tile, H), jnp.float32),        # c0 (layer-0 cell state)
            pltpu.VMEM((b_tile, H), jnp.float32),        # c1 (layer-1 cell state)
            pltpu.VMEM((b_tile, 2 * H), jnp.bfloat16),   # [h0 | h1] bf16 carry
        ],
        compiler_params=pltpu.CompilerParams(
            dimension_semantics=("parallel", "arbitrary"),
            vmem_limit_bytes=32 * 1024 * 1024),
    )(x_tiles, wih0_row, b0, whh0_bf, w1cat_bf, b1, wlin_row, blin_2d)

    # (n_bt, s_pad, b_tile) -> (b_pad, s_pad) -> strip padding -> (B, S, 1)
    y2d = out.transpose(0, 2, 1).reshape(b_pad, s_pad)[:B, :S]
    return y2d.reshape(B, S, 1).astype(x.dtype)


# ----------------------------------------------------------------------------
# Pure-JAX f32 reference (mirrors torch.nn.LSTM math) for correctness checking.
# ----------------------------------------------------------------------------
def lstm_ref(x, params):
    (wih0, whh0, bih0, bhh0,
     wih1, whh1, bih1, bhh1,
     wlin, blin) = params
    B, S, _ = x.shape
    H = whh0.shape[1]

    def cell(x_t, h, c, wih, whh, bih, bhh):
        gates = x_t @ wih.T + bih + h @ whh.T + bhh
        i = jax.nn.sigmoid(gates[:, 0 * H:1 * H])
        f = jax.nn.sigmoid(gates[:, 1 * H:2 * H])
        g = jnp.tanh(gates[:, 2 * H:3 * H])
        o = jax.nn.sigmoid(gates[:, 3 * H:4 * H])
        c_n = f * c + i * g
        h_n = o * jnp.tanh(c_n)
        return h_n, c_n

    def scan_fn(carry, x_t):
        h0, c0, h1, c1 = carry
        h0, c0 = cell(x_t, h0, c0, wih0, whh0, bih0, bhh0)
        h1, c1 = cell(h0, h1, c1, wih1, whh1, bih1, bhh1)
        return (h0, c0, h1, c1), h1

    zeros = jnp.zeros((B, H), jnp.float32)
    _, hs = lax.scan(scan_fn, (zeros, zeros, zeros, zeros),
                     jnp.transpose(x, (1, 0, 2)))          # (S, B, H)
    lstm_out = jnp.transpose(hs, (1, 0, 2))                # (B, S, H)
    return lstm_out @ wlin.T + blin                        # (B, S, 1)


# ----------------------------------------------------------------------------
# Deterministic parameter init (PyTorch-style uniform(-1/sqrt(H), 1/sqrt(H))).
# ----------------------------------------------------------------------------
def init_params(key, hidden=HIDDEN):
    bound = 1.0 / jnp.sqrt(hidden)
    ks = jax.random.split(key, 10)
    u = lambda k, shape: jax.random.uniform(k, shape, jnp.float32, -bound, bound)
    wih0 = u(ks[0], (4 * hidden, 1))
    whh0 = u(ks[1], (4 * hidden, hidden))
    bih0 = u(ks[2], (4 * hidden,))
    bhh0 = u(ks[3], (4 * hidden,))
    wih1 = u(ks[4], (4 * hidden, hidden))
    whh1 = u(ks[5], (4 * hidden, hidden))
    bih1 = u(ks[6], (4 * hidden,))
    bhh1 = u(ks[7], (4 * hidden,))
    wlin = u(ks[8], (1, hidden))
    blin = u(ks[9], (1,))
    return (wih0, whh0, bih0, bhh0, wih1, whh1, bih1, bhh1, wlin, blin)


if __name__ == "__main__":
    key = jax.random.PRNGKey(0)
    k_param, k_x = jax.random.split(key)

    B, S = 2, 8
    params = init_params(k_param)
    x = jax.random.normal(k_x, (B, S, 1), jnp.float32)

    y = lstm_forward(x, params)
    jax.block_until_ready(y)

    y_ref = lstm_ref(x, params)
    assert y.shape == (B, S, 1)
    # bf16 recurrent matmuls (f32 accumulation / cell state) -> slightly loosened tol.
    assert jnp.allclose(y, y_ref, atol=2e-2, rtol=2e-2), "mismatch vs reference"

    print("KERNEL_OK")
</pallas_src>

<mosaic_0001>
module attributes {stable_mosaic.version = 11 : i64} {
  func.func @_lstm_kernel(%arg0: i32, %arg1: i32, %arg2: memref<1x8x8xf32, #tpu.memory_space<vmem>>, %arg3: memref<1x512xf32, #tpu.memory_space<vmem>>, %arg4: memref<1x512xf32, #tpu.memory_space<vmem>>, %arg5: memref<128x512xbf16, #tpu.memory_space<vmem>>, %arg6: memref<256x512xbf16, #tpu.memory_space<vmem>>, %arg7: memref<1x512xf32, #tpu.memory_space<vmem>>, %arg8: memref<1x128xf32, #tpu.memory_space<vmem>>, %arg9: memref<1x1xf32, #tpu.memory_space<vmem>>, %arg10: memref<1x8x8xf32, #tpu.memory_space<vmem>>, %arg11: memref<8x128xf32, #tpu.memory_space<vmem>>, %arg12: memref<8x128xf32, #tpu.memory_space<vmem>>, %arg13: memref<8x256xbf16, #tpu.memory_space<vmem>>) attributes {dimension_semantics = [#tpu.dimension_semantics<parallel>, #tpu.dimension_semantics<arbitrary>], iteration_bounds = array<i64: 1, 1>, scalar_prefetch = 0 : i64, scratch_operands = 3 : i64, tpu.core_type = #tpu.core_type<tc>, window_params = [{transform_indices = @transform_0, window_bounds = array<i64: 1, 8, 8>}, {pipeline_mode = #tpu.pipeline_mode<synchronous>, transform_indices = @transform_1, window_bounds = array<i64: 1, 512>}, {pipeline_mode = #tpu.pipeline_mode<synchronous>, transform_indices = @transform_2, window_bounds = array<i64: 1, 512>}, {pipeline_mode = #tpu.pipeline_mode<synchronous>, transform_indices = @transform_3, window_bounds = array<i64: 128, 512>}, {pipeline_mode = #tpu.pipeline_mode<synchronous>, transform_indices = @transform_4, window_bounds = array<i64: 256, 512>}, {pipeline_mode = #tpu.pipeline_mode<synchronous>, transform_indices = @transform_5, window_bounds = array<i64: 1, 512>}, {pipeline_mode = #tpu.pipeline_mode<synchronous>, transform_indices = @transform_6, window_bounds = array<i64: 1, 128>}, {pipeline_mode = #tpu.pipeline_mode<synchronous>, transform_indices = @transform_7, window_bounds = array<i64: 1, 1>}, {transform_indices = @transform_8, window_bounds = array<i64: 1, 8, 8>}]} {
    %c0_i32 = arith.constant 0 : i32
    %0 = arith.cmpi eq, %arg1, %c0_i32 : i32
    %1 = arith.extui %0 : i1 to i32
    %c0_i32_0 = arith.constant 0 : i32
    %2 = arith.cmpi ne, %1, %c0_i32_0 : i32
    scf.if %2 {
      %cst_313 = arith.constant 0.000000e+00 : f32
      %757 = vector.broadcast %cst_313 : f32 to vector<8x128xf32>
      %c0_314 = arith.constant 0 : index
      %c0_315 = arith.constant 0 : index
      %758 = vector.load %arg11[%c0_314, %c0_315] : memref<8x128xf32, #tpu.memory_space<vmem>>, vector<8x128xf32>
      tpu.vector_store %arg11[%c0_314, %c0_315], %757 {strides = array<i32>} : memref<8x128xf32, #tpu.memory_space<vmem>>, vector<8x128xf32>,
      %cst_316 = arith.constant 0.000000e+00 : f32
      %759 = vector.broadcast %cst_316 : f32 to vector<8x128xf32>
      %c0_317 = arith.constant 0 : index
      %c0_318 = arith.constant 0 : index
      %760 = vector.load %arg12[%c0_317, %c0_318] : memref<8x128xf32, #tpu.memory_space<vmem>>, vector<8x128xf32>
      tpu.vector_store %arg12[%c0_317, %c0_318], %759 {strides = array<i32>} : memref<8x128xf32, #tpu.memory_space<vmem>>, vector<8x128xf32>,
      %cst_319 = arith.constant 0.000000e+00 : bf16
      %761 = vector.broadcast %cst_319 : bf16 to vector<8x256xbf16>
      %c0_320 = arith.constant 0 : index
      %c0_321 = arith.constant 0 : index
      %762 = vector.load %arg13[%c0_320, %c0_321] : memref<8x256xbf16, #tpu.memory_space<vmem>>, vector<8x256xbf16>
      tpu.vector_store %arg13[%c0_320, %c0_321], %761 {strides = array<i32>} : memref<8x256xbf16, #tpu.memory_space<vmem>>, vector<8x256xbf16>,
    } else {
    }
    %c0 = arith.constant 0 : index
    %c0_1 = arith.constant 0 : index
    %3 = vector.load %arg3[%c0, %c0_1] : memref<1x512xf32, #tpu.memory_space<vmem>>, vector<1x512xf32>
    %c0_2 = arith.constant 0 : index
    %c0_3 = arith.constant 0 : index
    %4 = vector.load %arg4[%c0_2, %c0_3] : memref<1x512xf32, #tpu.memory_space<vmem>>, vector<1x512xf32>
    %c0_4 = arith.constant 0 : index
    %c0_5 = arith.constant 0 : index
    %5 = vector.load %arg7[%c0_4, %c0_5] : memref<1x512xf32, #tpu.memory_space<vmem>>, vector<1x512xf32>
    %c0_6 = arith.constant 0 : index
    %c0_7 = arith.constant 0 : index
    %6 = vector.load %arg8[%c0_6, %c0_7] : memref<1x128xf32, #tpu.memory_space<vmem>>, vector<1x128xf32>
    %c0_8 = arith.constant 0 : index
    %c0_9 = arith.constant 0 : index
    %7 = vector.load %arg9[%c0_8, %c0_9] : memref<1x1xf32, #tpu.memory_space<vmem>>, vector<1x1xf32>
    %8 = vector.shape_cast %7 : vector<1x1xf32> to vector<1xf32>
    %c0_10 = arith.constant 0 : index
    %c0_11 = arith.constant 0 : index
    %9 = vector.load %arg11[%c0_10, %c0_11] : memref<8x128xf32, #tpu.memory_space<vmem>>, vector<8x128xf32>
    %c0_12 = arith.constant 0 : index
    %c0_13 = arith.constant 0 : index
    %10 = vector.load %arg12[%c0_12, %c0_13] : memref<8x128xf32, #tpu.memory_space<vmem>>, vector<8x128xf32>
    %c0_i32_14 = arith.constant 0 : i32
    %c0_15 = arith.constant 0 : index
    %11 = arith.index_cast %c0_i32_14 : i32 to index
    %c0_16 = arith.constant 0 : index
    %12 = vector.load %arg2[%c0_15, %11, %c0_16] : memref<1x8x8xf32, #tpu.memory_space<vmem>>, vector<1x1x8xf32>
    %13 = vector.shape_cast %12 : vector<1x1x8xf32> to vector<8xf32>
    %14 = vector.shape_cast %13 : vector<8xf32> to vector<8x1xf32>
    %15 = vector.broadcast %14 : vector<8x1xf32> to vector<8x512xf32>
    %16 = vector.broadcast %3 : vector<1x512xf32> to vector<8x512xf32>
    %17 = arith.mulf %15, %16 : vector<8x512xf32>
    %18 = vector.broadcast %4 : vector<1x512xf32> to vector<8x512xf32>
    %19 = arith.addf %17, %18 : vector<8x512xf32>
    %c0_17 = arith.constant 0 : index
    %c0_18 = arith.constant 0 : index
    %20 = vector.load %arg13[%c0_17, %c0_18] : memref<8x256xbf16, #tpu.memory_space<vmem>>, vector<8x128xbf16>
    %c0_19 = arith.constant 0 : index
    %c0_20 = arith.constant 0 : index
    %21 = vector.load %arg5[%c0_19, %c0_20] : memref<128x512xbf16, #tpu.memory_space<vmem>>, vector<128x512xbf16>
    %cst = arith.constant dense<0.000000e+00> : vector<8x512xf32>
    %22 = tpu.matmul %20, %21, %cst {dimension_numbers = #tpu.dot_dimension_numbers<[1], [0], [0], [1], [0, 0, 1, 1], [], []>} : vector<8x128xbf16>, vector<128x512xbf16>, vector<8x512xf32> -> vector<8x512xf32>
    %23 = arith.addf %19, %22 : vector<8x512xf32>
    %24 = vector.extract_strided_slice %23 {offsets = [0, 0], sizes = [8, 128], strides = [1, 1]} : vector<8x512xf32> to vector<8x128xf32>
    %cst_21 = arith.constant 5.000000e-01 : f32
    %25 = vector.broadcast %cst_21 : f32 to vector<8x128xf32>
    %26 = arith.mulf %25, %24 : vector<8x128xf32>
    %27 = math.tanh %26 : vector<8x128xf32>
    %cst_22 = arith.constant 5.000000e-01 : f32
    %28 = vector.broadcast %cst_22 : f32 to vector<8x128xf32>
    %29 = arith.mulf %28, %27 : vector<8x128xf32>
    %cst_23 = arith.constant 5.000000e-01 : f32
    %30 = vector.broadcast %cst_23 : f32 to vector<8x128xf32>
    %31 = arith.addf %29, %30 : vector<8x128xf32>
    %32 = vector.extract_strided_slice %23 {offsets = [0, 128], sizes = [8, 128], strides = [1, 1]} : vector<8x512xf32> to vector<8x128xf32>
    %cst_24 = arith.constant 5.000000e-01 : f32
    %33 = vector.broadcast %cst_24 : f32 to vector<8x128xf32>
    %34 = arith.mulf %33, %32 : vector<8x128xf32>
    %35 = math.tanh %34 : vector<8x128xf32>
    %cst_25 = arith.constant 5.000000e-01 : f32
    %36 = vector.broadcast %cst_25 : f32 to vector<8x128xf32>
    %37 = arith.mulf %36, %35 : vector<8x128xf32>
    %cst_26 = arith.constant 5.000000e-01 : f32
    %38 = vector.broadcast %cst_26 : f32 to vector<8x128xf32>
    %39 = arith.addf %37, %38 : vector<8x128xf32>
    %40 = vector.extract_strided_slice %23 {offsets = [0, 256], sizes = [8, 128], strides = [1, 1]} : vector<8x512xf32> to vector<8x128xf32>
    %41 = math.tanh %40 : vector<8x128xf32>
    %42 = vector.extract_strided_slice %23 {offsets = [0, 384], sizes = [8, 128], strides = [1, 1]} : vector<8x512xf32> to vector<8x128xf32>
    %cst_27 = arith.constant 5.000000e-01 : f32
    %43 = vector.broadcast %cst_27 : f32 to vector<8x128xf32>
    %44 = arith.mulf %43, %42 : vector<8x128xf32>
    %45 = math.tanh %44 : vector<8x128xf32>
    %cst_28 = arith.constant 5.000000e-01 : f32
    %46 = vector.broadcast %cst_28 : f32 to vector<8x128xf32>
    %47 = arith.mulf %46, %45 : vector<8x128xf32>
    %cst_29 = arith.constant 5.000000e-01 : f32
    %48 = vector.broadcast %cst_29 : f32 to vector<8x128xf32>
    %49 = arith.addf %47, %48 : vector<8x128xf32>
    %50 = arith.mulf %39, %9 : vector<8x128xf32>
    %51 = arith.mulf %31, %41 : vector<8x128xf32>
    %52 = arith.addf %50, %51 : vector<8x128xf32>
    %53 = math.tanh %52 : vector<8x128xf32>
    %54 = arith.mulf %49, %53 : vector<8x128xf32>
    %55 = arith.truncf %54 : vector<8x128xf32> to vector<8x128xbf16>
    %c0_30 = arith.constant 0 : index
    %c0_31 = arith.constant 0 : index
    %56 = vector.load %arg13[%c0_30, %c0_31] : memref<8x256xbf16, #tpu.memory_space<vmem>>, vector<8x128xbf16>
    tpu.vector_store %arg13[%c0_30, %c0_31], %55 {strides = array<i32>} : memref<8x256xbf16, #tpu.memory_space<vmem>>, vector<8x128xbf16>,
    %c0_32 = arith.constant 0 : index
    %c0_33 = arith.constant 0 : index
    %57 = vector.load %arg13[%c0_32, %c0_33] : memref<8x256xbf16, #tpu.memory_space<vmem>>, vector<8x256xbf16>
    %c0_34 = arith.constant 0 : index
    %c0_35 = arith.constant 0 : index
    %58 = vector.load %arg6[%c0_34, %c0_35] : memref<256x512xbf16, #tpu.memory_space<vmem>>, vector<256x512xbf16>
    %cst_36 = arith.constant dense<0.000000e+00> : vector<8x512xf32>
    %59 = tpu.matmul %57, %58, %cst_36 {dimension_numbers = #tpu.dot_dimension_numbers<[1], [0], [0], [1], [0, 0, 1, 1], [], []>} : vector<8x256xbf16>, vector<256x512xbf16>, vector<8x512xf32> -> vector<8x512xf32>
    %60 = vector.broadcast %5 : vector<1x512xf32> to vector<8x512xf32>
    %61 = arith.addf %59, %60 : vector<8x512xf32>
    %62 = vector.extract_strided_slice %61 {offsets = [0, 0], sizes = [8, 128], strides = [1, 1]} : vector<8x512xf32> to vector<8x128xf32>
    %cst_37 = arith.constant 5.000000e-01 : f32
    %63 = vector.broadcast %cst_37 : f32 to vector<8x128xf32>
    %64 = arith.mulf %63, %62 : vector<8x128xf32>
    %65 = math.tanh %64 : vector<8x128xf32>
    %cst_38 = arith.constant 5.000000e-01 : f32
    %66 = vector.broadcast %cst_38 : f32 to vector<8x128xf32>
    %67 = arith.mulf %66, %65 : vector<8x128xf32>
    %cst_39 = arith.constant 5.000000e-01 : f32
    %68 = vector.broadcast %cst_39 : f32 to vector<8x128xf32>
    %69 = arith.addf %67, %68 : vector<8x128xf32>
    %70 = vector.extract_strided_slice %61 {offsets = [0, 128], sizes = [8, 128], strides = [1, 1]} : vector<8x512xf32> to vector<8x128xf32>
    %cst_40 = arith.constant 5.000000e-01 : f32
    %71 = vector.broadcast %cst_40 : f32 to vector<8x128xf32>
    %72 = arith.mulf %71, %70 : vector<8x128xf32>
    %73 = math.tanh %72 : vector<8x128xf32>
    %cst_41 = arith.constant 5.000000e-01 : f32
    %74 = vector.broadcast %cst_41 : f32 to vector<8x128xf32>
    %75 = arith.mulf %74, %73 : vector<8x128xf32>
    %cst_42 = arith.constant 5.000000e-01 : f32
    %76 = vector.broadcast %cst_42 : f32 to vector<8x128xf32>
    %77 = arith.addf %75, %76 : vector<8x128xf32>
    %78 = vector.extract_strided_slice %61 {offsets = [0, 256], sizes = [8, 128], strides = [1, 1]} : vector<8x512xf32> to vector<8x128xf32>
    %79 = math.tanh %78 : vector<8x128xf32>
    %80 = vector.extract_strided_slice %61 {offsets = [0, 384], sizes = [8, 128], strides = [1, 1]} : vector<8x512xf32> to vector<8x128xf32>
    %cst_43 = arith.constant 5.000000e-01 : f32
    %81 = vector.broadcast %cst_43 : f32 to vector<8x128xf32>
    %82 = arith.mulf %81, %80 : vector<8x128xf32>
    %83 = math.tanh %82 : vector<8x128xf32>
    %cst_44 = arith.constant 5.000000e-01 : f32
    %84 = vector.broadcast %cst_44 : f32 to vector<8x128xf32>
    %85 = arith.mulf %84, %83 : vector<8x128xf32>
    %cst_45 = arith.constant 5.000000e-01 : f32
    %86 = vector.broadcast %cst_45 : f32 to vector<8x128xf32>
    %87 = arith.addf %85, %86 : vector<8x128xf32>
    %88 = arith.mulf %77, %10 : vector<8x128xf32>
    %89 = arith.mulf %69, %79 : vector<8x128xf32>
    %90 = arith.addf %88, %89 : vector<8x128xf32>
    %91 = math.tanh %90 : vector<8x128xf32>
    %92 = arith.mulf %87, %91 : vector<8x128xf32>
    %93 = arith.truncf %92 : vector<8x128xf32> to vector<8x128xbf16>
    %c0_46 = arith.constant 0 : index
    %c128 = arith.constant 128 : index
    %94 = vector.load %arg13[%c0_46, %c128] : memref<8x256xbf16, #tpu.memory_space<vmem>>, vector<8x128xbf16>
    tpu.vector_store %arg13[%c0_46, %c128], %93 {strides = array<i32>} : memref<8x256xbf16, #tpu.memory_space<vmem>>, vector<8x128xbf16>,
    %95 = vector.broadcast %6 : vector<1x128xf32> to vector<8x128xf32>
    %96 = arith.mulf %92, %95 : vector<8x128xf32>
    %cst_47 = arith.constant dense<0.000000e+00> : vector<8xf32>
    %97 = vector.multi_reduction <add>, %96, %cst_47 [1] : vector<8x128xf32> to vector<8xf32>
    %98 = vector.broadcast %8 : vector<1xf32> to vector<8xf32>
    %99 = arith.addf %97, %98 : vector<8xf32>
    %c0_48 = arith.constant 0 : index
    %100 = arith.index_cast %c0_i32_14 : i32 to index
    %c0_49 = arith.constant 0 : index
    %101 = vector.load %arg10[%c0_48, %100, %c0_49] : memref<1x8x8xf32, #tpu.memory_space<vmem>>, vector<1x1x8xf32>
    %102 = vector.shape_cast %101 : vector<1x1x8xf32> to vector<8xf32>
    %103 = vector.shape_cast %99 : vector<8xf32> to vector<1x1x8xf32>
    tpu.vector_store %arg10[%c0_48, %100, %c0_49], %103 {strides = array<i32>} : memref<1x8x8xf32, #tpu.memory_space<vmem>>, vector<1x1x8xf32>,
    %c1_i32 = arith.constant 1 : i32
    %c0_50 = arith.constant 0 : index
    %104 = arith.index_cast %c1_i32 : i32 to index
    %c0_51 = arith.constant 0 : index
    %105 = vector.load %arg2[%c0_50, %104, %c0_51] : memref<1x8x8xf32, #tpu.memory_space<vmem>>, vector<1x1x8xf32>
    %106 = vector.shape_cast %105 : vector<1x1x8xf32> to vector<8xf32>
    %107 = vector.shape_cast %106 : vector<8xf32> to vector<8x1xf32>
    %108 = vector.broadcast %107 : vector<8x1xf32> to vector<8x512xf32>
    %109 = vector.broadcast %3 : vector<1x512xf32> to vector<8x512xf32>
    %110 = arith.mulf %108, %109 : vector<8x512xf32>
    %111 = vector.broadcast %4 : vector<1x512xf32> to vector<8x512xf32>
    %112 = arith.addf %110, %111 : vector<8x512xf32>
    %c0_52 = arith.constant 0 : index
    %c0_53 = arith.constant 0 : index
    %113 = vector.load %arg13[%c0_52, %c0_53] : memref<8x256xbf16, #tpu.memory_space<vmem>>, vector<8x128xbf16>
    %c0_54 = arith.constant 0 : index
    %c0_55 = arith.constant 0 : index
    %114 = vector.load %arg5[%c0_54, %c0_55] : memref<128x512xbf16, #tpu.memory_space<vmem>>, vector<128x512xbf16>
    %cst_56 = arith.constant dense<0.000000e+00> : vector<8x512xf32>
    %115 = tpu.matmul %113, %114, %cst_56 {dimension_numbers = #tpu.dot_dimension_numbers<[1], [0], [0], [1], [0, 0, 1, 1], [], []>} : vector<8x128xbf16>, vector<128x512xbf16>, vector<8x512xf32> -> vector<8x512xf32>
    %116 = arith.addf %112, %115 : vector<8x512xf32>
    %117 = vector.extract_strided_slice %116 {offsets = [0, 0], sizes = [8, 128], strides = [1, 1]} : vector<8x512xf32> to vector<8x128xf32>
    %cst_57 = arith.constant 5.000000e-01 : f32
    %118 = vector.broadcast %cst_57 : f32 to vector<8x128xf32>
    %119 = arith.mulf %118, %117 : vector<8x128xf32>
    %120 = math.tanh %119 : vector<8x128xf32>
    %cst_58 = arith.constant 5.000000e-01 : f32
    %121 = vector.broadcast %cst_58 : f32 to vector<8x128xf32>
    %122 = arith.mulf %121, %120 : vector<8x128xf32>
    %cst_59 = arith.constant 5.000000e-01 : f32
    %123 = vector.broadcast %cst_59 : f32 to vector<8x128xf32>
    %124 = arith.addf %122, %123 : vector<8x128xf32>
    %125 = vector.extract_strided_slice %116 {offsets = [0, 128], sizes = [8, 128], strides = [1, 1]} : vector<8x512xf32> to vector<8x128xf32>
    %cst_60 = arith.constant 5.000000e-01 : f32
    %126 = vector.broadcast %cst_60 : f32 to vector<8x128xf32>
    %127 = arith.mulf %126, %125 : vector<8x128xf32>
    %128 = math.tanh %127 : vector<8x128xf32>
    %cst_61 = arith.constant 5.000000e-01 : f32
    %129 = vector.broadcast %cst_61 : f32 to vector<8x128xf32>
    %130 = arith.mulf %129, %128 : vector<8x128xf32>
    %cst_62 = arith.constant 5.000000e-01 : f32
    %131 = vector.broadcast %cst_62 : f32 to vector<8x128xf32>
    %132 = arith.addf %130, %131 : vector<8x128xf32>
    %133 = vector.extract_strided_slice %116 {offsets = [0, 256], sizes = [8, 128], strides = [1, 1]} : vector<8x512xf32> to vector<8x128xf32>
    %134 = math.tanh %133 : vector<8x128xf32>
    %135 = vector.extract_strided_slice %116 {offsets = [0, 384], sizes = [8, 128], strides = [1, 1]} : vector<8x512xf32> to vector<8x128xf32>
    %cst_63 = arith.constant 5.000000e-01 : f32
    %136 = vector.broadcast %cst_63 : f32 to vector<8x128xf32>
    %137 = arith.mulf %136, %135 : vector<8x128xf32>
    %138 = math.tanh %137 : vector<8x128xf32>
    %cst_64 = arith.constant 5.000000e-01 : f32
    %139 = vector.broadcast %cst_64 : f32 to vector<8x128xf32>
    %140 = arith.mulf %139, %138 : vector<8x128xf32>
    %cst_65 = arith.constant 5.000000e-01 : f32
    %141 = vector.broadcast %cst_65 : f32 to vector<8x128xf32>
    %142 = arith.addf %140, %141 : vector<8x128xf32>
    %143 = arith.mulf %132, %52 : vector<8x128xf32>
    %144 = arith.mulf %124, %134 : vector<8x128xf32>
    %145 = arith.addf %143, %144 : vector<8x128xf32>
    %146 = math.tanh %145 : vector<8x128xf32>
    %147 = arith.mulf %142, %146 : vector<8x128xf32>
    %148 = arith.truncf %147 : vector<8x128xf32> to vector<8x128xbf16>
    %c0_66 = arith.constant 0 : index
    %c0_67 = arith.constant 0 : index
    %149 = vector.load %arg13[%c0_66, %c0_67] : memref<8x256xbf16, #tpu.memory_space<vmem>>, vector<8x128xbf16>
    tpu.vector_store %arg13[%c0_66, %c0_67], %148 {strides = array<i32>} : memref<8x256xbf16, #tpu.memory_space<vmem>>, vector<8x128xbf16>,
    %c0_68 = arith.constant 0 : index
    %c0_69 = arith.constant 0 : index
    %150 = vector.load %arg13[%c0_68, %c0_69] : memref<8x256xbf16, #tpu.memory_space<vmem>>, vector<8x256xbf16>
    %c0_70 = arith.constant 0 : index
    %c0_71 = arith.constant 0 : index
    %151 = vector.load %arg6[%c0_70, %c0_71] : memref<256x512xbf16, #tpu.memory_space<vmem>>, vector<256x512xbf16>
    %cst_72 = arith.constant dense<0.000000e+00> : vector<8x512xf32>
    %152 = tpu.matmul %150, %151, %cst_72 {dimension_numbers = #tpu.dot_dimension_numbers<[1], [0], [0], [1], [0, 0, 1, 1], [], []>} : vector<8x256xbf16>, vector<256x512xbf16>, vector<8x512xf32> -> vector<8x512xf32>
    %153 = vector.broadcast %5 : vector<1x512xf32> to vector<8x512xf32>
    %154 = arith.addf %152, %153 : vector<8x512xf32>
    %155 = vector.extract_strided_slice %154 {offsets = [0, 0], sizes = [8, 128], strides = [1, 1]} : vector<8x512xf32> to vector<8x128xf32>
    %cst_73 = arith.constant 5.000000e-01 : f32
    %156 = vector.broadcast %cst_73 : f32 to vector<8x128xf32>
    %157 = arith.mulf %156, %155 : vector<8x128xf32>
    %158 = math.tanh %157 : vector<8x128xf32>
    %cst_74 = arith.constant 5.000000e-01 : f32
    %159 = vector.broadcast %cst_74 : f32 to vector<8x128xf32>
    %160 = arith.mulf %159, %158 : vector<8x128xf32>
    %cst_75 = arith.constant 5.000000e-01 : f32
    %161 = vector.broadcast %cst_75 : f32 to vector<8x128xf32>
    %162 = arith.addf %160, %161 : vector<8x128xf32>
    %163 = vector.extract_strided_slice %154 {offsets = [0, 128], sizes = [8, 128], strides = [1, 1]} : vector<8x512xf32> to vector<8x128xf32>
    %cst_76 = arith.constant 5.000000e-01 : f32
    %164 = vector.broadcast %cst_76 : f32 to vector<8x128xf32>
    %165 = arith.mulf %164, %163 : vector<8x128xf32>
    %166 = math.tanh %165 : vector<8x128xf32>
    %cst_77 = arith.constant 5.000000e-01 : f32
    %167 = vector.broadcast %cst_77 : f32 to vector<8x128xf32>
    %168 = arith.mulf %167, %166 : vector<8x128xf32>
    %cst_78 = arith.constant 5.000000e-01 : f32
    %169 = vector.broadcast %cst_78 : f32 to vector<8x128xf32>
    %170 = arith.addf %168, %169 : vector<8x128xf32>
    %171 = vector.extract_strided_slice %154 {offsets = [0, 256], sizes = [8, 128], strides = [1, 1]} : vector<8x512xf32> to vector<8x128xf32>
    %172 = math.tanh %171 : vector<8x128xf32>
    %173 = vector.extract_strided_slice %154 {offsets = [0, 384], sizes = [8, 128], strides = [1, 1]} : vector<8x512xf32> to vector<8x128xf32>
    %cst_79 = arith.constant 5.000000e-01 : f32
    %174 = vector.broadcast %cst_79 : f32 to vector<8x128xf32>
    %175 = arith.mulf %174, %173 : vector<8x128xf32>
    %176 = math.tanh %175 : vector<8x128xf32>
    %cst_80 = arith.constant 5.000000e-01 : f32
    %177 = vector.broadcast %cst_80 : f32 to vector<8x128xf32>
    %178 = arith.mulf %177, %176 : vector<8x128xf32>
    %cst_81 = arith.constant 5.000000e-01 : f32
    %179 = vector.broadcast %cst_81 : f32 to vector<8x128xf32>
    %180 = arith.addf %178, %179 : vector<8x128xf32>
    %181 = arith.mulf %170, %90 : vector<8x128xf32>
    %182 = arith.mulf %162, %172 : vector<8x128xf32>
    %183 = arith.addf %181, %182 : vector<8x128xf32>
    %184 = math.tanh %183 : vector<8x128xf32>
    %185 = arith.mulf %180, %184 : vector<8x128xf32>
    %186 = arith.truncf %185 : vector<8x128xf32> to vector<8x128xbf16>
    %c0_82 = arith.constant 0 : index
    %c128_83 = arith.constant 128 : index
    %187 = vector.load %arg13[%c0_82, %c128_83] : memref<8x256xbf16, #tpu.memory_space<vmem>>, vector<8x128xbf16>
    tpu.vector_store %arg13[%c0_82, %c128_83], %186 {strides = array<i32>} : memref<8x256xbf16, #tpu.memory_space<vmem>>, vector<8x128xbf16>,
    %188 = vector.broadcast %6 : vector<1x128xf32> to vector<8x128xf32>
    %189 = arith.mulf %185, %188 : vector<8x128xf32>
    %cst_84 = arith.constant dense<0.000000e+00> : vector<8xf32>
    %190 = vector.multi_reduction <add>, %189, %cst_84 [1] : vector<8x128xf32> to vector<8xf32>
    %191 = vector.broadcast %8 : vector<1xf32> to vector<8xf32>
    %192 = arith.addf %190, %191 : vector<8xf32>
    %c0_85 = arith.constant 0 : index
    %193 = arith.index_cast %c1_i32 : i32 to index
    %c0_86 = arith.constant 0 : index
    %194 = vector.load %arg10[%c0_85, %193, %c0_86] : memref<1x8x8xf32, #tpu.memory_space<vmem>>, vector<1x1x8xf32>
    %195 = vector.shape_cast %194 : vector<1x1x8xf32> to vector<8xf32>
    %196 = vector.shape_cast %192 : vector<8xf32> to vector<1x1x8xf32>
    tpu.vector_store %arg10[%c0_85, %193, %c0_86], %196 {strides = array<i32>} : memref<1x8x8xf32, #tpu.memory_space<vmem>>, vector<1x1x8xf32>,
    %c2_i32 = arith.constant 2 : i32
    %c0_87 = arith.constant 0 : index
    %197 = arith.index_cast %c2_i32 : i32 to index
    %c0_88 = arith.constant 0 : index
    %198 = vector.load %arg2[%c0_87, %197, %c0_88] : memref<1x8x8xf32, #tpu.memory_space<vmem>>, vector<1x1x8xf32>
    %199 = vector.shape_cast %198 : vector<1x1x8xf32> to vector<8xf32>
    %200 = vector.shape_cast %199 : vector<8xf32> to vector<8x1xf32>
    %201 = vector.broadcast %200 : vector<8x1xf32> to vector<8x512xf32>
    %202 = vector.broadcast %3 : vector<1x512xf32> to vector<8x512xf32>
    %203 = arith.mulf %201, %202 : vector<8x512xf32>
    %204 = vector.broadcast %4 : vector<1x512xf32> to vector<8x512xf32>
    %205 = arith.addf %203, %204 : vector<8x512xf32>
    %c0_89 = arith.constant 0 : index
    %c0_90 = arith.constant 0 : index
    %206 = vector.load %arg13[%c0_89, %c0_90] : memref<8x256xbf16, #tpu.memory_space<vmem>>, vector<8x128xbf16>
    %c0_91 = arith.constant 0 : index
    %c0_92 = arith.constant 0 : index
    %207 = vector.load %arg5[%c0_91, %c0_92] : memref<128x512xbf16, #tpu.memory_space<vmem>>, vector<128x512xbf16>
    %cst_93 = arith.constant dense<0.000000e+00> : vector<8x512xf32>
    %208 = tpu.matmul %206, %207, %cst_93 {dimension_numbers = #tpu.dot_dimension_numbers<[1], [0], [0], [1], [0, 0, 1, 1], [], []>} : vector<8x128xbf16>, vector<128x512xbf16>, vector<8x512xf32> -> vector<8x512xf32>
    %209 = arith.addf %205, %208 : vector<8x512xf32>
    %210 = vector.extract_strided_slice %209 {offsets = [0, 0], sizes = [8, 128], strides = [1, 1]} : vector<8x512xf32> to vector<8x128xf32>
    %cst_94 = arith.constant 5.000000e-01 : f32
    %211 = vector.broadcast %cst_94 : f32 to vector<8x128xf32>
    %212 = arith.mulf %211, %210 : vector<8x128xf32>
    %213 = math.tanh %212 : vector<8x128xf32>
    %cst_95 = arith.constant 5.000000e-01 : f32
    %214 = vector.broadcast %cst_95 : f32 to vector<8x128xf32>
    %215 = arith.mulf %214, %213 : vector<8x128xf32>
    %cst_96 = arith.constant 5.000000e-01 : f32
    %216 = vector.broadcast %cst_96 : f32 to vector<8x128xf32>
    %217 = arith.addf %215, %216 : vector<8x128xf32>
    %218 = vector.extract_strided_slice %209 {offsets = [0, 128], sizes = [8, 128], strides = [1, 1]} : vector<8x512xf32> to vector<8x128xf32>
    %cst_97 = arith.constant 5.000000e-01 : f32
    %219 = vector.broadcast %cst_97 : f32 to vector<8x128xf32>
    %220 = arith.mulf %219, %218 : vector<8x128xf32>
    %221 = math.tanh %220 : vector<8x128xf32>
    %cst_98 = arith.constant 5.000000e-01 : f32
    %222 = vector.broadcast %cst_98 : f32 to vector<8x128xf32>
    %223 = arith.mulf %222, %221 : vector<8x128xf32>
    %cst_99 = arith.constant 5.000000e-01 : f32
    %224 = vector.broadcast %cst_99 : f32 to vector<8x128xf32>
    %225 = arith.addf %223, %224 : vector<8x128xf32>
    %226 = vector.extract_strided_slice %209 {offsets = [0, 256], sizes = [8, 128], strides = [1, 1]} : vector<8x512xf32> to vector<8x128xf32>
    %227 = math.tanh %226 : vector<8x128xf32>
    %228 = vector.extract_strided_slice %209 {offsets = [0, 384], sizes = [8, 128], strides = [1, 1]} : vector<8x512xf32> to vector<8x128xf32>
    %cst_100 = arith.constant 5.000000e-01 : f32
    %229 = vector.broadcast %cst_100 : f32 to vector<8x128xf32>
    %230 = arith.mulf %229, %228 : vector<8x128xf32>
    %231 = math.tanh %230 : vector<8x128xf32>
    %cst_101 = arith.constant 5.000000e-01 : f32
    %232 = vector.broadcast %cst_101 : f32 to vector<8x128xf32>
    %233 = arith.mulf %232, %231 : vector<8x128xf32>
    %cst_102 = arith.constant 5.000000e-01 : f32
    %234 = vector.broadcast %cst_102 : f32 to vector<8x128xf32>
    %235 = arith.addf %233, %234 : vector<8x128xf32>
    %236 = arith.mulf %225, %145 : vector<8x128xf32>
    %237 = arith.mulf %217, %227 : vector<8x128xf32>
    %238 = arith.addf %236, %237 : vector<8x128xf32>
    %239 = math.tanh %238 : vector<8x128xf32>
    %240 = arith.mulf %235, %239 : vector<8x128xf32>
    %241 = arith.truncf %240 : vector<8x128xf32> to vector<8x128xbf16>
    %c0_103 = arith.constant 0 : index
    %c0_104 = arith.constant 0 : index
    %242 = vector.load %arg13[%c0_103, %c0_104] : memref<8x256xbf16, #tpu.memory_space<vmem>>, vector<8x128xbf16>
    tpu.vector_store %arg13[%c0_103, %c0_104], %241 {strides = array<i32>} : memref<8x256xbf16, #tpu.memory_space<vmem>>, vector<8x128xbf16>,
    %c0_105 = arith.constant 0 : index
    %c0_106 = arith.constant 0 : index
    %243 = vector.load %arg13[%c0_105, %c0_106] : memref<8x256xbf16, #tpu.memory_space<vmem>>, vector<8x256xbf16>
    %c0_107 = arith.constant 0 : index
    %c0_108 = arith.constant 0 : index
    %244 = vector.load %arg6[%c0_107, %c0_108] : memref<256x512xbf16, #tpu.memory_space<vmem>>, vector<256x512xbf16>
    %cst_109 = arith.constant dense<0.000000e+00> : vector<8x512xf32>
    %245 = tpu.matmul %243, %244, %cst_109 {dimension_numbers = #tpu.dot_dimension_numbers<[1], [0], [0], [1], [0, 0, 1, 1], [], []>} : vector<8x256xbf16>, vector<256x512xbf16>, vector<8x512xf32> -> vector<8x512xf32>
    %246 = vector.broadcast %5 : vector<1x512xf32> to vector<8x512xf32>
    %247 = arith.addf %245, %246 : vector<8x512xf32>
    %248 = vector.extract_strided_slice %247 {offsets = [0, 0], sizes = [8, 128], strides = [1, 1]} : vector<8x512xf32> to vector<8x128xf32>
    %cst_110 = arith.constant 5.000000e-01 : f32
    %249 = vector.broadcast %cst_110 : f32 to vector<8x128xf32>
    %250 = arith.mulf %249, %248 : vector<8x128xf32>
    %251 = math.tanh %250 : vector<8x128xf32>
    %cst_111 = arith.constant 5.000000e-01 : f32
    %252 = vector.broadcast %cst_111 : f32 to vector<8x128xf32>
    %253 = arith.mulf %252, %251 : vector<8x128xf32>
    %cst_112 = arith.constant 5.000000e-01 : f32
    %254 = vector.broadcast %cst_112 : f32 to vector<8x128xf32>
    %255 = arith.addf %253, %254 : vector<8x128xf32>
    %256 = vector.extract_strided_slice %247 {offsets = [0, 128], sizes = [8, 128], strides = [1, 1]} : vector<8x512xf32> to vector<8x128xf32>
    %cst_113 = arith.constant 5.000000e-01 : f32
    %257 = vector.broadcast %cst_113 : f32 to vector<8x128xf32>
    %258 = arith.mulf %257, %256 : vector<8x128xf32>
    %259 = math.tanh %258 : vector<8x128xf32>
    %cst_114 = arith.constant 5.000000e-01 : f32
    %260 = vector.broadcast %cst_114 : f32 to vector<8x128xf32>
    %261 = arith.mulf %260, %259 : vector<8x128xf32>
    %cst_115 = arith.constant 5.000000e-01 : f32
    %262 = vector.broadcast %cst_115 : f32 to vector<8x128xf32>
    %263 = arith.addf %261, %262 : vector<8x128xf32>
    %264 = vector.extract_strided_slice %247 {offsets = [0, 256], sizes = [8, 128], strides = [1, 1]} : vector<8x512xf32> to vector<8x128xf32>
    %265 = math.tanh %264 : vector<8x128xf32>
    %266 = vector.extract_strided_slice %247 {offsets = [0, 384], sizes = [8, 128], strides = [1, 1]} : vector<8x512xf32> to vector<8x128xf32>
    %cst_116 = arith.constant 5.000000e-01 : f32
    %267 = vector.broadcast %cst_116 : f32 to vector<8x128xf32>
    %268 = arith.mulf %267, %266 : vector<8x128xf32>
    %269 = math.tanh %268 : vector<8x128xf32>
    %cst_117 = arith.constant 5.000000e-01 : f32
    %270 = vector.broadcast %cst_117 : f32 to vector<8x128xf32>
    %271 = arith.mulf %270, %269 : vector<8x128xf32>
    %cst_118 = arith.constant 5.000000e-01 : f32
    %272 = vector.broadcast %cst_118 : f32 to vector<8x128xf32>
    %273 = arith.addf %271, %272 : vector<8x128xf32>
    %274 = arith.mulf %263, %183 : vector<8x128xf32>
    %275 = arith.mulf %255, %265 : vector<8x128xf32>
    %276 = arith.addf %274, %275 : vector<8x128xf32>
    %277 = math.tanh %276 : vector<8x128xf32>
    %278 = arith.mulf %273, %277 : vector<8x128xf32>
    %279 = arith.truncf %278 : vector<8x128xf32> to vector<8x128xbf16>
    %c0_119 = arith.constant 0 : index
    %c128_120 = arith.constant 128 : index
    %280 = vector.load %arg13[%c0_119, %c128_120] : memref<8x256xbf16, #tpu.memory_space<vmem>>, vector<8x128xbf16>
    tpu.vector_store %arg13[%c0_119, %c128_120], %279 {strides = array<i32>} : memref<8x256xbf16, #tpu.memory_space<vmem>>, vector<8x128xbf16>,
    %281 = vector.broadcast %6 : vector<1x128xf32> to vector<8x128xf32>
    %282 = arith.mulf %278, %281 : vector<8x128xf32>
    %cst_121 = arith.constant dense<0.000000e+00> : vector<8xf32>
    %283 = vector.multi_reduction <add>, %282, %cst_121 [1] : vector<8x128xf32> to vector<8xf32>
    %284 = vector.broadcast %8 : vector<1xf32> to vector<8xf32>
    %285 = arith.addf %283, %284 : vector<8xf32>
    %c0_122 = arith.constant 0 : index
    %286 = arith.index_cast %c2_i32 : i32 to index
    %c0_123 = arith.constant 0 : index
    %287 = vector.load %arg10[%c0_122, %286, %c0_123] : memref<1x8x8xf32, #tpu.memory_space<vmem>>, vector<1x1x8xf32>
    %288 = vector.shape_cast %287 : vector<1x1x8xf32> to vector<8xf32>
    %289 = vector.shape_cast %285 : vector<8xf32> to vector<1x1x8xf32>
    tpu.vector_store %arg10[%c0_122, %286, %c0_123], %289 {strides = array<i32>} : memref<1x8x8xf32, #tpu.memory_space<vmem>>, vector<1x1x8xf32>,
    %c3_i32 = arith.constant 3 : i32
    %c0_124 = arith.constant 0 : index
    %290 = arith.index_cast %c3_i32 : i32 to index
    %c0_125 = arith.constant 0 : index
    %291 = vector.load %arg2[%c0_124, %290, %c0_125] : memref<1x8x8xf32, #tpu.memory_space<vmem>>, vector<1x1x8xf32>
    %292 = vector.shape_cast %291 : vector<1x1x8xf32> to vector<8xf32>
    %293 = vector.shape_cast %292 : vector<8xf32> to vector<8x1xf32>
    %294 = vector.broadcast %293 : vector<8x1xf32> to vector<8x512xf32>
    %295 = vector.broadcast %3 : vector<1x512xf32> to vector<8x512xf32>
    %296 = arith.mulf %294, %295 : vector<8x512xf32>
    %297 = vector.broadcast %4 : vector<1x512xf32> to vector<8x512xf32>
    %298 = arith.addf %296, %297 : vector<8x512xf32>
    %c0_126 = arith.constant 0 : index
    %c0_127 = arith.constant 0 : index
    %299 = vector.load %arg13[%c0_126, %c0_127] : memref<8x256xbf16, #tpu.memory_space<vmem>>, vector<8x128xbf16>
    %c0_128 = arith.constant 0 : index
    %c0_129 = arith.constant 0 : index
    %300 = vector.load %arg5[%c0_128, %c0_129] : memref<128x512xbf16, #tpu.memory_space<vmem>>, vector<128x512xbf16>
    %cst_130 = arith.constant dense<0.000000e+00> : vector<8x512xf32>
    %301 = tpu.matmul %299, %300, %cst_130 {dimension_numbers = #tpu.dot_dimension_numbers<[1], [0], [0], [1], [0, 0, 1, 1], [], []>} : vector<8x128xbf16>, vector<128x512xbf16>, vector<8x512xf32> -> vector<8x512xf32>
    %302 = arith.addf %298, %301 : vector<8x512xf32>
    %303 = vector.extract_strided_slice %302 {offsets = [0, 0], sizes = [8, 128], strides = [1, 1]} : vector<8x512xf32> to vector<8x128xf32>
    %cst_131 = arith.constant 5.000000e-01 : f32
    %304 = vector.broadcast %cst_131 : f32 to vector<8x128xf32>
    %305 = arith.mulf %304, %303 : vector<8x128xf32>
    %306 = math.tanh %305 : vector<8x128xf32>
    %cst_132 = arith.constant 5.000000e-01 : f32
    %307 = vector.broadcast %cst_132 : f32 to vector<8x128xf32>
    %308 = arith.mulf %307, %306 : vector<8x128xf32>
    %cst_133 = arith.constant 5.000000e-01 : f32
    %309 = vector.broadcast %cst_133 : f32 to vector<8x128xf32>
    %310 = arith.addf %308, %309 : vector<8x128xf32>
    %311 = vector.extract_strided_slice %302 {offsets = [0, 128], sizes = [8, 128], strides = [1, 1]} : vector<8x512xf32> to vector<8x128xf32>
    %cst_134 = arith.constant 5.000000e-01 : f32
    %312 = vector.broadcast %cst_134 : f32 to vector<8x128xf32>
    %313 = arith.mulf %312, %311 : vector<8x128xf32>
    %314 = math.tanh %313 : vector<8x128xf32>
    %cst_135 = arith.constant 5.000000e-01 : f32
    %315 = vector.broadcast %cst_135 : f32 to vector<8x128xf32>
    %316 = arith.mulf %315, %314 : vector<8x128xf32>
    %cst_136 = arith.constant 5.000000e-01 : f32
    %317 = vector.broadcast %cst_136 : f32 to vector<8x128xf32>
    %318 = arith.addf %316, %317 : vector<8x128xf32>
    %319 = vector.extract_strided_slice %302 {offsets = [0, 256], sizes = [8, 128], strides = [1, 1]} : vector<8x512xf32> to vector<8x128xf32>
    %320 = math.tanh %319 : vector<8x128xf32>
    %321 = vector.extract_strided_slice %302 {offsets = [0, 384], sizes = [8, 128], strides = [1, 1]} : vector<8x512xf32> to vector<8x128xf32>
    %cst_137 = arith.constant 5.000000e-01 : f32
    %322 = vector.broadcast %cst_137 : f32 to vector<8x128xf32>
    %323 = arith.mulf %322, %321 : vector<8x128xf32>
    %324 = math.tanh %323 : vector<8x128xf32>
    %cst_138 = arith.constant 5.000000e-01 : f32
    %325 = vector.broadcast %cst_138 : f32 to vector<8x128xf32>
    %326 = arith.mulf %325, %324 : vector<8x128xf32>
    %cst_139 = arith.constant 5.000000e-01 : f32
    %327 = vector.broadcast %cst_139 : f32 to vector<8x128xf32>
    %328 = arith.addf %326, %327 : vector<8x128xf32>
    %329 = arith.mulf %318, %238 : vector<8x128xf32>
    %330 = arith.mulf %310, %320 : vector<8x128xf32>
    %331 = arith.addf %329, %330 : vector<8x128xf32>
    %332 = math.tanh %331 : vector<8x128xf32>
    %333 = arith.mulf %328, %332 : vector<8x128xf32>
    %334 = arith.truncf %333 : vector<8x128xf32> to vector<8x128xbf16>
    %c0_140 = arith.constant 0 : index
    %c0_141 = arith.constant 0 : index
    %335 = vector.load %arg13[%c0_140, %c0_141] : memref<8x256xbf16, #tpu.memory_space<vmem>>, vector<8x128xbf16>
    tpu.vector_store %arg13[%c0_140, %c0_141], %334 {strides = array<i32>} : memref<8x256xbf16, #tpu.memory_space<vmem>>, vector<8x128xbf16>,
    %c0_142 = arith.constant 0 : index
    %c0_143 = arith.constant 0 : index
    %336 = vector.load %arg13[%c0_142, %c0_143] : memref<8x256xbf16, #tpu.memory_space<vmem>>, vector<8x256xbf16>
    %c0_144 = arith.constant 0 : index
    %c0_145 = arith.constant 0 : index
    %337 = vector.load %arg6[%c0_144, %c0_145] : memref<256x512xbf16, #tpu.memory_space<vmem>>, vector<256x512xbf16>
    %cst_146 = arith.constant dense<0.000000e+00> : vector<8x512xf32>
    %338 = tpu.matmul %336, %337, %cst_146 {dimension_numbers = #tpu.dot_dimension_numbers<[1], [0], [0], [1], [0, 0, 1, 1], [], []>} : vector<8x256xbf16>, vector<256x512xbf16>, vector<8x512xf32> -> vector<8x512xf32>
    %339 = vector.broadcast %5 : vector<1x512xf32> to vector<8x512xf32>
    %340 = arith.addf %338, %339 : vector<8x512xf32>
    %341 = vector.extract_strided_slice %340 {offsets = [0, 0], sizes = [8, 128], strides = [1, 1]} : vector<8x512xf32> to vector<8x128xf32>
    %cst_147 = arith.constant 5.000000e-01 : f32
    %342 = vector.broadcast %cst_147 : f32 to vector<8x128xf32>
    %343 = arith.mulf %342, %341 : vector<8x128xf32>
    %344 = math.tanh %343 : vector<8x128xf32>
    %cst_148 = arith.constant 5.000000e-01 : f32
    %345 = vector.broadcast %cst_148 : f32 to vector<8x128xf32>
    %346 = arith.mulf %345, %344 : vector<8x128xf32>
    %cst_149 = arith.constant 5.000000e-01 : f32
    %347 = vector.broadcast %cst_149 : f32 to vector<8x128xf32>
    %348 = arith.addf %346, %347 : vector<8x128xf32>
    %349 = vector.extract_strided_slice %340 {offsets = [0, 128], sizes = [8, 128], strides = [1, 1]} : vector<8x512xf32> to vector<8x128xf32>
    %cst_150 = arith.constant 5.000000e-01 : f32
    %350 = vector.broadcast %cst_150 : f32 to vector<8x128xf32>
    %351 = arith.mulf %350, %349 : vector<8x128xf32>
    %352 = math.tanh %351 : vector<8x128xf32>
    %cst_151 = arith.constant 5.000000e-01 : f32
    %353 = vector.broadcast %cst_151 : f32 to vector<8x128xf32>
    %354 = arith.mulf %353, %352 : vector<8x128xf32>
    %cst_152 = arith.constant 5.000000e-01 : f32
    %355 = vector.broadcast %cst_152 : f32 to vector<8x128xf32>
    %356 = arith.addf %354, %355 : vector<8x128xf32>
    %357 = vector.extract_strided_slice %340 {offsets = [0, 256], sizes = [8, 128], strides = [1, 1]} : vector<8x512xf32> to vector<8x128xf32>
    %358 = math.tanh %357 : vector<8x128xf32>
    %359 = vector.extract_strided_slice %340 {offsets = [0, 384], sizes = [8, 128], strides = [1, 1]} : vector<8x512xf32> to vector<8x128xf32>
    %cst_153 = arith.constant 5.000000e-01 : f32
    %360 = vector.broadcast %cst_153 : f32 to vector<8x128xf32>
    %361 = arith.mulf %360, %359 : vector<8x128xf32>
    %362 = math.tanh %361 : vector<8x128xf32>
    %cst_154 = arith.constant 5.000000e-01 : f32
    %363 = vector.broadcast %cst_154 : f32 to vector<8x128xf32>
    %364 = arith.mulf %363, %362 : vector<8x128xf32>
    %cst_155 = arith.constant 5.000000e-01 : f32
    %365 = vector.broadcast %cst_155 : f32 to vector<8x128xf32>
    %366 = arith.addf %364, %365 : vector<8x128xf32>
    %367 = arith.mulf %356, %276 : vector<8x128xf32>
    %368 = arith.mulf %348, %358 : vector<8x128xf32>
    %369 = arith.addf %367, %368 : vector<8x128xf32>
    %370 = math.tanh %369 : vector<8x128xf32>
    %371 = arith.mulf %366, %370 : vector<8x128xf32>
    %372 = arith.truncf %371 : vector<8x128xf32> to vector<8x128xbf16>
    %c0_156 = arith.constant 0 : index
    %c128_157 = arith.constant 128 : index
    %373 = vector.load %arg13[%c0_156, %c128_157] : memref<8x256xbf16, #tpu.memory_space<vmem>>, vector<8x128xbf16>
    tpu.vector_store %arg13[%c0_156, %c128_157], %372 {strides = array<i32>} : memref<8x256xbf16, #tpu.memory_space<vmem>>, vector<8x128xbf16>,
    %374 = vector.broadcast %6 : vector<1x128xf32> to vector<8x128xf32>
    %375 = arith.mulf %371, %374 : vector<8x128xf32>
    %cst_158 = arith.constant dense<0.000000e+00> : vector<8xf32>
    %376 = vector.multi_reduction <add>, %375, %cst_158 [1] : vector<8x128xf32> to vector<8xf32>
    %377 = vector.broadcast %8 : vector<1xf32> to vector<8xf32>
    %378 = arith.addf %376, %377 : vector<8xf32>
    %c0_159 = arith.constant 0 : index
    %379 = arith.index_cast %c3_i32 : i32 to index
    %c0_160 = arith.constant 0 : index
    %380 = vector.load %arg10[%c0_159, %379, %c0_160] : memref<1x8x8xf32, #tpu.memory_space<vmem>>, vector<1x1x8xf32>
    %381 = vector.shape_cast %380 : vector<1x1x8xf32> to vector<8xf32>
    %382 = vector.shape_cast %378 : vector<8xf32> to vector<1x1x8xf32>
    tpu.vector_store %arg10[%c0_159, %379, %c0_160], %382 {strides = array<i32>} : memref<1x8x8xf32, #tpu.memory_space<vmem>>, vector<1x1x8xf32>,
    %c4_i32 = arith.constant 4 : i32
    %c0_161 = arith.constant 0 : index
    %383 = arith.index_cast %c4_i32 : i32 to index
    %c0_162 = arith.constant 0 : index
    %384 = vector.load %arg2[%c0_161, %383, %c0_162] : memref<1x8x8xf32, #tpu.memory_space<vmem>>, vector<1x1x8xf32>
    %385 = vector.shape_cast %384 : vector<1x1x8xf32> to vector<8xf32>
    %386 = vector.shape_cast %385 : vector<8xf32> to vector<8x1xf32>
    %387 = vector.broadcast %386 : vector<8x1xf32> to vector<8x512xf32>
    %388 = vector.broadcast %3 : vector<1x512xf32> to vector<8x512xf32>
    %389 = arith.mulf %387, %388 : vector<8x512xf32>
    %390 = vector.broadcast %4 : vector<1x512xf32> to vector<8x512xf32>
    %391 = arith.addf %389, %390 : vector<8x512xf32>
    %c0_163 = arith.constant 0 : index
    %c0_164 = arith.constant 0 : index
    %392 = vector.load %arg13[%c0_163, %c0_164] : memref<8x256xbf16, #tpu.memory_space<vmem>>, vector<8x128xbf16>
    %c0_165 = arith.constant 0 : index
    %c0_166 = arith.constant 0 : index
    %393 = vector.load %arg5[%c0_165, %c0_166] : memref<128x512xbf16, #tpu.memory_space<vmem>>, vector<128x512xbf16>
    %cst_167 = arith.constant dense<0.000000e+00> : vector<8x512xf32>
    %394 = tpu.matmul %392, %393, %cst_167 {dimension_numbers = #tpu.dot_dimension_numbers<[1], [0], [0], [1], [0, 0, 1, 1], [], []>} : vector<8x128xbf16>, vector<128x512xbf16>, vector<8x512xf32> -> vector<8x512xf32>
    %395 = arith.addf %391, %394 : vector<8x512xf32>
    %396 = vector.extract_strided_slice %395 {offsets = [0, 0], sizes = [8, 128], strides = [1, 1]} : vector<8x512xf32> to vector<8x128xf32>
    %cst_168 = arith.constant 5.000000e-01 : f32
    %397 = vector.broadcast %cst_168 : f32 to vector<8x128xf32>
    %398 = arith.mulf %397, %396 : vector<8x128xf32>
    %399 = math.tanh %398 : vector<8x128xf32>
    %cst_169 = arith.constant 5.000000e-01 : f32
    %400 = vector.broadcast %cst_169 : f32 to vector<8x128xf32>
    %401 = arith.mulf %400, %399 : vector<8x128xf32>
    %cst_170 = arith.constant 5.000000e-01 : f32
    %402 = vector.broadcast %cst_170 : f32 to vector<8x128xf32>
    %403 = arith.addf %401, %402 : vector<8x128xf32>
    %404 = vector.extract_strided_slice %395 {offsets = [0, 128], sizes = [8, 128], strides = [1, 1]} : vector<8x512xf32> to vector<8x128xf32>
    %cst_171 = arith.constant 5.000000e-01 : f32
    %405 = vector.broadcast %cst_171 : f32 to vector<8x128xf32>
    %406 = arith.mulf %405, %404 : vector<8x128xf32>
    %407 = math.tanh %406 : vector<8x128xf32>
    %cst_172 = arith.constant 5.000000e-01 : f32
    %408 = vector.broadcast %cst_172 : f32 to vector<8x128xf32>
    %409 = arith.mulf %408, %407 : vector<8x128xf32>
    %cst_173 = arith.constant 5.000000e-01 : f32
    %410 = vector.broadcast %cst_173 : f32 to vector<8x128xf32>
    %411 = arith.addf %409, %410 : vector<8x128xf32>
    %412 = vector.extract_strided_slice %395 {offsets = [0, 256], sizes = [8, 128], strides = [1, 1]} : vector<8x512xf32> to vector<8x128xf32>
    %413 = math.tanh %412 : vector<8x128xf32>
    %414 = vector.extract_strided_slice %395 {offsets = [0, 384], sizes = [8, 128], strides = [1, 1]} : vector<8x512xf32> to vector<8x128xf32>
    %cst_174 = arith.constant 5.000000e-01 : f32
    %415 = vector.broadcast %cst_174 : f32 to vector<8x128xf32>
    %416 = arith.mulf %415, %414 : vector<8x128xf32>
    %417 = math.tanh %416 : vector<8x128xf32>
    %cst_175 = arith.constant 5.000000e-01 : f32
    %418 = vector.broadcast %cst_175 : f32 to vector<8x128xf32>
    %419 = arith.mulf %418, %417 : vector<8x128xf32>
    %cst_176 = arith.constant 5.000000e-01 : f32
    %420 = vector.broadcast %cst_176 : f32 to vector<8x128xf32>
    %421 = arith.addf %419, %420 : vector<8x128xf32>
    %422 = arith.mulf %411, %331 : vector<8x128xf32>
    %423 = arith.mulf %403, %413 : vector<8x128xf32>
    %424 = arith.addf %422, %423 : vector<8x128xf32>
    %425 = math.tanh %424 : vector<8x128xf32>
    %426 = arith.mulf %421, %425 : vector<8x128xf32>
    %427 = arith.truncf %426 : vector<8x128xf32> to vector<8x128xbf16>
    %c0_177 = arith.constant 0 : index
    %c0_178 = arith.constant 0 : index
    %428 = vector.load %arg13[%c0_177, %c0_178] : memref<8x256xbf16, #tpu.memory_space<vmem>>, vector<8x128xbf16>
    tpu.vector_store %arg13[%c0_177, %c0_178], %427 {strides = array<i32>} : memref<8x256xbf16, #tpu.memory_space<vmem>>, vector<8x128xbf16>,
    %c0_179 = arith.constant 0 : index
    %c0_180 = arith.constant 0 : index
    %429 = vector.load %arg13[%c0_179, %c0_180] : memref<8x256xbf16, #tpu.memory_space<vmem>>, vector<8x256xbf16>
    %c0_181 = arith.constant 0 : index
    %c0_182 = arith.constant 0 : index
    %430 = vector.load %arg6[%c0_181, %c0_182] : memref<256x512xbf16, #tpu.memory_space<vmem>>, vector<256x512xbf16>
    %cst_183 = arith.constant dense<0.000000e+00> : vector<8x512xf32>
    %431 = tpu.matmul %429, %430, %cst_183 {dimension_numbers = #tpu.dot_dimension_numbers<[1], [0], [0], [1], [0, 0, 1, 1], [], []>} : vector<8x256xbf16>, vector<256x512xbf16>, vector<8x512xf32> -> vector<8x512xf32>
    %432 = vector.broadcast %5 : vector<1x512xf32> to vector<8x512xf32>
    %433 = arith.addf %431, %432 : vector<8x512xf32>
    %434 = vector.extract_strided_slice %433 {offsets = [0, 0], sizes = [8, 128], strides = [1, 1]} : vector<8x512xf32> to vector<8x128xf32>
    %cst_184 = arith.constant 5.000000e-01 : f32
    %435 = vector.broadcast %cst_184 : f32 to vector<8x128xf32>
    %436 = arith.mulf %435, %434 : vector<8x128xf32>
    %437 = math.tanh %436 : vector<8x128xf32>
    %cst_185 = arith.constant 5.000000e-01 : f32
    %438 = vector.broadcast %cst_185 : f32 to vector<8x128xf32>
    %439 = arith.mulf %438, %437 : vector<8x128xf32>
    %cst_186 = arith.constant 5.000000e-01 : f32
    %440 = vector.broadcast %cst_186 : f32 to vector<8x128xf32>
    %441 = arith.addf %439, %440 : vector<8x128xf32>
    %442 = vector.extract_strided_slice %433 {offsets = [0, 128], sizes = [8, 128], strides = [1, 1]} : vector<8x512xf32> to vector<8x128xf32>
    %cst_187 = arith.constant 5.000000e-01 : f32
    %443 = vector.broadcast %cst_187 : f32 to vector<8x128xf32>
    %444 = arith.mulf %443, %442 : vector<8x128xf32>
    %445 = math.tanh %444 : vector<8x128xf32>
    %cst_188 = arith.constant 5.000000e-01 : f32
    %446 = vector.broadcast %cst_188 : f32 to vector<8x128xf32>
    %447 = arith.mulf %446, %445 : vector<8x128xf32>
    %cst_189 = arith.constant 5.000000e-01 : f32
    %448 = vector.broadcast %cst_189 : f32 to vector<8x128xf32>
    %449 = arith.addf %447, %448 : vector<8x128xf32>
    %450 = vector.extract_strided_slice %433 {offsets = [0, 256], sizes = [8, 128], strides = [1, 1]} : vector<8x512xf32> to vector<8x128xf32>
    %451 = math.tanh %450 : vector<8x128xf32>
    %452 = vector.extract_strided_slice %433 {offsets = [0, 384], sizes = [8, 128], strides = [1, 1]} : vector<8x512xf32> to vector<8x128xf32>
    %cst_190 = arith.constant 5.000000e-01 : f32
    %453 = vector.broadcast %cst_190 : f32 to vector<8x128xf32>
    %454 = arith.mulf %453, %452 : vector<8x128xf32>
    %455 = math.tanh %454 : vector<8x128xf32>
    %cst_191 = arith.constant 5.000000e-01 : f32
    %456 = vector.broadcast %cst_191 : f32 to vector<8x128xf32>
    %457 = arith.mulf %456, %455 : vector<8x128xf32>
    %cst_192 = arith.constant 5.000000e-01 : f32
    %458 = vector.broadcast %cst_192 : f32 to vector<8x128xf32>
    %459 = arith.addf %457, %458 : vector<8x128xf32>
    %460 = arith.mulf %449, %369 : vector<8x128xf32>
    %461 = arith.mulf %441, %451 : vector<8x128xf32>
    %462 = arith.addf %460, %461 : vector<8x128xf32>
    %463 = math.tanh %462 : vector<8x128xf32>
    %464 = arith.mulf %459, %463 : vector<8x128xf32>
    %465 = arith.truncf %464 : vector<8x128xf32> to vector<8x128xbf16>
    %c0_193 = arith.constant 0 : index
    %c128_194 = arith.constant 128 : index
    %466 = vector.load %arg13[%c0_193, %c128_194] : memref<8x256xbf16, #tpu.memory_space<vmem>>, vector<8x128xbf16>
    tpu.vector_store %arg13[%c0_193, %c128_194], %465 {strides = array<i32>} : memref<8x256xbf16, #tpu.memory_space<vmem>>, vector<8x128xbf16>,
    %467 = vector.broadcast %6 : vector<1x128xf32> to vector<8x128xf32>
    %468 = arith.mulf %464, %467 : vector<8x128xf32>
    %cst_195 = arith.constant dense<0.000000e+00> : vector<8xf32>
    %469 = vector.multi_reduction <add>, %468, %cst_195 [1] : vector<8x128xf32> to vector<8xf32>
    %470 = vector.broadcast %8 : vector<1xf32> to vector<8xf32>
    %471 = arith.addf %469, %470 : vector<8xf32>
    %c0_196 = arith.constant 0 : index
    %472 = arith.index_cast %c4_i32 : i32 to index
    %c0_197 = arith.constant 0 : index
    %473 = vector.load %arg10[%c0_196, %472, %c0_197] : memref<1x8x8xf32, #tpu.memory_space<vmem>>, vector<1x1x8xf32>
    %474 = vector.shape_cast %473 : vector<1x1x8xf32> to vector<8xf32>
    %475 = vector.shape_cast %471 : vector<8xf32> to vector<1x1x8xf32>
    tpu.vector_store %arg10[%c0_196, %472, %c0_197], %475 {strides = array<i32>} : memref<1x8x8xf32, #tpu.memory_space<vmem>>, vector<1x1x8xf32>,
    %c5_i32 = arith.constant 5 : i32
    %c0_198 = arith.constant 0 : index
    %476 = arith.index_cast %c5_i32 : i32 to index
    %c0_199 = arith.constant 0 : index
    %477 = vector.load %arg2[%c0_198, %476, %c0_199] : memref<1x8x8xf32, #tpu.memory_space<vmem>>, vector<1x1x8xf32>
    %478 = vector.shape_cast %477 : vector<1x1x8xf32> to vector<8xf32>
    %479 = vector.shape_cast %478 : vector<8xf32> to vector<8x1xf32>
    %480 = vector.broadcast %479 : vector<8x1xf32> to vector<8x512xf32>
    %481 = vector.broadcast %3 : vector<1x512xf32> to vector<8x512xf32>
    %482 = arith.mulf %480, %481 : vector<8x512xf32>
    %483 = vector.broadcast %4 : vector<1x512xf32> to vector<8x512xf32>
    %484 = arith.addf %482, %483 : vector<8x512xf32>
    %c0_200 = arith.constant 0 : index
    %c0_201 = arith.constant 0 : index
    %485 = vector.load %arg13[%c0_200, %c0_201] : memref<8x256xbf16, #tpu.memory_space<vmem>>, vector<8x128xbf16>
    %c0_202 = arith.constant 0 : index
    %c0_203 = arith.constant 0 : index
    %486 = vector.load %arg5[%c0_202, %c0_203] : memref<128x512xbf16, #tpu.memory_space<vmem>>, vector<128x512xbf16>
    %cst_204 = arith.constant dense<0.000000e+00> : vector<8x512xf32>
    %487 = tpu.matmul %485, %486, %cst_204 {dimension_numbers = #tpu.dot_dimension_numbers<[1], [0], [0], [1], [0, 0, 1, 1], [], []>} : vector<8x128xbf16>, vector<128x512xbf16>, vector<8x512xf32> -> vector<8x512xf32>
    %488 = arith.addf %484, %487 : vector<8x512xf32>
    %489 = vector.extract_strided_slice %488 {offsets = [0, 0], sizes = [8, 128], strides = [1, 1]} : vector<8x512xf32> to vector<8x128xf32>
    %cst_205 = arith.constant 5.000000e-01 : f32
    %490 = vector.broadcast %cst_205 : f32 to vector<8x128xf32>
    %491 = arith.mulf %490, %489 : vector<8x128xf32>
    %492 = math.tanh %491 : vector<8x128xf32>
    %cst_206 = arith.constant 5.000000e-01 : f32
    %493 = vector.broadcast %cst_206 : f32 to vector<8x128xf32>
    %494 = arith.mulf %493, %492 : vector<8x128xf32>
    %cst_207 = arith.constant 5.000000e-01 : f32
    %495 = vector.broadcast %cst_207 : f32 to vector<8x128xf32>
    %496 = arith.addf %494, %495 : vector<8x128xf32>
    %497 = vector.extract_strided_slice %488 {offsets = [0, 128], sizes = [8, 128], strides = [1, 1]} : vector<8x512xf32> to vector<8x128xf32>
    %cst_208 = arith.constant 5.000000e-01 : f32
    %498 = vector.broadcast %cst_208 : f32 to vector<8x128xf32>
    %499 = arith.mulf %498, %497 : vector<8x128xf32>
    %500 = math.tanh %499 : vector<8x128xf32>
    %cst_209 = arith.constant 5.000000e-01 : f32
    %501 = vector.broadcast %cst_209 : f32 to vector<8x128xf32>
    %502 = arith.mulf %501, %500 : vector<8x128xf32>
    %cst_210 = arith.constant 5.000000e-01 : f32
    %503 = vector.broadcast %cst_210 : f32 to vector<8x128xf32>
    %504 = arith.addf %502, %503 : vector<8x128xf32>
    %505 = vector.extract_strided_slice %488 {offsets = [0, 256], sizes = [8, 128], strides = [1, 1]} : vector<8x512xf32> to vector<8x128xf32>
    %506 = math.tanh %505 : vector<8x128xf32>
    %507 = vector.extract_strided_slice %488 {offsets = [0, 384], sizes = [8, 128], strides = [1, 1]} : vector<8x512xf32> to vector<8x128xf32>
    %cst_211 = arith.constant 5.000000e-01 : f32
    %508 = vector.broadcast %cst_211 : f32 to vector<8x128xf32>
    %509 = arith.mulf %508, %507 : vector<8x128xf32>
    %510 = math.tanh %509 : vector<8x128xf32>
    %cst_212 = arith.constant 5.000000e-01 : f32
    %511 = vector.broadcast %cst_212 : f32 to vector<8x128xf32>
    %512 = arith.mulf %511, %510 : vector<8x128xf32>
    %cst_213 = arith.constant 5.000000e-01 : f32
    %513 = vector.broadcast %cst_213 : f32 to vector<8x128xf32>
    %514 = arith.addf %512, %513 : vector<8x128xf32>
    %515 = arith.mulf %504, %424 : vector<8x128xf32>
    %516 = arith.mulf %496, %506 : vector<8x128xf32>
    %517 = arith.addf %515, %516 : vector<8x128xf32>
    %518 = math.tanh %517 : vector<8x128xf32>
    %519 = arith.mulf %514, %518 : vector<8x128xf32>
    %520 = arith.truncf %519 : vector<8x128xf32> to vector<8x128xbf16>
    %c0_214 = arith.constant 0 : index
    %c0_215 = arith.constant 0 : index
    %521 = vector.load %arg13[%c0_214, %c0_215] : memref<8x256xbf16, #tpu.memory_space<vmem>>, vector<8x128xbf16>
    tpu.vector_store %arg13[%c0_214, %c0_215], %520 {strides = array<i32>} : memref<8x256xbf16, #tpu.memory_space<vmem>>, vector<8x128xbf16>,
    %c0_216 = arith.constant 0 : index
    %c0_217 = arith.constant 0 : index
    %522 = vector.load %arg13[%c0_216, %c0_217] : memref<8x256xbf16, #tpu.memory_space<vmem>>, vector<8x256xbf16>
    %c0_218 = arith.constant 0 : index
    %c0_219 = arith.constant 0 : index
    %523 = vector.load %arg6[%c0_218, %c0_219] : memref<256x512xbf16, #tpu.memory_space<vmem>>, vector<256x512xbf16>
    %cst_220 = arith.constant dense<0.000000e+00> : vector<8x512xf32>
    %524 = tpu.matmul %522, %523, %cst_220 {dimension_numbers = #tpu.dot_dimension_numbers<[1], [0], [0], [1], [0, 0, 1, 1], [], []>} : vector<8x256xbf16>, vector<256x512xbf16>, vector<8x512xf32> -> vector<8x512xf32>
    %525 = vector.broadcast %5 : vector<1x512xf32> to vector<8x512xf32>
    %526 = arith.addf %524, %525 : vector<8x512xf32>
    %527 = vector.extract_strided_slice %526 {offsets = [0, 0], sizes = [8, 128], strides = [1, 1]} : vector<8x512xf32> to vector<8x128xf32>
    %cst_221 = arith.constant 5.000000e-01 : f32
    %528 = vector.broadcast %cst_221 : f32 to vector<8x128xf32>
    %529 = arith.mulf %528, %527 : vector<8x128xf32>
    %530 = math.tanh %529 : vector<8x128xf32>
    %cst_222 = arith.constant 5.000000e-01 : f32
    %531 = vector.broadcast %cst_222 : f32 to vector<8x128xf32>
    %532 = arith.mulf %531, %530 : vector<8x128xf32>
    %cst_223 = arith.constant 5.000000e-01 : f32
    %533 = vector.broadcast %cst_223 : f32 to vector<8x128xf32>
    %534 = arith.addf %532, %533 : vector<8x128xf32>
    %535 = vector.extract_strided_slice %526 {offsets = [0, 128], sizes = [8, 128], strides = [1, 1]} : vector<8x512xf32> to vector<8x128xf32>
    %cst_224 = arith.constant 5.000000e-01 : f32
    %536 = vector.broadcast %cst_224 : f32 to vector<8x128xf32>
    %537 = arith.mulf %536, %535 : vector<8x128xf32>
    %538 = math.tanh %537 : vector<8x128xf32>
    %cst_225 = arith.constant 5.000000e-01 : f32
    %539 = vector.broadcast %cst_225 : f32 to vector<8x128xf32>
    %540 = arith.mulf %539, %538 : vector<8x128xf32>
    %cst_226 = arith.constant 5.000000e-01 : f32
    %541 = vector.broadcast %cst_226 : f32 to vector<8x128xf32>
    %542 = arith.addf %540, %541 : vector<8x128xf32>
    %543 = vector.extract_strided_slice %526 {offsets = [0, 256], sizes = [8, 128], strides = [1, 1]} : vector<8x512xf32> to vector<8x128xf32>
    %544 = math.tanh %543 : vector<8x128xf32>
    %545 = vector.extract_strided_slice %526 {offsets = [0, 384], sizes = [8, 128], strides = [1, 1]} : vector<8x512xf32> to vector<8x128xf32>
    %cst_227 = arith.constant 5.000000e-01 : f32
    %546 = vector.broadcast %cst_227 : f32 to vector<8x128xf32>
    %547 = arith.mulf %546, %545 : vector<8x128xf32>
    %548 = math.tanh %547 : vector<8x128xf32>
    %cst_228 = arith.constant 5.000000e-01 : f32
    %549 = vector.broadcast %cst_228 : f32 to vector<8x128xf32>
    %550 = arith.mulf %549, %548 : vector<8x128xf32>
    %cst_229 = arith.constant 5.000000e-01 : f32
    %551 = vector.broadcast %cst_229 : f32 to vector<8x128xf32>
    %552 = arith.addf %550, %551 : vector<8x128xf32>
    %553 = arith.mulf %542, %462 : vector<8x128xf32>
    %554 = arith.mulf %534, %544 : vector<8x128xf32>
    %555 = arith.addf %553, %554 : vector<8x128xf32>
    %556 = math.tanh %555 : vector<8x128xf32>
    %557 = arith.mulf %552, %556 : vector<8x128xf32>
    %558 = arith.truncf %557 : vector<8x128xf32> to vector<8x128xbf16>
    %c0_230 = arith.constant 0 : index
    %c128_231 = arith.constant 128 : index
    %559 = vector.load %arg13[%c0_230, %c128_231] : memref<8x256xbf16, #tpu.memory_space<vmem>>, vector<8x128xbf16>
    tpu.vector_store %arg13[%c0_230, %c128_231], %558 {strides = array<i32>} : memref<8x256xbf16, #tpu.memory_space<vmem>>, vector<8x128xbf16>,
    %560 = vector.broadcast %6 : vector<1x128xf32> to vector<8x128xf32>
    %561 = arith.mulf %557, %560 : vector<8x128xf32>
    %cst_232 = arith.constant dense<0.000000e+00> : vector<8xf32>
    %562 = vector.multi_reduction <add>, %561, %cst_232 [1] : vector<8x128xf32> to vector<8xf32>
    %563 = vector.broadcast %8 : vector<1xf32> to vector<8xf32>
    %564 = arith.addf %562, %563 : vector<8xf32>
    %c0_233 = arith.constant 0 : index
    %565 = arith.index_cast %c5_i32 : i32 to index
    %c0_234 = arith.constant 0 : index
    %566 = vector.load %arg10[%c0_233, %565, %c0_234] : memref<1x8x8xf32, #tpu.memory_space<vmem>>, vector<1x1x8xf32>
    %567 = vector.shape_cast %566 : vector<1x1x8xf32> to vector<8xf32>
    %568 = vector.shape_cast %564 : vector<8xf32> to vector<1x1x8xf32>
    tpu.vector_store %arg10[%c0_233, %565, %c0_234], %568 {strides = array<i32>} : memref<1x8x8xf32, #tpu.memory_space<vmem>>, vector<1x1x8xf32>,
    %c6_i32 = arith.constant 6 : i32
    %c0_235 = arith.constant 0 : index
    %569 = arith.index_cast %c6_i32 : i32 to index
    %c0_236 = arith.constant 0 : index
    %570 = vector.load %arg2[%c0_235, %569, %c0_236] : memref<1x8x8xf32, #tpu.memory_space<vmem>>, vector<1x1x8xf32>
    %571 = vector.shape_cast %570 : vector<1x1x8xf32> to vector<8xf32>
    %572 = vector.shape_cast %571 : vector<8xf32> to vector<8x1xf32>
    %573 = vector.broadcast %572 : vector<8x1xf32> to vector<8x512xf32>
    %574 = vector.broadcast %3 : vector<1x512xf32> to vector<8x512xf32>
    %575 = arith.mulf %573, %574 : vector<8x512xf32>
    %576 = vector.broadcast %4 : vector<1x512xf32> to vector<8x512xf32>
    %577 = arith.addf %575, %576 : vector<8x512xf32>
    %c0_237 = arith.constant 0 : index
    %c0_238 = arith.constant 0 : index
    %578 = vector.load %arg13[%c0_237, %c0_238] : memref<8x256xbf16, #tpu.memory_space<vmem>>, vector<8x128xbf16>
    %c0_239 = arith.constant 0 : index
    %c0_240 = arith.constant 0 : index
    %579 = vector.load %arg5[%c0_239, %c0_240] : memref<128x512xbf16, #tpu.memory_space<vmem>>, vector<128x512xbf16>
    %cst_241 = arith.constant dense<0.000000e+00> : vector<8x512xf32>
    %580 = tpu.matmul %578, %579, %cst_241 {dimension_numbers = #tpu.dot_dimension_numbers<[1], [0], [0], [1], [0, 0, 1, 1], [], []>} : vector<8x128xbf16>, vector<128x512xbf16>, vector<8x512xf32> -> vector<8x512xf32>
    %581 = arith.addf %577, %580 : vector<8x512xf32>
    %582 = vector.extract_strided_slice %581 {offsets = [0, 0], sizes = [8, 128], strides = [1, 1]} : vector<8x512xf32> to vector<8x128xf32>
    %cst_242 = arith.constant 5.000000e-01 : f32
    %583 = vector.broadcast %cst_242 : f32 to vector<8x128xf32>
    %584 = arith.mulf %583, %582 : vector<8x128xf32>
    %585 = math.tanh %584 : vector<8x128xf32>
    %cst_243 = arith.constant 5.000000e-01 : f32
    %586 = vector.broadcast %cst_243 : f32 to vector<8x128xf32>
    %587 = arith.mulf %586, %585 : vector<8x128xf32>
    %cst_244 = arith.constant 5.000000e-01 : f32
    %588 = vector.broadcast %cst_244 : f32 to vector<8x128xf32>
    %589 = arith.addf %587, %588 : vector<8x128xf32>
    %590 = vector.extract_strided_slice %581 {offsets = [0, 128], sizes = [8, 128], strides = [1, 1]} : vector<8x512xf32> to vector<8x128xf32>
    %cst_245 = arith.constant 5.000000e-01 : f32
    %591 = vector.broadcast %cst_245 : f32 to vector<8x128xf32>
    %592 = arith.mulf %591, %590 : vector<8x128xf32>
    %593 = math.tanh %592 : vector<8x128xf32>
    %cst_246 = arith.constant 5.000000e-01 : f32
    %594 = vector.broadcast %cst_246 : f32 to vector<8x128xf32>
    %595 = arith.mulf %594, %593 : vector<8x128xf32>
    %cst_247 = arith.constant 5.000000e-01 : f32
    %596 = vector.broadcast %cst_247 : f32 to vector<8x128xf32>
    %597 = arith.addf %595, %596 : vector<8x128xf32>
    %598 = vector.extract_strided_slice %581 {offsets = [0, 256], sizes = [8, 128], strides = [1, 1]} : vector<8x512xf32> to vector<8x128xf32>
    %599 = math.tanh %598 : vector<8x128xf32>
    %600 = vector.extract_strided_slice %581 {offsets = [0, 384], sizes = [8, 128], strides = [1, 1]} : vector<8x512xf32> to vector<8x128xf32>
    %cst_248 = arith.constant 5.000000e-01 : f32
    %601 = vector.broadcast %cst_248 : f32 to vector<8x128xf32>
    %602 = arith.mulf %601, %600 : vector<8x128xf32>
    %603 = math.tanh %602 : vector<8x128xf32>
    %cst_249 = arith.constant 5.000000e-01 : f32
    %604 = vector.broadcast %cst_249 : f32 to vector<8x128xf32>
    %605 = arith.mulf %604, %603 : vector<8x128xf32>
    %cst_250 = arith.constant 5.000000e-01 : f32
    %606 = vector.broadcast %cst_250 : f32 to vector<8x128xf32>
    %607 = arith.addf %605, %606 : vector<8x128xf32>
    %608 = arith.mulf %597, %517 : vector<8x128xf32>
    %609 = arith.mulf %589, %599 : vector<8x128xf32>
    %610 = arith.addf %608, %609 : vector<8x128xf32>
    %611 = math.tanh %610 : vector<8x128xf32>
    %612 = arith.mulf %607, %611 : vector<8x128xf32>
    %613 = arith.truncf %612 : vector<8x128xf32> to vector<8x128xbf16>
    %c0_251 = arith.constant 0 : index
    %c0_252 = arith.constant 0 : index
    %614 = vector.load %arg13[%c0_251, %c0_252] : memref<8x256xbf16, #tpu.memory_space<vmem>>, vector<8x128xbf16>
    tpu.vector_store %arg13[%c0_251, %c0_252], %613 {strides = array<i32>} : memref<8x256xbf16, #tpu.memory_space<vmem>>, vector<8x128xbf16>,
    %c0_253 = arith.constant 0 : index
    %c0_254 = arith.constant 0 : index
    %615 = vector.load %arg13[%c0_253, %c0_254] : memref<8x256xbf16, #tpu.memory_space<vmem>>, vector<8x256xbf16>
    %c0_255 = arith.constant 0 : index
    %c0_256 = arith.constant 0 : index
    %616 = vector.load %arg6[%c0_255, %c0_256] : memref<256x512xbf16, #tpu.memory_space<vmem>>, vector<256x512xbf16>
    %cst_257 = arith.constant dense<0.000000e+00> : vector<8x512xf32>
    %617 = tpu.matmul %615, %616, %cst_257 {dimension_numbers = #tpu.dot_dimension_numbers<[1], [0], [0], [1], [0, 0, 1, 1], [], []>} : vector<8x256xbf16>, vector<256x512xbf16>, vector<8x512xf32> -> vector<8x512xf32>
    %618 = vector.broadcast %5 : vector<1x512xf32> to vector<8x512xf32>
    %619 = arith.addf %617, %618 : vector<8x512xf32>
    %620 = vector.extract_strided_slice %619 {offsets = [0, 0], sizes = [8, 128], strides = [1, 1]} : vector<8x512xf32> to vector<8x128xf32>
    %cst_258 = arith.constant 5.000000e-01 : f32
    %621 = vector.broadcast %cst_258 : f32 to vector<8x128xf32>
    %622 = arith.mulf %621, %620 : vector<8x128xf32>
    %623 = math.tanh %622 : vector<8x128xf32>
    %cst_259 = arith.constant 5.000000e-01 : f32
    %624 = vector.broadcast %cst_259 : f32 to vector<8x128xf32>
    %625 = arith.mulf %624, %623 : vector<8x128xf32>
    %cst_260 = arith.constant 5.000000e-01 : f32
    %626 = vector.broadcast %cst_260 : f32 to vector<8x128xf32>
    %627 = arith.addf %625, %626 : vector<8x128xf32>
    %628 = vector.extract_strided_slice %619 {offsets = [0, 128], sizes = [8, 128], strides = [1, 1]} : vector<8x512xf32> to vector<8x128xf32>
    %cst_261 = arith.constant 5.000000e-01 : f32
    %629 = vector.broadcast %cst_261 : f32 to vector<8x128xf32>
    %630 = arith.mulf %629, %628 : vector<8x128xf32>
    %631 = math.tanh %630 : vector<8x128xf32>
    %cst_262 = arith.constant 5.000000e-01 : f32
    %632 = vector.broadcast %cst_262 : f32 to vector<8x128xf32>
    %633 = arith.mulf %632, %631 : vector<8x128xf32>
    %cst_263 = arith.constant 5.000000e-01 : f32
    %634 = vector.broadcast %cst_263 : f32 to vector<8x128xf32>
    %635 = arith.addf %633, %634 : vector<8x128xf32>
    %636 = vector.extract_strided_slice %619 {offsets = [0, 256], sizes = [8, 128], strides = [1, 1]} : vector<8x512xf32> to vector<8x128xf32>
    %637 = math.tanh %636 : vector<8x128xf32>
    %638 = vector.extract_strided_slice %619 {offsets = [0, 384], sizes = [8, 128], strides = [1, 1]} : vector<8x512xf32> to vector<8x128xf32>
    %cst_264 = arith.constant 5.000000e-01 : f32
    %639 = vector.broadcast %cst_264 : f32 to vector<8x128xf32>
    %640 = arith.mulf %639, %638 : vector<8x128xf32>
    %641 = math.tanh %640 : vector<8x128xf32>
    %cst_265 = arith.constant 5.000000e-01 : f32
    %642 = vector.broadcast %cst_265 : f32 to vector<8x128xf32>
    %643 = arith.mulf %642, %641 : vector<8x128xf32>
    %cst_266 = arith.constant 5.000000e-01 : f32
    %644 = vector.broadcast %cst_266 : f32 to vector<8x128xf32>
    %645 = arith.addf %643, %644 : vector<8x128xf32>
    %646 = arith.mulf %635, %555 : vector<8x128xf32>
    %647 = arith.mulf %627, %637 : vector<8x128xf32>
    %648 = arith.addf %646, %647 : vector<8x128xf32>
    %649 = math.tanh %648 : vector<8x128xf32>
    %650 = arith.mulf %645, %649 : vector<8x128xf32>
    %651 = arith.truncf %650 : vector<8x128xf32> to vector<8x128xbf16>
    %c0_267 = arith.constant 0 : index
    %c128_268 = arith.constant 128 : index
    %652 = vector.load %arg13[%c0_267, %c128_268] : memref<8x256xbf16, #tpu.memory_space<vmem>>, vector<8x128xbf16>
    tpu.vector_store %arg13[%c0_267, %c128_268], %651 {strides = array<i32>} : memref<8x256xbf16, #tpu.memory_space<vmem>>, vector<8x128xbf16>,
    %653 = vector.broadcast %6 : vector<1x128xf32> to vector<8x128xf32>
    %654 = arith.mulf %650, %653 : vector<8x128xf32>
    %cst_269 = arith.constant dense<0.000000e+00> : vector<8xf32>
    %655 = vector.multi_reduction <add>, %654, %cst_269 [1] : vector<8x128xf32> to vector<8xf32>
    %656 = vector.broadcast %8 : vector<1xf32> to vector<8xf32>
    %657 = arith.addf %655, %656 : vector<8xf32>
    %c0_270 = arith.constant 0 : index
    %658 = arith.index_cast %c6_i32 : i32 to index
    %c0_271 = arith.constant 0 : index
    %659 = vector.load %arg10[%c0_270, %658, %c0_271] : memref<1x8x8xf32, #tpu.memory_space<vmem>>, vector<1x1x8xf32>
    %660 = vector.shape_cast %659 : vector<1x1x8xf32> to vector<8xf32>
    %661 = vector.shape_cast %657 : vector<8xf32> to vector<1x1x8xf32>
    tpu.vector_store %arg10[%c0_270, %658, %c0_271], %661 {strides = array<i32>} : memref<1x8x8xf32, #tpu.memory_space<vmem>>, vector<1x1x8xf32>,
    %c7_i32 = arith.constant 7 : i32
    %c0_272 = arith.constant 0 : index
    %662 = arith.index_cast %c7_i32 : i32 to index
    %c0_273 = arith.constant 0 : index
    %663 = vector.load %arg2[%c0_272, %662, %c0_273] : memref<1x8x8xf32, #tpu.memory_space<vmem>>, vector<1x1x8xf32>
    %664 = vector.shape_cast %663 : vector<1x1x8xf32> to vector<8xf32>
    %665 = vector.shape_cast %664 : vector<8xf32> to vector<8x1xf32>
    %666 = vector.broadcast %665 : vector<8x1xf32> to vector<8x512xf32>
    %667 = vector.broadcast %3 : vector<1x512xf32> to vector<8x512xf32>
    %668 = arith.mulf %666, %667 : vector<8x512xf32>
    %669 = vector.broadcast %4 : vector<1x512xf32> to vector<8x512xf32>
    %670 = arith.addf %668, %669 : vector<8x512xf32>
    %c0_274 = arith.constant 0 : index
    %c0_275 = arith.constant 0 : index
    %671 = vector.load %arg13[%c0_274, %c0_275] : memref<8x256xbf16, #tpu.memory_space<vmem>>, vector<8x128xbf16>
    %c0_276 = arith.constant 0 : index
    %c0_277 = arith.constant 0 : index
    %672 = vector.load %arg5[%c0_276, %c0_277] : memref<128x512xbf16, #tpu.memory_space<vmem>>, vector<128x512xbf16>
    %cst_278 = arith.constant dense<0.000000e+00> : vector<8x512xf32>
    %673 = tpu.matmul %671, %672, %cst_278 {dimension_numbers = #tpu.dot_dimension_numbers<[1], [0], [0], [1], [0, 0, 1, 1], [], []>} : vector<8x128xbf16>, vector<128x512xbf16>, vector<8x512xf32> -> vector<8x512xf32>
    %674 = arith.addf %670, %673 : vector<8x512xf32>
    %675 = vector.extract_strided_slice %674 {offsets = [0, 0], sizes = [8, 128], strides = [1, 1]} : vector<8x512xf32> to vector<8x128xf32>
    %cst_279 = arith.constant 5.000000e-01 : f32
    %676 = vector.broadcast %cst_279 : f32 to vector<8x128xf32>
    %677 = arith.mulf %676, %675 : vector<8x128xf32>
    %678 = math.tanh %677 : vector<8x128xf32>
    %cst_280 = arith.constant 5.000000e-01 : f32
    %679 = vector.broadcast %cst_280 : f32 to vector<8x128xf32>
    %680 = arith.mulf %679, %678 : vector<8x128xf32>
    %cst_281 = arith.constant 5.000000e-01 : f32
    %681 = vector.broadcast %cst_281 : f32 to vector<8x128xf32>
    %682 = arith.addf %680, %681 : vector<8x128xf32>
    %683 = vector.extract_strided_slice %674 {offsets = [0, 128], sizes = [8, 128], strides = [1, 1]} : vector<8x512xf32> to vector<8x128xf32>
    %cst_282 = arith.constant 5.000000e-01 : f32
    %684 = vector.broadcast %cst_282 : f32 to vector<8x128xf32>
    %685 = arith.mulf %684, %683 : vector<8x128xf32>
    %686 = math.tanh %685 : vector<8x128xf32>
    %cst_283 = arith.constant 5.000000e-01 : f32
    %687 = vector.broadcast %cst_283 : f32 to vector<8x128xf32>
    %688 = arith.mulf %687, %686 : vector<8x128xf32>
    %cst_284 = arith.constant 5.000000e-01 : f32
    %689 = vector.broadcast %cst_284 : f32 to vector<8x128xf32>
    %690 = arith.addf %688, %689 : vector<8x128xf32>
    %691 = vector.extract_strided_slice %674 {offsets = [0, 256], sizes = [8, 128], strides = [1, 1]} : vector<8x512xf32> to vector<8x128xf32>
    %692 = math.tanh %691 : vector<8x128xf32>
    %693 = vector.extract_strided_slice %674 {offsets = [0, 384], sizes = [8, 128], strides = [1, 1]} : vector<8x512xf32> to vector<8x128xf32>
    %cst_285 = arith.constant 5.000000e-01 : f32
    %694 = vector.broadcast %cst_285 : f32 to vector<8x128xf32>
    %695 = arith.mulf %694, %693 : vector<8x128xf32>
    %696 = math.tanh %695 : vector<8x128xf32>
    %cst_286 = arith.constant 5.000000e-01 : f32
    %697 = vector.broadcast %cst_286 : f32 to vector<8x128xf32>
    %698 = arith.mulf %697, %696 : vector<8x128xf32>
    %cst_287 = arith.constant 5.000000e-01 : f32
    %699 = vector.broadcast %cst_287 : f32 to vector<8x128xf32>
    %700 = arith.addf %698, %699 : vector<8x128xf32>
    %701 = arith.mulf %690, %610 : vector<8x128xf32>
    %702 = arith.mulf %682, %692 : vector<8x128xf32>
    %703 = arith.addf %701, %702 : vector<8x128xf32>
    %704 = math.tanh %703 : vector<8x128xf32>
    %705 = arith.mulf %700, %704 : vector<8x128xf32>
    %706 = arith.truncf %705 : vector<8x128xf32> to vector<8x128xbf16>
    %c0_288 = arith.constant 0 : index
    %c0_289 = arith.constant 0 : index
    %707 = vector.load %arg13[%c0_288, %c0_289] : memref<8x256xbf16, #tpu.memory_space<vmem>>, vector<8x128xbf16>
    tpu.vector_store %arg13[%c0_288, %c0_289], %706 {strides = array<i32>} : memref<8x256xbf16, #tpu.memory_space<vmem>>, vector<8x128xbf16>,
    %c0_290 = arith.constant 0 : index
    %c0_291 = arith.constant 0 : index
    %708 = vector.load %arg13[%c0_290, %c0_291] : memref<8x256xbf16, #tpu.memory_space<vmem>>, vector<8x256xbf16>
    %c0_292 = arith.constant 0 : index
    %c0_293 = arith.constant 0 : index
    %709 = vector.load %arg6[%c0_292, %c0_293] : memref<256x512xbf16, #tpu.memory_space<vmem>>, vector<256x512xbf16>
    %cst_294 = arith.constant dense<0.000000e+00> : vector<8x512xf32>
    %710 = tpu.matmul %708, %709, %cst_294 {dimension_numbers = #tpu.dot_dimension_numbers<[1], [0], [0], [1], [0, 0, 1, 1], [], []>} : vector<8x256xbf16>, vector<256x512xbf16>, vector<8x512xf32> -> vector<8x512xf32>
    %711 = vector.broadcast %5 : vector<1x512xf32> to vector<8x512xf32>
    %712 = arith.addf %710, %711 : vector<8x512xf32>
    %713 = vector.extract_strided_slice %712 {offsets = [0, 0], sizes = [8, 128], strides = [1, 1]} : vector<8x512xf32> to vector<8x128xf32>
    %cst_295 = arith.constant 5.000000e-01 : f32
    %714 = vector.broadcast %cst_295 : f32 to vector<8x128xf32>
    %715 = arith.mulf %714, %713 : vector<8x128xf32>
    %716 = math.tanh %715 : vector<8x128xf32>
    %cst_296 = arith.constant 5.000000e-01 : f32
    %717 = vector.broadcast %cst_296 : f32 to vector<8x128xf32>
    %718 = arith.mulf %717, %716 : vector<8x128xf32>
    %cst_297 = arith.constant 5.000000e-01 : f32
    %719 = vector.broadcast %cst_297 : f32 to vector<8x128xf32>
    %720 = arith.addf %718, %719 : vector<8x128xf32>
    %721 = vector.extract_strided_slice %712 {offsets = [0, 128], sizes = [8, 128], strides = [1, 1]} : vector<8x512xf32> to vector<8x128xf32>
    %cst_298 = arith.constant 5.000000e-01 : f32
    %722 = vector.broadcast %cst_298 : f32 to vector<8x128xf32>
    %723 = arith.mulf %722, %721 : vector<8x128xf32>
    %724 = math.tanh %723 : vector<8x128xf32>
    %cst_299 = arith.constant 5.000000e-01 : f32
    %725 = vector.broadcast %cst_299 : f32 to vector<8x128xf32>
    %726 = arith.mulf %725, %724 : vector<8x128xf32>
    %cst_300 = arith.constant 5.000000e-01 : f32
    %727 = vector.broadcast %cst_300 : f32 to vector<8x128xf32>
    %728 = arith.addf %726, %727 : vector<8x128xf32>
    %729 = vector.extract_strided_slice %712 {offsets = [0, 256], sizes = [8, 128], strides = [1, 1]} : vector<8x512xf32> to vector<8x128xf32>
    %730 = math.tanh %729 : vector<8x128xf32>
    %731 = vector.extract_strided_slice %712 {offsets = [0, 384], sizes = [8, 128], strides = [1, 1]} : vector<8x512xf32> to vector<8x128xf32>
    %cst_301 = arith.constant 5.000000e-01 : f32
    %732 = vector.broadcast %cst_301 : f32 to vector<8x128xf32>
    %733 = arith.mulf %732, %731 : vector<8x128xf32>
    %734 = math.tanh %733 : vector<8x128xf32>
    %cst_302 = arith.constant 5.000000e-01 : f32
    %735 = vector.broadcast %cst_302 : f32 to vector<8x128xf32>
    %736 = arith.mulf %735, %734 : vector<8x128xf32>
    %cst_303 = arith.constant 5.000000e-01 : f32
    %737 = vector.broadcast %cst_303 : f32 to vector<8x128xf32>
    %738 = arith.addf %736, %737 : vector<8x128xf32>
    %739 = arith.mulf %728, %648 : vector<8x128xf32>
    %740 = arith.mulf %720, %730 : vector<8x128xf32>
    %741 = arith.addf %739, %740 : vector<8x128xf32>
    %742 = math.tanh %741 : vector<8x128xf32>
    %743 = arith.mulf %738, %742 : vector<8x128xf32>
    %744 = arith.truncf %743 : vector<8x128xf32> to vector<8x128xbf16>
    %c0_304 = arith.constant 0 : index
    %c128_305 = arith.constant 128 : index
    %745 = vector.load %arg13[%c0_304, %c128_305] : memref<8x256xbf16, #tpu.memory_space<vmem>>, vector<8x128xbf16>
    tpu.vector_store %arg13[%c0_304, %c128_305], %744 {strides = array<i32>} : memref<8x256xbf16, #tpu.memory_space<vmem>>, vector<8x128xbf16>,
    %746 = vector.broadcast %6 : vector<1x128xf32> to vector<8x128xf32>
    %747 = arith.mulf %743, %746 : vector<8x128xf32>
    %cst_306 = arith.constant dense<0.000000e+00> : vector<8xf32>
    %748 = vector.multi_reduction <add>, %747, %cst_306 [1] : vector<8x128xf32> to vector<8xf32>
    %749 = vector.broadcast %8 : vector<1xf32> to vector<8xf32>
    %750 = arith.addf %748, %749 : vector<8xf32>
    %c0_307 = arith.constant 0 : index
    %751 = arith.index_cast %c7_i32 : i32 to index
    %c0_308 = arith.constant 0 : index
    %752 = vector.load %arg10[%c0_307, %751, %c0_308] : memref<1x8x8xf32, #tpu.memory_space<vmem>>, vector<1x1x8xf32>
    %753 = vector.shape_cast %752 : vector<1x1x8xf32> to vector<8xf32>
    %754 = vector.shape_cast %750 : vector<8xf32> to vector<1x1x8xf32>
    tpu.vector_store %arg10[%c0_307, %751, %c0_308], %754 {strides = array<i32>} : memref<1x8x8xf32, #tpu.memory_space<vmem>>, vector<1x1x8xf32>,
    %c8_i32 = arith.constant 8 : i32
    %c0_309 = arith.constant 0 : index
    %c0_310 = arith.constant 0 : index
    %755 = vector.load %arg11[%c0_309, %c0_310] : memref<8x128xf32, #tpu.memory_space<vmem>>, vector<8x128xf32>
    tpu.vector_store %arg11[%c0_309, %c0_310], %703 {strides = array<i32>} : memref<8x128xf32, #tpu.memory_space<vmem>>, vector<8x128xf32>,
    %c0_311 = arith.constant 0 : index
    %c0_312 = arith.constant 0 : index
    %756 = vector.load %arg12[%c0_311, %c0_312] : memref<8x128xf32, #tpu.memory_space<vmem>>, vector<8x128xf32>
    tpu.vector_store %arg12[%c0_311, %c0_312], %741 {strides = array<i32>} : memref<8x128xf32, #tpu.memory_space<vmem>>, vector<8x128xf32>,
    return
  }
  func.func @transform_0(%arg0: i32, %arg1: i32) -> (i32, i32, i32) {
    %c0_i32 = arith.constant 0 : i32
    %c0_i32_0 = arith.constant 0 : i32
    return %arg0, %arg1, %c0_i32 : i32, i32, i32
  }
  func.func @transform_1(%arg0: i32, %arg1: i32) -> (i32, i32) {
    %c0_i32 = arith.constant 0 : i32
    %c0_i32_0 = arith.constant 0 : i32
    %c0_i32_1 = arith.constant 0 : i32
    return %c0_i32, %c0_i32_0 : i32, i32
  }
  func.func @transform_2(%arg0: i32, %arg1: i32) -> (i32, i32) {
    %c0_i32 = arith.constant 0 : i32
    %c0_i32_0 = arith.constant 0 : i32
    %c0_i32_1 = arith.constant 0 : i32
    return %c0_i32, %c0_i32_0 : i32, i32
  }
  func.func @transform_3(%arg0: i32, %arg1: i32) -> (i32, i32) {
    %c0_i32 = arith.constant 0 : i32
    %c0_i32_0 = arith.constant 0 : i32
    %c0_i32_1 = arith.constant 0 : i32
    return %c0_i32, %c0_i32_0 : i32, i32
  }
  func.func @transform_4(%arg0: i32, %arg1: i32) -> (i32, i32) {
    %c0_i32 = arith.constant 0 : i32
    %c0_i32_0 = arith.constant 0 : i32
    %c0_i32_1 = arith.constant 0 : i32
    return %c0_i32, %c0_i32_0 : i32, i32
  }
  func.func @transform_5(%arg0: i32, %arg1: i32) -> (i32, i32) {
    %c0_i32 = arith.constant 0 : i32
    %c0_i32_0 = arith.constant 0 : i32
    %c0_i32_1 = arith.constant 0 : i32
    return %c0_i32, %c0_i32_0 : i32, i32
  }
  func.func @transform_6(%arg0: i32, %arg1: i32) -> (i32, i32) {
    %c0_i32 = arith.constant 0 : i32
    %c0_i32_0 = arith.constant 0 : i32
    %c0_i32_1 = arith.constant 0 : i32
    return %c0_i32, %c0_i32_0 : i32, i32
  }
  func.func @transform_7(%arg0: i32, %arg1: i32) -> (i32, i32) {
    %c0_i32 = arith.constant 0 : i32
    %c0_i32_0 = arith.constant 0 : i32
    %c0_i32_1 = arith.constant 0 : i32
    return %c0_i32, %c0_i32_0 : i32, i32
  }
  func.func @transform_8(%arg0: i32, %arg1: i32) -> (i32, i32, i32) {
    %c0_i32 = arith.constant 0 : i32
    %c0_i32_0 = arith.constant 0 : i32
    return %arg0, %arg1, %c0_i32 : i32, i32, i32
  }
}

</mosaic_0001>

<bundles_post_ra>
// kernel: tpu_custom_call.1
= control target key start
LH: loop header
LB: loop body
LE: loop exit
PB: predicated region body
PF: predicated region fallthrough
CT: control target
= control target key end

     0   :  { %s10228_s0 = inlined_call_operand.hbm [shape: f32[1,8,8], index: 0, kind: input, shape index: {}]   ;;  %s10229_s1 = inlined_call_operand.hbm [shape: f32[1,512], index: 1, kind: input, shape index: {}]   ;;  %s10230_s2 = inlined_call_operand.vmem [shape: f32[1,512], index: 2, kind: input, shape index: {}]   ;;  %s10231_s3 = inlined_call_operand.hbm [shape: bf16[128,512], index: 3, kind: input, shape index: {}]   ;;  %s10232_s4 = inlined_call_operand.hbm [shape: bf16[256,512], index: 4, kind: input, shape index: {}]   ;;  %s10233_s5 = inlined_call_operand.vmem [shape: f32[1,512], index: 5, kind: input, shape index: {}]   ;;  %s10234_s6 = inlined_call_operand.vmem [shape: f32[1,128], index: 6, kind: input, shape index: {}]   ;;  %s10235_s7 = inlined_call_operand.<no memory space> [shape: f32[1,1], index: 7, kind: input, shape index: {}]   ;;  %s10236_s8 = inlined_call_operand.hbm [shape: f32[1,8,8], index: 8, kind: output, shape index: {}]  }
   0x1   :  { %v13_v0 = vstv %s10235_s7 }
   0x2   :  { %14 = vst [vmem:[#allocation5] sm:$0x1] %v13_v0 }
   0x3   :  { %15 = vsyncpa [#allocation7], 0 }
   0x4   :  { %16 = vsyncpa [#allocation10], 0 }
   0x5   :  { %17 = vsyncpa [#allocation13], 0 }
   0x6   :  { %18 = vsyncpa [#allocation8], 0  ;;  %s8463_s29 = smov [#allocation9]   ;;  %s8464_s9 = smov [#allocation6]  }
   0x7   :  { %s35_s30 = sshll.u32 %s8463_s29, 4  ;;  %s25_s10 = sshll.u32 %s8464_s9, 4  ;;  %s36_s30 = int_to_ptr.vmem [resolvable:$true] %s35_s30  ;;  %s26_s10 = int_to_ptr.vmem [resolvable:$true] %s25_s10 }
   0x8   :  { %s8363_s11 = scalar_lea.vmem %s36_s30, 64  ;;  %p8368_p1 = scmp.lt.s32.totalorder %s36_s30, %s36_s30 }
   0x9   :  { %p8364_p0 = scmp.ne.s32.totalorder %s36_s30, %s8363_s11  ;;  %p8369_p2 = scmp.lt.s32.totalorder %s8363_s11, %s8363_s11 }
   0xb   :  { %p8370_p3 = por %p8369_p2, %p8368_p1 }
   0xd   :  { %p8371_p4 = pnand %p8370_p3, %p8364_p0 }
   0xf   :  { %8374 = shalt.err (!%p8371_p4)
}
  0x10   :  { %38 = dma.hbm_to_vmem [thread:$0]  %s10229_s1, 64, %s36_s30, [#allocation10]  }
  0x11   :  { %s8383_s13 = scalar_lea.vmem %s26_s10, 128  ;;  %p8388_p6 = scmp.lt.s32.totalorder %s26_s10, %s26_s10 }
  0x12   :  { %p8384_p5 = scmp.ne.s32.totalorder %s26_s10, %s8383_s13  ;;  %p8389_p7 = scmp.lt.s32.totalorder %s8383_s13, %s8383_s13 }
  0x14   :  { %p8390_p8 = por %p8389_p7, %p8388_p6 }
  0x16   :  { %p8391_p9 = pnand %p8390_p8, %p8384_p5 }
  0x18   :  { %8394 = shalt.err (!%p8391_p9)
}
  0x19   :  { %28 = dma.hbm_to_vmem [thread:$0]  %s10228_s0, 128, %s26_s10, [#allocation7]  }
  0x1a   :  { %s8465_s16 = smov [#allocation11]  }
  0x1b   :  { %s46_s17 = sshll.u32 %s8465_s16, 4  ;;  %s47_s17 = int_to_ptr.vmem [resolvable:$true] %s46_s17 }
  0x1c   :  { %s8403_s18 = scalar_lea.vmem %s47_s17, 4096  ;;  %p8408_p11 = scmp.lt.s32.totalorder %s47_s17, %s47_s17 }
  0x1d   :  { %p8404_p10 = scmp.ne.s32.totalorder %s47_s17, %s8403_s18  ;;  %p8409_p12 = scmp.lt.s32.totalorder %s8403_s18, %s8403_s18 }
  0x1f   :  { %p8410_p13 = por %p8409_p12, %p8408_p11 }
  0x21   :  { %p8411_p0 = pnand %p8410_p13, %p8404_p10 }
  0x23   :  { %8414 = shalt.err (!%p8411_p0)
}
  0x24   :  { %s8466_s1 = smov 256   ;;  %s8467_s19 = smov 16  }
  0x25   :  { %52 = dma.hbm_to_vmem [thread:$0]  %s10231_s3, 4096, %s47_s17, [#allocation10], %s8466_s1, %s8466_s1, %s8467_s19  }
  0x26   :  { %s8468_s22 = smov [#allocation12]  }
  0x27   :  { %s58_s23 = sshll.u32 %s8468_s22, 4  ;;  %s59_s23 = int_to_ptr.vmem [resolvable:$true] %s58_s23 }
  0x28   :  { %s8423_s0 = scalar_lea.vmem %s59_s23, 8192  ;;  %p8428_p2 = scmp.lt.s32.totalorder %s59_s23, %s59_s23 }
  0x29   :  { %p8424_p1 = scmp.ne.s32.totalorder %s59_s23, %s8423_s0  ;;  %p8429_p3 = scmp.lt.s32.totalorder %s8423_s0, %s8423_s0 }
  0x2b   :  { %p8430_p4 = por %p8429_p3, %p8428_p2 }
  0x2d   :  { %p8431_p5 = pnand %p8430_p4, %p8424_p1 }
  0x2f   :  { %8434 = shalt.err (!%p8431_p5)
}
  0x30   :  { %64 = dma.hbm_to_vmem [thread:$0]  %s10232_s4, 8192, %s59_s23, [#allocation13], %s8466_s1, %s8466_s1, %s8467_s19  }
  0x31   :  { %8455 = dma.done.wait [#allocation7], 128  }
  0x32   :  { %8456 = vsyncadd [#allocation7], 4294967168 }
  0x33   :  { %8457 = dma.done.wait [#allocation10], 4160  }
  0x34   :  { %8458 = vsyncadd [#allocation10], 4294963136 }
  0x35   :  { %8459 = dma.done.wait [#allocation13], 8192  }
  0x36   :  { %8460 = vsyncadd [#allocation13], 4294959104  ;;  %v10237_v1 = vmov 0   ;;  %v7561_v2 = vld [vmem:[#allocation11 + $0xe4] ss:$16 sps:$4 sm:$0xff]   ;;  %vm997_vm0 = vcmask 57344  }
  0x37   :  { %381 = vmatprep.mubr.bf16.mxu0 %v10237_v1  ;;  %90 = vst [vmem:[#allocation4] sm:$0xff] %v10237_v1  ;;  %422 = vmatprep.mubr.bf16.mxu1 %v10237_v1  ;;  %v7563_v3 = vld [vmem:[#allocation11 + $0xec] ss:$16 sps:$4 sm:$0xff]   ;;  %v7565_v4 = vld [vmem:[#allocation11 + $0xe0] ss:$16 sps:$4 sm:$0xff]  }
  0x38   :  { %7559 = vset.pattern.permute.xlu1 %v10237_v1  ;;  %7560 = vset.pattern.permute.xlu0 %v10237_v1  ;;  %v7566_v5 = vld [vmem:[#allocation11 + $0xe8] ss:$16 sps:$4 sm:$0xff]   ;;  %v7567_v6 = vld [vmem:[#allocation11 + $0xc4] ss:$16 sps:$4 sm:$0xff]   ;;  %v7569_v7 = vld [vmem:[#allocation11 + $0xcc] ss:$16 sps:$4 sm:$0xff]  }
  0x39   :  { %349 = vmatprep.subr.bf16.mxu0 %v7561_v2  ;;  %390 = vmatprep.subr.bf16.mxu1 %v7563_v3  ;;  %v7571_v8 = vld [vmem:[#allocation11 + $0xc0] ss:$16 sps:$4 sm:$0xff]   ;;  %v7572_v9 = vld [vmem:[#allocation11 + $0xc8] ss:$16 sps:$4 sm:$0xff]   ;;  %v7573_v10 = vld [vmem:[#allocation11 + $0xa4] ss:$16 sps:$4 sm:$0xff]  }
  0x3a   :  { %350 = vmatpush1.bf16.msra.mxu0 %v7565_v4  ;;  %391 = vmatpush1.bf16.msra.mxu1 %v7566_v5  ;;  %v7575_v11 = vld [vmem:[#allocation11 + $0xac] ss:$16 sps:$4 sm:$0xff]   ;;  %v7577_v12 = vld [vmem:[#allocation11 + $0xa0] ss:$16 sps:$4 sm:$0xff]   ;;  %v7578_v13 = vld [vmem:[#allocation11 + $0xa8] ss:$16 sps:$4 sm:$0xff]  }
  0x3b   :  { %351 = vmatprep.subr.bf16.mxu0 %v7567_v6  ;;  %392 = vmatprep.subr.bf16.mxu1 %v7569_v7  ;;  %v7579_v14 = vld [vmem:[#allocation11 + $0x84] ss:$16 sps:$4 sm:$0xff]   ;;  %v7581_v15 = vld [vmem:[#allocation11 + $0x8c] ss:$16 sps:$4 sm:$0xff]   ;;  %v7583_v16 = vld [vmem:[#allocation11 + $0x80] ss:$16 sps:$4 sm:$0xff]  }
  0x3c   :  { %v7584_v17 = vld [vmem:[#allocation11 + $0x88] ss:$16 sps:$4 sm:$0xff]   ;;  %v7585_v18 = vld [vmem:[#allocation11 + $0x64] ss:$16 sps:$4 sm:$0xff]   ;;  %v7587_v19 = vld [vmem:[#allocation11 + $0x6c] ss:$16 sps:$4 sm:$0xff]  }
  0x3d   :  { %v7589_v20 = vld [vmem:[#allocation11 + $0x60] ss:$16 sps:$4 sm:$0xff]   ;;  %v7590_v21 = vld [vmem:[#allocation11 + $0x68] ss:$16 sps:$4 sm:$0xff]   ;;  %v7591_v22 = vld [vmem:[#allocation11 + $0x44] ss:$16 sps:$4 sm:$0xff]  }
  0x3e   :  { %352 = vmatpush1.bf16.msra.mxu0 %v7571_v8  ;;  %393 = vmatpush1.bf16.msra.mxu1 %v7572_v9  ;;  %v7593_v23 = vld [vmem:[#allocation11 + $0x4c] ss:$16 sps:$4 sm:$0xff]   ;;  %v7595_v24 = vld [vmem:[#allocation11 + $0x40] ss:$16 sps:$4 sm:$0xff]   ;;  %v7596_v25 = vld [vmem:[#allocation11 + $0x48] ss:$16 sps:$4 sm:$0xff]  }
  0x3f   :  { %353 = vmatprep.subr.bf16.mxu0 %v7573_v10  ;;  %394 = vmatprep.subr.bf16.mxu1 %v7575_v11  ;;  %v7597_v26 = vld [vmem:[#allocation11 + $0x24] ss:$16 sps:$4 sm:$0xff]   ;;  %v7599_v27 = vld [vmem:[#allocation11 + $0x2c] ss:$16 sps:$4 sm:$0xff]   ;;  %v7601_v29 = vld [vmem:[#allocation11 + $0x20] ss:$16 sps:$4 sm:$0xff]  }
  0x40   :  { %v6758_v28 = vld [vmem:[#allocation6] ss:$0 sm:$0xff]  ;;  %v7602_v30 = vld [vmem:[#allocation11 + $0x28] ss:$16 sps:$4 sm:$0xff]   ;;  %v7605_v32 = vld [vmem:[#allocation11 + $0xc] ss:$16 sps:$4 sm:$0xff]  }
  0x41   :  { %104 = vbcast.lane.b32.xlu0 %v6758_v28, 256  ;;  %v7603_v31 = vld [vmem:[#allocation11 + $0x4] ss:$16 sps:$4 sm:$0xff]   ;;  %v7607_v33 = vld [vmem:[#allocation11] ss:$16 sps:$4 sm:$0xff]  }
  0x42   :  { %354 = vmatpush1.bf16.msra.mxu0 %v7577_v12  ;;  %395 = vmatpush1.bf16.msra.mxu1 %v7578_v13  ;;  %v7608_v34 = vld [vmem:[#allocation11 + $0x8] ss:$16 sps:$4 sm:$0xff]   ;;  %v7611_v35 = vld [vmem:[#allocation12 + $0xe4] ss:$16 sps:$4 sm:$0xff]   ;;  %v7614_v36 = vld [vmem:[#allocation12 + $0xec] ss:$16 sps:$4 sm:$0xff]  }
  0x43   :  { %355 = vmatprep.subr.bf16.mxu0 %v7579_v14  ;;  %396 = vmatprep.subr.bf16.mxu1 %v7581_v15  ;;  %v156_v37 = vld [vmem:[#allocation4] sm:$0xf]  ;;  %v7609_v38 = vld [vmem:[#allocation12 + $0xe0] ss:$16 sps:$4 sm:$0xff]   ;;  %v7617_v40 = vld [vmem:[#allocation12 + $0xc4] ss:$16 sps:$4 sm:$0xff]  }
  0x44   :  { %v7612_v39 = vld [vmem:[#allocation12 + $0xe8] ss:$16 sps:$4 sm:$0xff]   ;;  %v7620_v41 = vld [vmem:[#allocation12 + $0xcc] ss:$16 sps:$4 sm:$0xff]   ;;  %v7615_v42 = vld [vmem:[#allocation12 + $0xc0] ss:$16 sps:$4 sm:$0xff]  }
  0x45   :  { %v7618_v43 = vld [vmem:[#allocation12 + $0xc8] ss:$16 sps:$4 sm:$0xff]   ;;  %v8536_v44 = vld [vmem:[#allocation12 + $0xa4] ss:$16 sps:$4 sm:$0xff]   ;;  %v8538_v45 = vld [vmem:[#allocation12 + $0xac] ss:$16 sps:$4 sm:$0xff]  }
  0x46   :  { %356 = vmatpush1.bf16.msra.mxu0 %v7583_v16  ;;  %397 = vmatpush1.bf16.msra.mxu1 %v7584_v17  ;;  %v8540_v46 = vld [vmem:[#allocation12 + $0xa0] ss:$16 sps:$4 sm:$0xff]   ;;  %v8542_v47 = vld [vmem:[#allocation12 + $0xa8] ss:$16 sps:$4 sm:$0xff]   ;;  %v8548_v48 = vld [vmem:[#allocation12 + $0x84] ss:$16 sps:$4 sm:$0xff]  }
  0x47   :  { %357 = vmatprep.subr.bf16.mxu0 %v7585_v18  ;;  %398 = vmatprep.subr.bf16.mxu1 %v7587_v19  ;;  %v8550_v49 = vld [vmem:[#allocation12 + $0x8c] ss:$16 sps:$4 sm:$0xff]   ;;  %v8552_v50 = vld [vmem:[#allocation12 + $0x80] ss:$16 sps:$4 sm:$0xff]   ;;  %v8554_v51 = vld [vmem:[#allocation12 + $0x88] ss:$16 sps:$4 sm:$0xff]  }
  0x48   :  { %v8560_v52 = vld [vmem:[#allocation12 + $0x64] ss:$16 sps:$4 sm:$0xff]   ;;  %v8562_v53 = vld [vmem:[#allocation12 + $0x6c] ss:$16 sps:$4 sm:$0xff]   ;;  %v8564_v54 = vld [vmem:[#allocation12 + $0x60] ss:$16 sps:$4 sm:$0xff]  }
  0x49   :  { %v8566_v55 = vld [vmem:[#allocation12 + $0x68] ss:$16 sps:$4 sm:$0xff]   ;;  %v8572_v56 = vld [vmem:[#allocation12 + $0x44] ss:$16 sps:$4 sm:$0xff]   ;;  %v8574_v57 = vld [vmem:[#allocation12 + $0x4c] ss:$16 sps:$4 sm:$0xff]  }
  0x4a   :  { %358 = vmatpush1.bf16.msra.mxu0 %v7589_v20  ;;  %399 = vmatpush1.bf16.msra.mxu1 %v7590_v21  ;;  %v8576_v58 = vld [vmem:[#allocation12 + $0x40] ss:$16 sps:$4 sm:$0xff]   ;;  %v8578_v59 = vld [vmem:[#allocation12 + $0x48] ss:$16 sps:$4 sm:$0xff]   ;;  %v8584_v60 = vld [vmem:[#allocation12 + $0x24] ss:$16 sps:$4 sm:$0xff]  }
  0x4b   :  { %359 = vmatprep.subr.bf16.mxu0 %v7591_v22  ;;  %400 = vmatprep.subr.bf16.mxu1 %v7593_v23  ;;  %v8586_v61 = vld [vmem:[#allocation12 + $0x2c] ss:$16 sps:$4 sm:$0xff]   ;;  %v8588_v62 = vld [vmem:[#allocation12 + $0x20] ss:$16 sps:$4 sm:$0xff]   ;;  %v8590_v63 = vld [vmem:[#allocation12 + $0x28] ss:$16 sps:$4 sm:$0xff]  }
  0x4c   :  { %v8596_v0 = vld [vmem:[#allocation12 + $0x4] ss:$16 sps:$4 sm:$0xff]   ;;  %v8598_v2 = vld [vmem:[#allocation12 + $0xc] ss:$16 sps:$4 sm:$0xff]   ;;  %v8600_v3 = vld [vmem:[#allocation12] ss:$16 sps:$4 sm:$0xff]  }
  0x4d   :  { %v8602_v4 = vld [vmem:[#allocation12 + $0x8] ss:$16 sps:$4 sm:$0xff]   ;;  %v8608_v5 = vld [vmem:[#allocation12 + $0x1e4] ss:$16 sps:$4 sm:$0xff]   ;;  %v8610_v6 = vld [vmem:[#allocation12 + $0x1ec] ss:$16 sps:$4 sm:$0xff]  }
  0x4e   :  { %360 = vmatpush1.bf16.msra.mxu0 %v7595_v24  ;;  %401 = vmatpush1.bf16.msra.mxu1 %v7596_v25  ;;  %v8612_v7 = vld [vmem:[#allocation12 + $0x1e0] ss:$16 sps:$4 sm:$0xff]   ;;  %v8614_v8 = vld [vmem:[#allocation12 + $0x1e8] ss:$16 sps:$4 sm:$0xff]   ;;  %v8620_v9 = vld [vmem:[#allocation12 + $0x1c4] ss:$16 sps:$4 sm:$0xff]  }
  0x4f   :  { %361 = vmatprep.subr.bf16.mxu0 %v7597_v26  ;;  %402 = vmatprep.subr.bf16.mxu1 %v7599_v27  ;;  %v8622_v10 = vld [vmem:[#allocation12 + $0x1cc] ss:$16 sps:$4 sm:$0xff]   ;;  %v8624_v11 = vld [vmem:[#allocation12 + $0x1c0] ss:$16 sps:$4 sm:$0xff]   ;;  %v8626_v12 = vld [vmem:[#allocation12 + $0x1c8] ss:$16 sps:$4 sm:$0xff]  }
  0x50   :  { %v8632_v13 = vld [vmem:[#allocation12 + $0x1a4] ss:$16 sps:$4 sm:$0xff]   ;;  %v8634_v14 = vld [vmem:[#allocation12 + $0x1ac] ss:$16 sps:$4 sm:$0xff]   ;;  %v8636_v15 = vld [vmem:[#allocation12 + $0x1a0] ss:$16 sps:$4 sm:$0xff]  }
  0x51   :  { %v8638_v16 = vld [vmem:[#allocation12 + $0x1a8] ss:$16 sps:$4 sm:$0xff]   ;;  %v8644_v17 = vld [vmem:[#allocation12 + $0x184] ss:$16 sps:$4 sm:$0xff]   ;;  %v8646_v18 = vld [vmem:[#allocation12 + $0x18c] ss:$16 sps:$4 sm:$0xff]  }
  0x52   :  { %362 = vmatpush1.bf16.msra.mxu0 %v7601_v29  ;;  %403 = vmatpush1.bf16.msra.mxu1 %v7602_v30  ;;  %v8648_v19 = vld [vmem:[#allocation12 + $0x180] ss:$16 sps:$4 sm:$0xff]   ;;  %v8650_v20 = vld [vmem:[#allocation12 + $0x188] ss:$16 sps:$4 sm:$0xff]   ;;  %v8656_v21 = vld [vmem:[#allocation12 + $0x164] ss:$16 sps:$4 sm:$0xff]  }
  0x53   :  { %363 = vmatprep.subr.bf16.mxu0 %v7603_v31  ;;  %404 = vmatprep.subr.bf16.mxu1 %v7605_v32  ;;  %10490 = vst [vmem:[#allocation19_spill] sm:$0xff] %v8656_v21  ;;  %v8658_v22 = vld [vmem:[#allocation12 + $0x16c] ss:$16 sps:$4 sm:$0xff]   ;;  %v8660_v23 = vld [vmem:[#allocation12 + $0x160] ss:$16 sps:$4 sm:$0xff]  }
  0x54   :  { %10491 = vst [vmem:[#allocation20_spill] sm:$0xff] %v8658_v22  ;;  %10492 = vst [vmem:[#allocation21_spill] sm:$0xff] %v8660_v23  ;;  %v8662_v24 = vld [vmem:[#allocation12 + $0x168] ss:$16 sps:$4 sm:$0xff]   ;;  %v8668_v25 = vld [vmem:[#allocation12 + $0x144] ss:$16 sps:$4 sm:$0xff]  }
  0x55   :  { %10493 = vst [vmem:[#allocation22_spill] sm:$0xff] %v8662_v24  ;;  %10494 = vst [vmem:[#allocation23_spill] sm:$0xff] %v8668_v25  ;;  %v8670_v26 = vld [vmem:[#allocation12 + $0x14c] ss:$16 sps:$4 sm:$0xff]   ;;  %v8672_v27 = vld [vmem:[#allocation12 + $0x140] ss:$16 sps:$4 sm:$0xff]  }
  0x56   :  { %364 = vmatpush1.bf16.msra.mxu0 %v7607_v33  ;;  %405 = vmatpush1.bf16.msra.mxu1 %v7608_v34  ;;  %10495 = vst [vmem:[#allocation24_spill] sm:$0xff] %v8670_v26  ;;  %10496 = vst [vmem:[#allocation25_spill] sm:$0xff] %v8672_v27  ;;  %v8674_v28 = vld [vmem:[#allocation12 + $0x148] ss:$16 sps:$4 sm:$0xff]   ;;  %v8680_v29 = vld [vmem:[#allocation12 + $0x124] ss:$16 sps:$4 sm:$0xff]  }
  0x57   :  { %868 = vmatprep.subr.bf16.mxu0 %v7611_v35  ;;  %909 = vmatprep.subr.bf16.mxu1 %v7614_v36  ;;  %10497 = vst [vmem:[#allocation26_spill] sm:$0xff] %v8674_v28  ;;  %10498 = vst [vmem:[#allocation27_spill] sm:$0xff] %v8680_v29  ;;  %v8682_v30 = vld [vmem:[#allocation12 + $0x12c] ss:$16 sps:$4 sm:$0xff]   ;;  %v8684_v31 = vld [vmem:[#allocation12 + $0x120] ss:$16 sps:$4 sm:$0xff]  }
  0x58   :  { %10499 = vst [vmem:[#allocation28_spill] sm:$0xff] %v8682_v30  ;;  %10500 = vst [vmem:[#allocation29_spill] sm:$0xff] %v8684_v31  ;;  %v8686_v32 = vld [vmem:[#allocation12 + $0x128] ss:$16 sps:$4 sm:$0xff]   ;;  %v8692_v33 = vld [vmem:[#allocation12 + $0x104] ss:$16 sps:$4 sm:$0xff]  }
  0x59   :  { %382 = vmatmul.mubr.bf16.vlgmr.msra.gmra.mxu0 %v156_v37  ;;  %423 = vmatmul.mubr.bf16.vlgmr.msra.gmra.mxu1 %v156_v37  ;;  %10501 = vst [vmem:[#allocation30_spill] sm:$0xff] %v8686_v32  ;;  %10502 = vst [vmem:[#allocation31_spill] sm:$0xff] %v8692_v33  ;;  %v8694_v34 = vld [vmem:[#allocation12 + $0x10c] ss:$16 sps:$4 sm:$0xff]   ;;  %v8696_v35 = vld [vmem:[#allocation12 + $0x100] ss:$16 sps:$4 sm:$0xff]  }
  0x5a   :  { %869 = vmatpush1.bf16.msra.mxu0 %v7609_v38  ;;  %910 = vmatpush1.bf16.msra.mxu1 %v7612_v39  ;;  %10503 = vst [vmem:[#allocation32_spill] sm:$0xff] %v8694_v34  ;;  %10504 = vst [vmem:[#allocation33_spill] sm:$0xff] %v8696_v35  ;;  %v8698_v36 = vld [vmem:[#allocation12 + $0x108] ss:$16 sps:$4 sm:$0xff]   ;;  %v8313_v37 = vld [vmem:[#allocation11 + $0xe4] ss:$16 sps:$4 sm:$0xff]  }
  0x5b   :  { %870 = vmatprep.subr.bf16.mxu0 %v7617_v40  ;;  %911 = vmatprep.subr.bf16.mxu1 %v7620_v41  ;;  %10505 = vst [vmem:[#allocation34_spill] sm:$0xff] %v8698_v36  ;;  %v8314_v38 = vld [vmem:[#allocation11 + $0xec] ss:$16 sps:$4 sm:$0xff]   ;;  %v6858_v39 = vld [vmem:[#allocation6 + $0x1] ss:$0 sm:$0xff]  ;;  %v10241_v40 = vlaneseq }
  0x5c   :  { %1005 = vbcast.lane.b32.xlu0 %v6858_v39, 256 }
  0x5d   :  { %v8705_v41 = vshrl.u32 %v10241_v40, 7 }
  0x5e   :  { %871 = vmatpush1.bf16.msra.mxu0 %v7615_v42  ;;  %912 = vmatpush1.bf16.msra.mxu1 %v7618_v43  ;;  %v91_v43 = vld [vmem:[#allocation9] sm:$0xf] }
  0x5f   :  { %872 = vmatprep.subr.bf16.mxu0 %v8536_v44  ;;  %913 = vmatprep.subr.bf16.mxu1 %v8538_v45  ;;  %10506 = vst [vmem:[#allocation35_spill] sm:$0xff] %v8705_v41  ;;  %v8708_v42 = vsub.s32 0, %v8705_v41  ;;  %v8711_v1 = vsub.s32 1, %v8705_v41 }
  0x61   :  { %10507 = vst [vmem:[#allocation36_spill] sm:$0xff] %v8708_v42  ;;  %10508 = vst [vmem:[#allocation37_spill] sm:$0xff] %v8711_v1  ;;  %v8723_v39 = vrot.slane %v91_v43, %v8711_v1 }
  0x62   :  { %873 = vmatpush1.bf16.msra.mxu0 %v8540_v46  ;;  %914 = vmatpush1.bf16.msra.mxu1 %v8542_v47 }
  0x63   :  { %874 = vmatprep.subr.bf16.mxu0 %v8548_v48  ;;  %915 = vmatprep.subr.bf16.mxu1 %v8550_v49  ;;  %10511 = vst [vmem:[#allocation40_spill] sm:$0xff] %v8723_v39 }
  0x66   :  { %875 = vmatpush1.bf16.msra.mxu0 %v8552_v50  ;;  %916 = vmatpush1.bf16.msra.mxu1 %v8554_v51 }
  0x67   :  { %876 = vmatprep.subr.bf16.mxu0 %v8560_v52  ;;  %917 = vmatprep.subr.bf16.mxu1 %v8562_v53 }
  0x6a   :  { %877 = vmatpush1.bf16.msra.mxu0 %v8564_v54  ;;  %918 = vmatpush1.bf16.msra.mxu1 %v8566_v55 }
  0x6b   :  { %878 = vmatprep.subr.bf16.mxu0 %v8572_v56  ;;  %919 = vmatprep.subr.bf16.mxu1 %v8574_v57 }
  0x6e   :  { %879 = vmatpush1.bf16.msra.mxu0 %v8576_v58  ;;  %920 = vmatpush1.bf16.msra.mxu1 %v8578_v59 }
  0x6f   :  { %880 = vmatprep.subr.bf16.mxu0 %v8584_v60  ;;  %921 = vmatprep.subr.bf16.mxu1 %v8586_v61 }
  0x72   :  { %881 = vmatpush1.bf16.msra.mxu0 %v8588_v62  ;;  %922 = vmatpush1.bf16.msra.mxu1 %v8590_v63 }
  0x73   :  { %882 = vmatprep.subr.bf16.mxu0 %v8596_v0  ;;  %923 = vmatprep.subr.bf16.mxu1 %v8598_v2 }
  0x76   :  { %883 = vmatpush1.bf16.msra.mxu0 %v8600_v3  ;;  %924 = vmatpush1.bf16.msra.mxu1 %v8602_v4 }
  0x77   :  { %884 = vmatprep.subr.bf16.mxu0 %v8608_v5  ;;  %925 = vmatprep.subr.bf16.mxu1 %v8610_v6 }
  0x7a   :  { %885 = vmatpush2.bf16.msra.mxu0 %v8612_v7  ;;  %926 = vmatpush2.bf16.msra.mxu1 %v8614_v8 }
  0x7b   :  { %886 = vmatprep.subr.bf16.mxu0 %v8620_v9  ;;  %927 = vmatprep.subr.bf16.mxu1 %v8622_v10 }
  0x7e   :  { %887 = vmatpush2.bf16.msra.mxu0 %v8624_v11  ;;  %928 = vmatpush2.bf16.msra.mxu1 %v8626_v12 }
  0x7f   :  { %888 = vmatprep.subr.bf16.mxu0 %v8632_v13  ;;  %929 = vmatprep.subr.bf16.mxu1 %v8634_v14 }
  0x82   :  { %889 = vmatpush2.bf16.msra.mxu0 %v8636_v15  ;;  %930 = vmatpush2.bf16.msra.mxu1 %v8638_v16 }
  0x83   :  { %890 = vmatprep.subr.bf16.mxu0 %v8644_v17  ;;  %931 = vmatprep.subr.bf16.mxu1 %v8646_v18 }
  0x86   :  { %891 = vmatpush2.bf16.msra.mxu0 %v8648_v19  ;;  %932 = vmatpush2.bf16.msra.mxu1 %v8650_v20 }
  0x87   :  { %892 = vmatprep.subr.bf16.mxu0 %v8656_v21  ;;  %933 = vmatprep.subr.bf16.mxu1 %v8658_v22 }
  0x8a   :  { %893 = vmatpush2.bf16.msra.mxu0 %v8660_v23  ;;  %934 = vmatpush2.bf16.msra.mxu1 %v8662_v24 }
  0x8b   :  { %894 = vmatprep.subr.bf16.mxu0 %v8668_v25  ;;  %935 = vmatprep.subr.bf16.mxu1 %v8670_v26 }
  0x8e   :  { %895 = vmatpush2.bf16.msra.mxu0 %v8672_v27  ;;  %936 = vmatpush2.bf16.msra.mxu1 %v8674_v28 }
  0x8f   :  { %896 = vmatprep.subr.bf16.mxu0 %v8680_v29  ;;  %937 = vmatprep.subr.bf16.mxu1 %v8682_v30  ;;  %v8738_v29 = vsub.s32 3, %v8705_v41 }
  0x92   :  { %897 = vmatpush2.bf16.msra.mxu0 %v8684_v31  ;;  %938 = vmatpush2.bf16.msra.mxu1 %v8686_v32 }
  0x93   :  { %898 = vmatprep.subr.bf16.mxu0 %v8692_v33  ;;  %939 = vmatprep.subr.bf16.mxu1 %v8694_v34 }
  0x96   :  { %899 = vmatpush2.bf16.msra.mxu0 %v8696_v35  ;;  %940 = vmatpush2.bf16.msra.mxu1 %v8698_v36  ;;  %v8714_v35 = vrot.slane %v91_v43, %v8708_v42 }
  0x97   :  { %1208 = vmatprep.subr.bf16.mxu0 %v8313_v37  ;;  %1249 = vmatprep.subr.bf16.mxu1 %v8314_v38  ;;  %v92_v37 = vld [vmem:[%s10230_s2] sm:$0xf]  ;;  %v8720_v38 = vsub.s32 2, %v8705_v41 }
  0x98   :  { %10509 = vst [vmem:[#allocation38_spill] sm:$0xff] %v8714_v35  ;;  %v8727_v34 = vrot.slane %v92_v37, %v8708_v42  ;;  %v8734_v31 = vrot.slane %v92_v37, %v8711_v1 }
  0x99   :  { %10510 = vst [vmem:[#allocation39_spill] sm:$0xff] %v8720_v38  ;;  %v8730_v33 = vrot.slane %v91_v43, %v8720_v38 }
  0x9a   :  { %10512 = vst [vmem:[#allocation41_spill] sm:$0xff] %v8727_v34  ;;  %10514 = vst [vmem:[#allocation43_spill] sm:$0xff] %v8734_v31 }
  0x9b   :  { %10513 = vst [vmem:[#allocation42_spill] sm:$0xff] %v8730_v33 }
  0xb3   :  { %v105_v36 = vpop.permute.xlu0 %104 }
  0xb4   :  { %v127_v40 = vmul.f32 %v8714_v35, %v105_v36  ;;  %v128_v32 = vmul.f32 %v8723_v39, %v105_v36  ;;  %v129_v28 = vmul.f32 %v8730_v33, %v105_v36  ;;  %v8742_v35 = vrot.slane %v92_v37, %v8720_v38 }
  0xb5   :  { %v8746_v39 = vrot.slane %v91_v43, %v8738_v29 }
  0xb6   :  { %v152_v30 = vadd.f32 %v8727_v34, %v127_v40  ;;  %v153_v42 = vadd.f32 %v8734_v31, %v128_v32  ;;  %v154_v40 = vadd.f32 %v8742_v35, %v129_v28  ;;  %v8751_v32 = vrot.slane %v92_v37, %v8738_v29 }
  0xb7   :  { %10515 = vst [vmem:[#allocation44_spill] sm:$0xff] %v8746_v39  ;;  %v130_v38 = vmul.f32 %v8746_v39, %v105_v36 }
  0xb9   :  { %v155_v43 = vadd.f32 %v8751_v32, %v130_v38 }
 0x119   :  { %v383_v27 = vpop.f32.mrf.mxu0  ;;  %v424_v26 = vpop.f32.mrf.mxu1 }
 0x11a   :  { %v431_v25 = vadd.f32 %v383_v27, %v152_v30  ;;  %v433_v30 = vadd.f32 %v424_v26, %v154_v40 }
 0x11b   :  { %v385_v1 = vpop.f32.mrf.mxu0  ;;  %v426_v24 = vpop.f32.mrf.mxu1 }
 0x11c   :  { %v435_v23 = vmul.f32 0.5, %v431_v25  ;;  %v432_v41 = vadd.f32 %v385_v1, %v153_v42  ;;  %v434_v25 = vadd.f32 %v426_v24, %v155_v43 }
 0x11d   :  { %v387_v34 = vpop.f32.mrf.mxu0  ;;  %v428_v22 = vpop.f32.mrf.mxu1 }
 0x11e   :  { %8153 = vtanh.f32 %v435_v23  ;;  %v439_v33 = vmul.f32 0.5, %v432_v41  ;;  %v444_v21 = vmul.f32 0.5, %v434_v25  ;;  %v8316_v25 = vld [vmem:[#allocation11 + $0xe8] ss:$16 sps:$4 sm:$0xff]  }
 0x11f   :  { %v388_v31 = vpop.f32.mrf.mxu0  ;;  %v429_v27 = vpop.f32.mrf.mxu1 }
 0x120   :  { %8155 = vtanh.f32 %v439_v33 }
 0x121   :  { %8157 = vtanh.f32 %v433_v30 }
 0x122   :  { %8159 = vtanh.f32 %v444_v21  ;;  %v8315_v21 = vld [vmem:[#allocation11 + $0xe0] ss:$16 sps:$4 sm:$0xff]  }
 0x12b   :  { %v8154_v28 = vpop.eup %8153 }
 0x12c   :  { %v437_v1 = vmul.f32 0.5, %v8154_v28  ;;  %v8317_v28 = vld [vmem:[#allocation11 + $0xc4] ss:$16 sps:$4 sm:$0xff]  }
 0x12d   :  { %v8156_v34 = vpop.eup %8155 }
 0x12e   :  { %v438_v22 = vadd.f32 0.5, %v437_v1  ;;  %v441_v23 = vmul.f32 0.5, %v8156_v34  ;;  %v8158_v36 = vpop.eup %8157  ;;  %v8318_v1 = vld [vmem:[#allocation11 + $0xcc] ss:$16 sps:$4 sm:$0xff]   ;;  %v10516_v34 = vmov 0  }
 0x12f   :  { %v8160_v26 = vpop.eup %8159 }
 0x130   :  { %v442_v41 = vadd.f32 0.5, %v441_v23  ;;  %v449_v37 = vmul.f32 %v8158_v36, %v438_v22  ;;  %v446_v31 = vmul.f32 0.5, %v8160_v26  ;;  %v8319_v22 = vld [vmem:[#allocation11 + $0xc0] ss:$16 sps:$4 sm:$0xff]   ;;  %v8320_v23 = vld [vmem:[#allocation11 + $0xc8] ss:$16 sps:$4 sm:$0xff]  }
 0x131   :  { %v8322_v36 = vld [vmem:[#allocation11 + $0xac] ss:$16 sps:$4 sm:$0xff]   ;;  %v8325_v26 = vld [vmem:[#allocation11 + $0x84] ss:$16 sps:$4 sm:$0xff]  }
 0x132   :  { %v448_v42 = vmul.f32 0.0, %v442_v41  ;;  %v447_v33 = vadd.f32 0.5, %v446_v31  ;;  %v8321_v41 = vld [vmem:[#allocation11 + $0xa4] ss:$16 sps:$4 sm:$0xff]   ;;  %v8326_v31 = vld [vmem:[#allocation11 + $0x8c] ss:$16 sps:$4 sm:$0xff]  }
 0x134   :  { %v8754_v39 = vadd.f32 %v449_v37, %v448_v42  ;;  %v8323_v42 = vld [vmem:[#allocation11 + $0xa0] ss:$16 sps:$4 sm:$0xff]   ;;  %v8324_v37 = vld [vmem:[#allocation11 + $0xa8] ss:$16 sps:$4 sm:$0xff]  }
 0x136   :  { %8161 = vtanh.f32 %v8754_v39 }
 0x143   :  { %v8162_v38 = vpop.eup %8161 }
 0x144   :  { %v452_v24 = vmul.f32 %v8162_v38, %v447_v33  ;;  %v8327_v33 = vld [vmem:[#allocation11 + $0x80] ss:$16 sps:$4 sm:$0xff]   ;;  %v8328_v38 = vld [vmem:[#allocation11 + $0x88] ss:$16 sps:$4 sm:$0xff]  }
 0x146   :  { %v453_v40 = vpack.c.bf16 %v452_v24, %v452_v24  ;;  %v8329_v24 = vld [vmem:[#allocation11 + $0x64] ss:$16 sps:$4 sm:$0xff]  }
 0x148   :  { %454 = vst [vmem:[#allocation4] sm:$0xf] %v453_v40  ;;  %v8330_v40 = vld [vmem:[#allocation11 + $0x6c] ss:$16 sps:$4 sm:$0xff]  }
 0x14f   :  { %v455_v27 = vld [vmem:[#allocation4] sm:$0xff] }
 0x150   :  { %v6792_v30 = vcombine.high %v455_v27, %v455_v27  ;;  %v6791_v43 = vcombine.low %v455_v27, %v455_v27  ;;  %v8331_v27 = vld [vmem:[#allocation11 + $0x60] ss:$16 sps:$4 sm:$0xff]  }
 0x152   :  { %900 = vmatprep.mubr.bf16.mxu0 %v6792_v30  ;;  %941 = vmatprep.mubr.bf16.mxu1 %v6792_v30  ;;  %v8332_v30 = vld [vmem:[#allocation11 + $0x68] ss:$16 sps:$4 sm:$0xff]  }
 0x153   :  { %901 = vmatmul.mubr.bf16.vlgmr.msra.gmra.mxu0 %v6791_v43  ;;  %942 = vmatmul.mubr.bf16.vlgmr.msra.gmra.mxu1 %v6791_v43  ;;  %v8333_v43 = vld [vmem:[#allocation11 + $0x44] ss:$16 sps:$4 sm:$0xff]  }
 0x154   :  { %1209 = vmatpush1.bf16.msra.mxu0 %v8315_v21  ;;  %1250 = vmatpush1.bf16.msra.mxu1 %v8316_v25  ;;  %v8334_v21 = vld [vmem:[#allocation11 + $0x4c] ss:$16 sps:$4 sm:$0xff]   ;;  %v8335_v25 = vld [vmem:[#allocation11 + $0x40] ss:$16 sps:$4 sm:$0xff]  }
 0x155   :  { %1210 = vmatprep.subr.bf16.mxu0 %v8317_v28  ;;  %1251 = vmatprep.subr.bf16.mxu1 %v8318_v1  ;;  %v8336_v28 = vld [vmem:[#allocation11 + $0x48] ss:$16 sps:$4 sm:$0xff]   ;;  %v8337_v1 = vld [vmem:[#allocation11 + $0x24] ss:$16 sps:$4 sm:$0xff]  }
 0x156   :  { %1240 = vmatprep.mubr.bf16.mxu0 %v10516_v34  ;;  %1281 = vmatprep.mubr.bf16.mxu1 %v10516_v34 }
 0x158   :  { %1211 = vmatpush1.bf16.msra.mxu0 %v8319_v22  ;;  %1252 = vmatpush1.bf16.msra.mxu1 %v8320_v23  ;;  %v8338_v22 = vld [vmem:[#allocation11 + $0x2c] ss:$16 sps:$4 sm:$0xff]   ;;  %v8339_v23 = vld [vmem:[#allocation11 + $0x20] ss:$16 sps:$4 sm:$0xff]  }
 0x159   :  { %1212 = vmatprep.subr.bf16.mxu0 %v8321_v41  ;;  %1253 = vmatprep.subr.bf16.mxu1 %v8322_v36  ;;  %v8340_v41 = vld [vmem:[#allocation11 + $0x28] ss:$16 sps:$4 sm:$0xff]   ;;  %v8341_v36 = vld [vmem:[#allocation11 + $0x4] ss:$16 sps:$4 sm:$0xff]  }
 0x15c   :  { %1213 = vmatpush1.bf16.msra.mxu0 %v8323_v42  ;;  %1254 = vmatpush1.bf16.msra.mxu1 %v8324_v37  ;;  %v8342_v42 = vld [vmem:[#allocation11 + $0xc] ss:$16 sps:$4 sm:$0xff]   ;;  %v8343_v37 = vld [vmem:[#allocation11] ss:$16 sps:$4 sm:$0xff]  }
 0x15d   :  { %1214 = vmatprep.subr.bf16.mxu0 %v8325_v26  ;;  %1255 = vmatprep.subr.bf16.mxu1 %v8326_v31  ;;  %v8344_v26 = vld [vmem:[#allocation11 + $0x8] ss:$16 sps:$4 sm:$0xff]   ;;  %v8345_v31 = vld [vmem:[#allocation12 + $0xe4] ss:$16 sps:$4 sm:$0xff]  }
 0x160   :  { %1215 = vmatpush1.bf16.msra.mxu0 %v8327_v33  ;;  %1256 = vmatpush1.bf16.msra.mxu1 %v8328_v38  ;;  %v8346_v33 = vld [vmem:[#allocation12 + $0xec] ss:$16 sps:$4 sm:$0xff]  }
 0x161   :  { %1216 = vmatprep.subr.bf16.mxu0 %v8329_v24  ;;  %1257 = vmatprep.subr.bf16.mxu1 %v8330_v40  ;;  %v1015_v38 = vld [vmem:[#allocation4] sm:$0xf]  ;;  %v8347_v24 = vld [vmem:[#allocation12 + $0xe0] ss:$16 sps:$4 sm:$0xff]  }
 0x162   :  { %v8348_v40 = vld [vmem:[#allocation12 + $0xe8] ss:$16 sps:$4 sm:$0xff]  }
 0x164   :  { %1217 = vmatpush1.bf16.msra.mxu0 %v8331_v27  ;;  %1258 = vmatpush1.bf16.msra.mxu1 %v8332_v30  ;;  %v8349_v27 = vld [vmem:[#allocation12 + $0xc4] ss:$16 sps:$4 sm:$0xff]   ;;  %v8350_v30 = vld [vmem:[#allocation12 + $0xcc] ss:$16 sps:$4 sm:$0xff]  }
 0x165   :  { %1218 = vmatprep.subr.bf16.mxu0 %v8333_v43  ;;  %1259 = vmatprep.subr.bf16.mxu1 %v8334_v21  ;;  %v8351_v43 = vld [vmem:[#allocation12 + $0xc0] ss:$16 sps:$4 sm:$0xff]   ;;  %v8352_v21 = vld [vmem:[#allocation12 + $0xc8] ss:$16 sps:$4 sm:$0xff]  }
 0x168   :  { %1219 = vmatpush1.bf16.msra.mxu0 %v8335_v25  ;;  %1260 = vmatpush1.bf16.msra.mxu1 %v8336_v28 }
 0x169   :  { %1220 = vmatprep.subr.bf16.mxu0 %v8337_v1  ;;  %1261 = vmatprep.subr.bf16.mxu1 %v8338_v22 }
 0x16c   :  { %1221 = vmatpush1.bf16.msra.mxu0 %v8339_v23  ;;  %1262 = vmatpush1.bf16.msra.mxu1 %v8340_v41 }
 0x16d   :  { %1222 = vmatprep.subr.bf16.mxu0 %v8341_v36  ;;  %1263 = vmatprep.subr.bf16.mxu1 %v8342_v42 }
 0x170   :  { %1223 = vmatpush1.bf16.msra.mxu0 %v8343_v37  ;;  %1264 = vmatpush1.bf16.msra.mxu1 %v8344_v26 }
 0x171   :  { %1706 = vmatprep.subr.bf16.mxu0 %v8345_v31  ;;  %1747 = vmatprep.subr.bf16.mxu1 %v8346_v33 }
 0x173   :  { %1241 = vmatmul.mubr.bf16.vlgmr.msra.gmra.mxu0 %v1015_v38  ;;  %1282 = vmatmul.mubr.bf16.vlgmr.msra.gmra.mxu1 %v1015_v38 }
 0x174   :  { %1707 = vmatpush1.bf16.msra.mxu0 %v8347_v24  ;;  %1748 = vmatpush1.bf16.msra.mxu1 %v8348_v40  ;;  %v1006_v24 = vpop.permute.xlu0 %1005 }
 0x175   :  { %1708 = vmatprep.subr.bf16.mxu0 %v8349_v27  ;;  %1749 = vmatprep.subr.bf16.mxu1 %v8350_v30 }
 0x178   :  { %1709 = vmatpush1.bf16.msra.mxu0 %v8351_v43  ;;  %1750 = vmatpush1.bf16.msra.mxu1 %v8352_v21  ;;  %v10537_v21 = vld [vmem:[#allocation38_spill] sm:$0xff] }
 0x179   :  { %1710 = vmatprep.subr.bf16.mxu0 %v8536_v44  ;;  %1751 = vmatprep.subr.bf16.mxu1 %v8538_v45  ;;  %v7155_v44 = vld [vmem:[#allocation6 + $0x4] ss:$0 sm:$0xff]  ;;  %v10517_v45 = vld [vmem:[#allocation19_spill] sm:$0xff] }
 0x17a   :  { %3465 = vbcast.lane.b32.xlu0 %v7155_v44, 256  ;;  %v1007_v44 = vmul.f32 %v1006_v24, %v10537_v21 }
 0x17c   :  { %1711 = vmatpush1.bf16.msra.mxu0 %v8540_v46  ;;  %1752 = vmatpush1.bf16.msra.mxu1 %v8542_v47  ;;  %v10518_v46 = vld [vmem:[#allocation20_spill] sm:$0xff]  ;;  %v7353_v47 = vld [vmem:[#allocation6 + $0x6] ss:$0 sm:$0xff] }
 0x17d   :  { %1712 = vmatprep.subr.bf16.mxu0 %v8548_v48  ;;  %1753 = vmatprep.subr.bf16.mxu1 %v8550_v49  ;;  %v10519_v48 = vld [vmem:[#allocation21_spill] sm:$0xff]  ;;  %v10520_v49 = vld [vmem:[#allocation22_spill] sm:$0xff] }
 0x17e   :  { %5105 = vbcast.lane.b32.xlu0 %v7353_v47, 256  ;;  %v10539_v47 = vld [vmem:[#allocation41_spill] sm:$0xff] }
 0x180   :  { %1713 = vmatpush1.bf16.msra.mxu0 %v8552_v50  ;;  %1754 = vmatpush1.bf16.msra.mxu1 %v8554_v51  ;;  %v10521_v50 = vld [vmem:[#allocation23_spill] sm:$0xff]  ;;  %v10522_v51 = vld [vmem:[#allocation24_spill] sm:$0xff] }
 0x181   :  { %1714 = vmatprep.subr.bf16.mxu0 %v8560_v52  ;;  %1755 = vmatprep.subr.bf16.mxu1 %v8562_v53  ;;  %v10523_v52 = vld [vmem:[#allocation25_spill] sm:$0xff]  ;;  %v10524_v53 = vld [vmem:[#allocation26_spill] sm:$0xff] }
 0x184   :  { %1715 = vmatpush1.bf16.msra.mxu0 %v8564_v54  ;;  %1756 = vmatpush1.bf16.msra.mxu1 %v8566_v55  ;;  %v10525_v54 = vld [vmem:[#allocation27_spill] sm:$0xff]  ;;  %v10526_v55 = vld [vmem:[#allocation28_spill] sm:$0xff] }
 0x185   :  { %1716 = vmatprep.subr.bf16.mxu0 %v8572_v56  ;;  %1757 = vmatprep.subr.bf16.mxu1 %v8574_v57  ;;  %v10527_v56 = vld [vmem:[#allocation29_spill] sm:$0xff]  ;;  %v10528_v57 = vld [vmem:[#allocation30_spill] sm:$0xff] }
 0x188   :  { %1717 = vmatpush1.bf16.msra.mxu0 %v8576_v58  ;;  %1758 = vmatpush1.bf16.msra.mxu1 %v8578_v59  ;;  %v10529_v58 = vld [vmem:[#allocation31_spill] sm:$0xff]  ;;  %v10530_v59 = vld [vmem:[#allocation32_spill] sm:$0xff] }
 0x189   :  { %1718 = vmatprep.subr.bf16.mxu0 %v8584_v60  ;;  %1759 = vmatprep.subr.bf16.mxu1 %v8586_v61  ;;  %v10531_v60 = vld [vmem:[#allocation33_spill] sm:$0xff]  ;;  %v10532_v61 = vld [vmem:[#allocation34_spill] sm:$0xff] }
 0x18c   :  { %1719 = vmatpush1.bf16.msra.mxu0 %v8588_v62  ;;  %1760 = vmatpush1.bf16.msra.mxu1 %v8590_v63  ;;  %v6957_v62 = vld [vmem:[#allocation6 + $0x2] ss:$0 sm:$0xff]  ;;  %v7056_v63 = vld [vmem:[#allocation6 + $0x3] ss:$0 sm:$0xff] }
 0x18d   :  { %1720 = vmatprep.subr.bf16.mxu0 %v8596_v0  ;;  %1761 = vmatprep.subr.bf16.mxu1 %v8598_v2  ;;  %v7254_v0 = vld [vmem:[#allocation6 + $0x5] ss:$0 sm:$0xff]  ;;  %v7452_v2 = vld [vmem:[#allocation6 + $0x7] ss:$0 sm:$0xff] }
 0x18e   :  { %1825 = vbcast.lane.b32.xlu1 %v6957_v62, 256 }
 0x190   :  { %1721 = vmatpush1.bf16.msra.mxu0 %v8600_v3  ;;  %1762 = vmatpush1.bf16.msra.mxu1 %v8602_v4  ;;  %v95_v3 = vld [vmem:[#allocation5] sm:$0x1]  ;;  %v8815_v4 = vld [vmem:[#allocation11 + $0xe4] ss:$16 sps:$4 sm:$0xff]  }
 0x191   :  { %1722 = vmatprep.subr.bf16.mxu0 %v8608_v5  ;;  %1763 = vmatprep.subr.bf16.mxu1 %v8610_v6  ;;  %v8817_v5 = vld [vmem:[#allocation11 + $0xec] ss:$16 sps:$4 sm:$0xff]  }
 0x192   :  { %2645 = vbcast.lane.b32.xlu1 %v7056_v63, 256  ;;  %v93_v6 = vld [vmem:[%s10233_s5] sm:$0xf] }
 0x193   :  { %v8837_v41 = vrot.slane %v93_v6, %v8738_v29  ;;  %v10538_v29 = vld [vmem:[#allocation40_spill] sm:$0xff] }
 0x194   :  { %1723 = vmatpush2.bf16.msra.mxu0 %v8612_v7  ;;  %1764 = vmatpush2.bf16.msra.mxu1 %v8614_v8  ;;  %v10533_v7 = vld [vmem:[#allocation36_spill] sm:$0xff] }
 0x195   :  { %1724 = vmatprep.subr.bf16.mxu0 %v8620_v9  ;;  %1765 = vmatprep.subr.bf16.mxu1 %v8622_v10  ;;  %v8825_v8 = vrot.slane %v93_v6, %v10533_v7  ;;  %v10535_v9 = vld [vmem:[#allocation37_spill] sm:$0xff] }
 0x196   :  { %4285 = vbcast.lane.b32.xlu1 %v7254_v0, 256  ;;  %v8828_v10 = vrot.slane %v93_v6, %v10535_v9 }
 0x197   :  { %10534 = vst [vmem:[#allocation19_spill] sm:$0xff] %v8825_v8 }
 0x198   :  { %1725 = vmatpush2.bf16.msra.mxu0 %v8624_v11  ;;  %1766 = vmatpush2.bf16.msra.mxu1 %v8626_v12 }
 0x199   :  { %1726 = vmatprep.subr.bf16.mxu0 %v8632_v13  ;;  %1767 = vmatprep.subr.bf16.mxu1 %v8634_v14 }
 0x19a   :  { %5925 = vbcast.lane.b32.xlu1 %v7452_v2, 256 }
 0x19c   :  { %1727 = vmatpush2.bf16.msra.mxu0 %v8636_v15  ;;  %1768 = vmatpush2.bf16.msra.mxu1 %v8638_v16 }
 0x19d   :  { %1728 = vmatprep.subr.bf16.mxu0 %v8644_v17  ;;  %1769 = vmatprep.subr.bf16.mxu1 %v8646_v18  ;;  %v10536_v17 = vld [vmem:[#allocation39_spill] sm:$0xff] }
 0x19e   :  { %981 = vperm.xlu1 %7559, %v95_v3   ;;  %v8832_v18 = vrot.slane %v93_v6, %v10536_v17  ;;  %v10542_v3 = vld [vmem:[#allocation44_spill] sm:$0xff] }
 0x19f   :  { %v1010_v6 = vmul.f32 %v1006_v24, %v10542_v3 }
 0x1a0   :  { %1729 = vmatpush2.bf16.msra.mxu0 %v8648_v19  ;;  %1770 = vmatpush2.bf16.msra.mxu1 %v8650_v20 }
 0x1a1   :  { %1730 = vmatprep.subr.bf16.mxu0 %v10517_v45  ;;  %1771 = vmatprep.subr.bf16.mxu1 %v10518_v46  ;;  %v1008_v46 = vmul.f32 %v1006_v24, %v10538_v29 }
 0x1a4   :  { %1731 = vmatpush2.bf16.msra.mxu0 %v10519_v48  ;;  %1772 = vmatpush2.bf16.msra.mxu1 %v10520_v49  ;;  %v1011_v48 = vadd.f32 %v1007_v44, %v10539_v47  ;;  %v10540_v49 = vld [vmem:[#allocation42_spill] sm:$0xff] }
 0x1a5   :  { %1732 = vmatprep.subr.bf16.mxu0 %v10521_v50  ;;  %1773 = vmatprep.subr.bf16.mxu1 %v10522_v51  ;;  %v1009_v50 = vmul.f32 %v1006_v24, %v10540_v49  ;;  %v10541_v51 = vld [vmem:[#allocation43_spill] sm:$0xff] }
 0x1a8   :  { %1733 = vmatpush2.bf16.msra.mxu0 %v10523_v52  ;;  %1774 = vmatpush2.bf16.msra.mxu1 %v10524_v53  ;;  %v1012_v52 = vadd.f32 %v1008_v46, %v10541_v51 }
 0x1a9   :  { %1734 = vmatprep.subr.bf16.mxu0 %v10525_v54  ;;  %1775 = vmatprep.subr.bf16.mxu1 %v10526_v55 }
 0x1ac   :  { %1735 = vmatpush2.bf16.msra.mxu0 %v10527_v56  ;;  %1776 = vmatpush2.bf16.msra.mxu1 %v10528_v57 }
 0x1ad   :  { %1736 = vmatprep.subr.bf16.mxu0 %v10529_v58  ;;  %1777 = vmatprep.subr.bf16.mxu1 %v10530_v59 }
 0x1b0   :  { %1737 = vmatpush2.bf16.msra.mxu0 %v10531_v60  ;;  %1778 = vmatpush2.bf16.msra.mxu1 %v10532_v61  ;;  %v1013_v60 = vadd.f32 %v1009_v50, %v8742_v35  ;;  %v8861_v50 = vld [vmem:[#allocation11 + $0xe0] ss:$16 sps:$4 sm:$0xff]  }
 0x1b1   :  { %2028 = vmatprep.subr.bf16.mxu0 %v8815_v4  ;;  %2069 = vmatprep.subr.bf16.mxu1 %v8817_v5 }
 0x213   :  { %v902_v11 = vpop.f32.mrf.mxu0  ;;  %v943_v12 = vpop.f32.mrf.mxu1 }
 0x214   :  { %v903_v13 = vadd.f32 %v902_v11, %v8825_v8  ;;  %v944_v23 = vadd.f32 %v943_v12, %v8832_v18 }
 0x215   :  { %v904_v14 = vpop.f32.mrf.mxu0  ;;  %v945_v15 = vpop.f32.mrf.mxu1 }
 0x216   :  { %v950_v16 = vmul.f32 0.5, %v903_v13  ;;  %v905_v19 = vadd.f32 %v904_v14, %v8828_v10  ;;  %v946_v36 = vadd.f32 %v945_v15, %v8837_v41  ;;  %v1014_v13 = vadd.f32 %v1010_v6, %v8751_v32  ;;  %v8905_v6 = vld [vmem:[#allocation11 + $0x6c] ss:$16 sps:$4 sm:$0xff]  }
 0x217   :  { %v906_v20 = vpop.f32.mrf.mxu0  ;;  %v947_v25 = vpop.f32.mrf.mxu1 }
 0x218   :  { %8163 = vtanh.f32 %v950_v16  ;;  %v954_v28 = vmul.f32 0.5, %v905_v19  ;;  %v959_v42 = vmul.f32 0.5, %v946_v36  ;;  %v8854_v16 = vld [vmem:[%s10234_s6] ss:$0 sm:$0xff] }
 0x219   :  { %v907_v1 = vpop.f32.mrf.mxu0  ;;  %v948_v22 = vpop.f32.mrf.mxu1 }
 0x21a   :  { %8165 = vtanh.f32 %v954_v28 }
 0x21b   :  { %8167 = vtanh.f32 %v944_v23 }
 0x21c   :  { %8169 = vtanh.f32 %v959_v42 }
 0x225   :  { %v8164_v37 = vpop.eup %8163 }
 0x226   :  { %v952_v26 = vmul.f32 0.5, %v8164_v37 }
 0x227   :  { %v8166_v31 = vpop.eup %8165 }
 0x228   :  { %v953_v33 = vadd.f32 0.5, %v952_v26  ;;  %v956_v38 = vmul.f32 0.5, %v8166_v31  ;;  %v8168_v27 = vpop.eup %8167 }
 0x229   :  { %v8170_v56 = vpop.eup %8169 }
 0x22a   :  { %v957_v40 = vadd.f32 0.5, %v956_v38  ;;  %v964_v43 = vmul.f32 %v8168_v27, %v953_v33  ;;  %v961_v0 = vmul.f32 0.5, %v8170_v56  ;;  %v8873_v56 = vld [vmem:[#allocation11 + $0xc8] ss:$16 sps:$4 sm:$0xff]  }
 0x22c   :  { %v963_v30 = vmul.f32 0.0, %v957_v40  ;;  %v962_v14 = vadd.f32 0.5, %v961_v0  ;;  %v8899_v0 = vld [vmem:[#allocation11 + $0x88] ss:$16 sps:$4 sm:$0xff]  }
 0x22e   :  { %v8841_v45 = vadd.f32 %v964_v43, %v963_v30 }
 0x230   :  { %8171 = vtanh.f32 %v8841_v45 }
 0x233   :  { %v1242_v53 = vpop.f32.mrf.mxu0  ;;  %v1283_v54 = vpop.f32.mrf.mxu1 }
 0x234   :  { %v1290_v55 = vadd.f32 %v1242_v53, %v1011_v48  ;;  %v1292_v12 = vadd.f32 %v1283_v54, %v1013_v60  ;;  %v8867_v54 = vld [vmem:[#allocation11 + $0xcc] ss:$16 sps:$4 sm:$0xff]   ;;  %v8887_v60 = vld [vmem:[#allocation11 + $0xa8] ss:$16 sps:$4 sm:$0xff]  }
 0x235   :  { %v1244_v57 = vpop.f32.mrf.mxu0  ;;  %v1285_v58 = vpop.f32.mrf.mxu1 }
 0x236   :  { %v1294_v59 = vmul.f32 0.5, %v1290_v55  ;;  %v1291_v61 = vadd.f32 %v1244_v57, %v1012_v52  ;;  %v1293_v19 = vadd.f32 %v1285_v58, %v1014_v13  ;;  %v8863_v52 = vld [vmem:[#allocation11 + $0xe8] ss:$16 sps:$4 sm:$0xff]   ;;  %v8871_v55 = vld [vmem:[#allocation11 + $0xc0] ss:$16 sps:$4 sm:$0xff]  }
 0x237   :  { %v1246_v62 = vpop.f32.mrf.mxu0  ;;  %v1287_v63 = vpop.f32.mrf.mxu1  ;;  %v8877_v57 = vld [vmem:[#allocation11 + $0xa4] ss:$16 sps:$4 sm:$0xff]   ;;  %v8879_v58 = vld [vmem:[#allocation11 + $0xac] ss:$16 sps:$4 sm:$0xff]  }
 0x238   :  { %8173 = vtanh.f32 %v1294_v59  ;;  %v1298_v2 = vmul.f32 0.5, %v1291_v61  ;;  %v1303_v28 = vmul.f32 0.5, %v1293_v19  ;;  %v8885_v59 = vld [vmem:[#allocation11 + $0xa0] ss:$16 sps:$4 sm:$0xff]   ;;  %v8891_v61 = vld [vmem:[#allocation11 + $0x84] ss:$16 sps:$4 sm:$0xff]  }
 0x239   :  { %v1247_v9 = vpop.f32.mrf.mxu0  ;;  %v1288_v11 = vpop.f32.mrf.mxu1  ;;  %v8893_v62 = vld [vmem:[#allocation11 + $0x8c] ss:$16 sps:$4 sm:$0xff]   ;;  %v8897_v63 = vld [vmem:[#allocation11 + $0x80] ss:$16 sps:$4 sm:$0xff]  }
 0x23a   :  { %8175 = vtanh.f32 %v1298_v2  ;;  %v8903_v2 = vld [vmem:[#allocation11 + $0x64] ss:$16 sps:$4 sm:$0xff]   ;;  %v8909_v9 = vld [vmem:[#allocation11 + $0x60] ss:$16 sps:$4 sm:$0xff]   ;;  %v8911_v11 = vld [vmem:[#allocation11 + $0x68] ss:$16 sps:$4 sm:$0xff]  }
 0x23b   :  { %8177 = vtanh.f32 %v1292_v12  ;;  %v8915_v12 = vld [vmem:[#allocation11 + $0x44] ss:$16 sps:$4 sm:$0xff]   ;;  %v8917_v13 = vld [vmem:[#allocation11 + $0x4c] ss:$16 sps:$4 sm:$0xff]  }
 0x23c   :  { %8179 = vtanh.f32 %v1303_v28  ;;  %v8929_v19 = vld [vmem:[#allocation11 + $0x2c] ss:$16 sps:$4 sm:$0xff]   ;;  %v8939_v28 = vld [vmem:[#allocation11 + $0x4] ss:$16 sps:$4 sm:$0xff]  }
 0x23d   :  { %v8172_v15 = vpop.eup %8171 }
 0x23e   :  { %v967_v17 = vmul.f32 %v8172_v15, %v962_v14  ;;  %v8921_v14 = vld [vmem:[#allocation11 + $0x40] ss:$16 sps:$4 sm:$0xff]   ;;  %v8923_v15 = vld [vmem:[#allocation11 + $0x48] ss:$16 sps:$4 sm:$0xff]  }
 0x240   :  { %v976_v20 = vmul.f32 %v8854_v16, %v967_v17  ;;  %v968_v25 = vpack.c.bf16 %v967_v17, %v967_v17  ;;  %v8927_v17 = vld [vmem:[#allocation11 + $0x24] ss:$16 sps:$4 sm:$0xff]  }
 0x242   :  { %977 = vadd.xlane.f32.xlu0 %v976_v20  ;;  %969 = vst [vmem:[#allocation4 + $0x4] sm:$0xf] %v968_v25  ;;  %v8933_v20 = vld [vmem:[#allocation11 + $0x20] ss:$16 sps:$4 sm:$0xff]   ;;  %v8935_v25 = vld [vmem:[#allocation11 + $0x28] ss:$16 sps:$4 sm:$0xff]  }
 0x245   :  { %v8174_v1 = vpop.eup %8173 }
 0x246   :  { %v1296_v22 = vmul.f32 0.5, %v8174_v1  ;;  %v8941_v1 = vld [vmem:[#allocation11 + $0xc] ss:$16 sps:$4 sm:$0xff]  }
 0x247   :  { %v8176_v23 = vpop.eup %8175 }
 0x248   :  { %v1297_v36 = vadd.f32 0.5, %v1296_v22  ;;  %v1300_v42 = vmul.f32 0.5, %v8176_v23  ;;  %v8178_v26 = vpop.eup %8177  ;;  %v8945_v22 = vld [vmem:[#allocation11] ss:$16 sps:$4 sm:$0xff]   ;;  %v8947_v23 = vld [vmem:[#allocation11 + $0x8] ss:$16 sps:$4 sm:$0xff]  }
 0x249   :  { %v8180_v24 = vpop.eup %8179 }
 0x24a   :  { %v1301_v37 = vadd.f32 0.5, %v1300_v42  ;;  %v1308_v33 = vmul.f32 %v8178_v26, %v1297_v36  ;;  %v1305_v40 = vmul.f32 0.5, %v8180_v24  ;;  %v8953_v42 = vpop.permute.xlu1 %1825  ;;  %v8963_v24 = vld [vmem:[#allocation12 + $0xe4] ss:$16 sps:$4 sm:$0xff]  }
 0x24b   :  { %10547 = vst [vmem:[#allocation24_spill] sm:$0xff] %v8963_v24 }
 0x24c   :  { %v1307_v31 = vmul.f32 %v1301_v37, %v8754_v39  ;;  %v1306_v27 = vadd.f32 0.5, %v1305_v40  ;;  %v8865_v39 = vld [vmem:[#allocation11 + $0xc4] ss:$16 sps:$4 sm:$0xff]   ;;  %v8965_v40 = vld [vmem:[#allocation12 + $0xec] ss:$16 sps:$4 sm:$0xff]  }
 0x24d   :  { %10548 = vst [vmem:[#allocation25_spill] sm:$0xff] %v8965_v40 }
 0x24e   :  { %v8858_v38 = vadd.f32 %v1308_v33, %v1307_v31  ;;  %v8955_v37 = vpop.permute.xlu1 %2645  ;;  %v8959_v31 = vpop.permute.xlu0 %3465 }
 0x24f   :  { %10543 = vst [vmem:[#allocation20_spill] sm:$0xff] %v8955_v37  ;;  %10545 = vst [vmem:[#allocation22_spill] sm:$0xff] %v8959_v31 }
 0x250   :  { %8181 = vtanh.f32 %v8858_v38 }
 0x252   :  { %v8957_v26 = vpop.permute.xlu1 %4285 }
 0x253   :  { %10544 = vst [vmem:[#allocation21_spill] sm:$0xff] %v8957_v26  ;;  %v8987_v26 = vld [vmem:[#allocation12 + $0xc8] ss:$16 sps:$4 sm:$0xff]  }
 0x254   :  { %10557 = vst [vmem:[#allocation33_spill] sm:$0xff] %v8987_v26 }
 0x256   :  { %v8961_v33 = vpop.permute.xlu1 %5925 }
 0x257   :  { %10546 = vst [vmem:[#allocation23_spill] sm:$0xff] %v8961_v33  ;;  %v8983_v33 = vld [vmem:[#allocation12 + $0xcc] ss:$16 sps:$4 sm:$0xff]  }
 0x258   :  { %10555 = vst [vmem:[#allocation31_spill] sm:$0xff] %v8983_v33 }
 0x25d   :  { %v8182_v30 = vpop.eup %8181 }
 0x25e   :  { %v1311_v43 = vmul.f32 %v8182_v30, %v1306_v27  ;;  %v8967_v27 = vpop.permute.xlu0 %5105  ;;  %v982_v30 = vpop.permute.xlu1 %981 }
 0x25f   :  { %10549 = vst [vmem:[#allocation26_spill] sm:$0xff] %v8967_v27  ;;  %v8985_v27 = vld [vmem:[#allocation12 + $0xc0] ss:$16 sps:$4 sm:$0xff]  }
 0x260   :  { %v1312_v44 = vpack.c.bf16 %v1311_v43, %v1311_v43  ;;  %v8969_v43 = vld [vmem:[#allocation12 + $0xe0] ss:$16 sps:$4 sm:$0xff]   ;;  %10556 = vst [vmem:[#allocation32_spill] sm:$0xff] %v8985_v27 }
 0x261   :  { %10550 = vst [vmem:[#allocation27_spill] sm:$0xff] %v8969_v43 }
 0x262   :  { %1313 = vst [vmem:[#allocation4] sm:$0xf] %v1312_v44  ;;  %v8971_v44 = vld [vmem:[#allocation12 + $0xe8] ss:$16 sps:$4 sm:$0xff]  }
 0x263   :  { %10551 = vst [vmem:[#allocation28_spill] sm:$0xff] %v8971_v44 }
 0x269   :  { %v1314_v46 = vld [vmem:[#allocation4] sm:$0xff] }
 0x26a   :  { %v6892_v48 = vcombine.high %v1314_v46, %v1314_v46  ;;  %v6891_v53 = vcombine.low %v1314_v46, %v1314_v46  ;;  %v1835_v36 = vld [vmem:[#allocation4] sm:$0xf]  ;;  %v10552_v46 = vlaneseq }
 0x26c   :  { %1738 = vmatprep.mubr.bf16.mxu0 %v6892_v48  ;;  %1779 = vmatprep.mubr.bf16.mxu1 %v6892_v48  ;;  %v991_v48 = vand.u32 127, %v10552_v46  ;;  %v10558_v46 = vld [vmem:[#allocation35_spill] sm:$0xff] }
 0x26d   :  { %1739 = vmatmul.mubr.bf16.vlgmr.msra.gmra.mxu0 %v6891_v53  ;;  %1780 = vmatmul.mubr.bf16.vlgmr.msra.gmra.mxu1 %v6891_v53  ;;  %v8979_v53 = vrot.slane %v982_v30, %v10533_v7  ;;  %v8997_v30 = vld [vmem:[#allocation12 + $0xa4] ss:$16 sps:$4 sm:$0xff]  }
 0x26e   :  { %2029 = vmatpush1.bf16.msra.mxu0 %v8861_v50  ;;  %2070 = vmatpush1.bf16.msra.mxu1 %v8863_v52  ;;  %v8990_v31 = vsub.s32 %v991_v48, %v10558_v46  ;;  %10560 = vst [vmem:[#allocation36_spill] sm:$0xff] %v8997_v30  ;;  %v9003_v48 = vld [vmem:[#allocation12 + $0xa8] ss:$16 sps:$4 sm:$0xff]  }
 0x26f   :  { %2030 = vmatprep.subr.bf16.mxu0 %v8865_v39  ;;  %2071 = vmatprep.subr.bf16.mxu1 %v8867_v54  ;;  %10553 = vst [vmem:[#allocation29_spill] sm:$0xff] %v8979_v53  ;;  %10563 = vst [vmem:[#allocation38_spill] sm:$0xff] %v9003_v48 }
 0x270   :  { %2060 = vmatprep.mubr.bf16.mxu0 %v10516_v34  ;;  %2101 = vmatprep.mubr.bf16.mxu1 %v10516_v34  ;;  %10559 = vst [vmem:[#allocation34_spill] sm:$0xff] %v8990_v31 }
 0x272   :  { %2031 = vmatpush1.bf16.msra.mxu0 %v8871_v55  ;;  %2072 = vmatpush1.bf16.msra.mxu1 %v8873_v56 }
 0x273   :  { %2032 = vmatprep.subr.bf16.mxu0 %v8877_v57  ;;  %2073 = vmatprep.subr.bf16.mxu1 %v8879_v58 }
 0x276   :  { %2033 = vmatpush1.bf16.msra.mxu0 %v8885_v59  ;;  %2074 = vmatpush1.bf16.msra.mxu1 %v8887_v60 }
 0x277   :  { %2034 = vmatprep.subr.bf16.mxu0 %v8891_v61  ;;  %2075 = vmatprep.subr.bf16.mxu1 %v8893_v62 }
 0x27a   :  { %2035 = vmatpush1.bf16.msra.mxu0 %v8897_v63  ;;  %2076 = vmatpush1.bf16.msra.mxu1 %v8899_v0 }
 0x27b   :  { %2036 = vmatprep.subr.bf16.mxu0 %v8903_v2  ;;  %2077 = vmatprep.subr.bf16.mxu1 %v8905_v6 }
 0x27e   :  { %2037 = vmatpush1.bf16.msra.mxu0 %v8909_v9  ;;  %2078 = vmatpush1.bf16.msra.mxu1 %v8911_v11 }
 0x27f   :  { %2038 = vmatprep.subr.bf16.mxu0 %v8915_v12  ;;  %2079 = vmatprep.subr.bf16.mxu1 %v8917_v13 }
 0x282   :  { %2039 = vmatpush1.bf16.msra.mxu0 %v8921_v14  ;;  %2080 = vmatpush1.bf16.msra.mxu1 %v8923_v15 }
 0x283   :  { %2040 = vmatprep.subr.bf16.mxu0 %v8927_v17  ;;  %2081 = vmatprep.subr.bf16.mxu1 %v8929_v19 }
 0x286   :  { %2041 = vmatpush1.bf16.msra.mxu0 %v8933_v20  ;;  %2082 = vmatpush1.bf16.msra.mxu1 %v8935_v25 }
 0x287   :  { %2042 = vmatprep.subr.bf16.mxu0 %v8939_v28  ;;  %2083 = vmatprep.subr.bf16.mxu1 %v8941_v1 }
 0x28a   :  { %2043 = vmatpush1.bf16.msra.mxu0 %v8945_v22  ;;  %2084 = vmatpush1.bf16.msra.mxu1 %v8947_v23 }
 0x28b   :  { %2526 = vmatprep.subr.bf16.mxu0 %v8963_v24  ;;  %2567 = vmatprep.subr.bf16.mxu1 %v8965_v40 }
 0x28d   :  { %2061 = vmatmul.mubr.bf16.vlgmr.msra.gmra.mxu0 %v1835_v36  ;;  %2102 = vmatmul.mubr.bf16.vlgmr.msra.gmra.mxu1 %v1835_v36  ;;  %v8981_v36 = vld [vmem:[#allocation12 + $0xc4] ss:$16 sps:$4 sm:$0xff]  }
 0x28e   :  { %2527 = vmatpush1.bf16.msra.mxu0 %v8969_v43  ;;  %2568 = vmatpush1.bf16.msra.mxu1 %v8971_v44  ;;  %10554 = vst [vmem:[#allocation30_spill] sm:$0xff] %v8981_v36  ;;  %v8999_v44 = vld [vmem:[#allocation12 + $0xac] ss:$16 sps:$4 sm:$0xff]   ;;  %v9001_v43 = vld [vmem:[#allocation12 + $0xa0] ss:$16 sps:$4 sm:$0xff]  }
 0x28f   :  { %2528 = vmatprep.subr.bf16.mxu0 %v8981_v36  ;;  %2569 = vmatprep.subr.bf16.mxu1 %v8983_v33  ;;  %10561 = vst [vmem:[#allocation37_spill] sm:$0xff] %v8999_v44  ;;  %10562 = vst [vmem:[#allocation39_spill] sm:$0xff] %v9001_v43 }
 0x292   :  { %2529 = vmatpush1.bf16.msra.mxu0 %v8985_v27  ;;  %2570 = vmatpush1.bf16.msra.mxu1 %v8987_v26  ;;  %v9015_v26 = vld [vmem:[#allocation12 + $0x80] ss:$16 sps:$4 sm:$0xff]   ;;  %v9017_v27 = vld [vmem:[#allocation12 + $0x88] ss:$16 sps:$4 sm:$0xff]  }
 0x293   :  { %2530 = vmatprep.subr.bf16.mxu0 %v8997_v30  ;;  %2571 = vmatprep.subr.bf16.mxu1 %v8999_v44  ;;  %10566 = vst [vmem:[#allocation45_spill] sm:$0xff] %v9015_v26  ;;  %10567 = vst [vmem:[#allocation46_spill] sm:$0xff] %v9017_v27  ;;  %v9154_v44 = vld [vmem:[#allocation12 + $0x10c] ss:$16 sps:$4 sm:$0xff]  }
 0x294   :  { %10613 = vst [vmem:[#allocation92_spill] sm:$0xff] %v9154_v44 }
 0x296   :  { %2531 = vmatpush1.bf16.msra.mxu0 %v9001_v43  ;;  %2572 = vmatpush1.bf16.msra.mxu1 %v9003_v48  ;;  %v9029_v48 = vld [vmem:[#allocation12 + $0x68] ss:$16 sps:$4 sm:$0xff]   ;;  %v9151_v43 = vld [vmem:[#allocation12 + $0x104] ss:$16 sps:$4 sm:$0xff]  }
 0x297   :  { %10571 = vst [vmem:[#allocation50_spill] sm:$0xff] %v9029_v48  ;;  %10612 = vst [vmem:[#allocation91_spill] sm:$0xff] %v9151_v43 }
 0x2cb   :  { %v978_v37 = vpop.xlane.xlu0 %977 }
 0x2cc   :  { %v988_v7 = vadd.f32 %v8979_v53, %v978_v37  ;;  %v9011_v37 = vld [vmem:[#allocation12 + $0x84] ss:$16 sps:$4 sm:$0xff]   ;;  %v9013_v53 = vld [vmem:[#allocation12 + $0x8c] ss:$16 sps:$4 sm:$0xff]  }
 0x2cd   :  { %10564 = vst [vmem:[#allocation44_spill] sm:$0xff] %v9011_v37  ;;  %10565 = vst [vmem:[#allocation35_spill] sm:$0xff] %v9013_v53  ;;  %2532 = vmatprep.subr.bf16.mxu0 %v9011_v37  ;;  %2573 = vmatprep.subr.bf16.mxu1 %v9013_v53  ;;  %v9035_v53 = vld [vmem:[#allocation12 + $0x44] ss:$16 sps:$4 sm:$0xff]   ;;  %v9041_v37 = vld [vmem:[#allocation12 + $0x48] ss:$16 sps:$4 sm:$0xff]  }
 0x2ce   :  { %v995_v46 = vrot.slane %v988_v7, %v8990_v31  ;;  %2533 = vmatpush1.bf16.msra.mxu0 %v9015_v26  ;;  %2574 = vmatpush1.bf16.msra.mxu1 %v9017_v27  ;;  %v9023_v7 = vld [vmem:[#allocation12 + $0x64] ss:$16 sps:$4 sm:$0xff]   ;;  %v9025_v31 = vld [vmem:[#allocation12 + $0x6c] ss:$16 sps:$4 sm:$0xff]   ;;  %10572 = vst [vmem:[#allocation51_spill] sm:$0xff] %v9035_v53  ;;  %10575 = vst [vmem:[#allocation54_spill] sm:$0xff] %v9041_v37 }
 0x2cf   :  { %10568 = vst [vmem:[#allocation47_spill] sm:$0xff] %v9023_v7  ;;  %10569 = vst [vmem:[#allocation48_spill] sm:$0xff] %v9025_v31  ;;  %2534 = vmatprep.subr.bf16.mxu0 %v9023_v7  ;;  %2575 = vmatprep.subr.bf16.mxu1 %v9025_v31  ;;  %v9037_v26 = vld [vmem:[#allocation12 + $0x4c] ss:$16 sps:$4 sm:$0xff]   ;;  %v9039_v27 = vld [vmem:[#allocation12 + $0x40] ss:$16 sps:$4 sm:$0xff]  }
 0x2d0   :  { %998 = vst.msk [vmem:[#allocation14] sm:$0x1] %vm997_vm0, %v995_v46  ;;  %v9027_v46 = vld [vmem:[#allocation12 + $0x60] ss:$16 sps:$4 sm:$0xff]   ;;  %10573 = vst [vmem:[#allocation52_spill] sm:$0xff] %v9037_v26 }
 0x2d1   :  { %10570 = vst [vmem:[#allocation49_spill] sm:$0xff] %v9027_v46  ;;  %10574 = vst [vmem:[#allocation53_spill] sm:$0xff] %v9039_v27  ;;  %v9047_v31 = vld [vmem:[#allocation12 + $0x24] ss:$16 sps:$4 sm:$0xff]   ;;  %v9053_v7 = vld [vmem:[#allocation12 + $0x28] ss:$16 sps:$4 sm:$0xff]  }
 0x2d2   :  { %2535 = vmatpush1.bf16.msra.mxu0 %v9027_v46  ;;  %2576 = vmatpush1.bf16.msra.mxu1 %v9029_v48  ;;  %10576 = vst [vmem:[#allocation55_spill] sm:$0xff] %v9047_v31  ;;  %v9049_v46 = vld [vmem:[#allocation12 + $0x2c] ss:$16 sps:$4 sm:$0xff]   ;;  %v9051_v48 = vld [vmem:[#allocation12 + $0x20] ss:$16 sps:$4 sm:$0xff]   ;;  %10579 = vst [vmem:[#allocation58_spill] sm:$0xff] %v9053_v7 }
 0x2d3   :  { %2536 = vmatprep.subr.bf16.mxu0 %v9035_v53  ;;  %2577 = vmatprep.subr.bf16.mxu1 %v9037_v26  ;;  %10577 = vst [vmem:[#allocation56_spill] sm:$0xff] %v9049_v46  ;;  %10578 = vst [vmem:[#allocation57_spill] sm:$0xff] %v9051_v48  ;;  %v9059_v26 = vld [vmem:[#allocation12 + $0x4] ss:$16 sps:$4 sm:$0xff]   ;;  %v9065_v53 = vld [vmem:[#allocation12 + $0x8] ss:$16 sps:$4 sm:$0xff]  }
 0x2d4   :  { %10580 = vst [vmem:[#allocation59_spill] sm:$0xff] %v9059_v26  ;;  %10583 = vst [vmem:[#allocation62_spill] sm:$0xff] %v9065_v53 }
 0x2d6   :  { %2537 = vmatpush1.bf16.msra.mxu0 %v9039_v27  ;;  %2578 = vmatpush1.bf16.msra.mxu1 %v9041_v37  ;;  %v9061_v27 = vld [vmem:[#allocation12 + $0xc] ss:$16 sps:$4 sm:$0xff]   ;;  %v9063_v37 = vld [vmem:[#allocation12] ss:$16 sps:$4 sm:$0xff]  }
 0x2d7   :  { %2538 = vmatprep.subr.bf16.mxu0 %v9047_v31  ;;  %2579 = vmatprep.subr.bf16.mxu1 %v9049_v46  ;;  %10581 = vst [vmem:[#allocation60_spill] sm:$0xff] %v9061_v27  ;;  %10582 = vst [vmem:[#allocation61_spill] sm:$0xff] %v9063_v37  ;;  %v9071_v46 = vld [vmem:[#allocation12 + $0x1e4] ss:$16 sps:$4 sm:$0xff]   ;;  %v9077_v31 = vld [vmem:[#allocation12 + $0x1e8] ss:$16 sps:$4 sm:$0xff]  }
 0x2d8   :  { %10584 = vst [vmem:[#allocation63_spill] sm:$0xff] %v9071_v46  ;;  %10587 = vst [vmem:[#allocation66_spill] sm:$0xff] %v9077_v31 }
 0x2da   :  { %2539 = vmatpush1.bf16.msra.mxu0 %v9051_v48  ;;  %2580 = vmatpush1.bf16.msra.mxu1 %v9053_v7  ;;  %v9073_v48 = vld [vmem:[#allocation12 + $0x1ec] ss:$16 sps:$4 sm:$0xff]   ;;  %v9075_v7 = vld [vmem:[#allocation12 + $0x1e0] ss:$16 sps:$4 sm:$0xff]  }
 0x2db   :  { %2540 = vmatprep.subr.bf16.mxu0 %v9059_v26  ;;  %2581 = vmatprep.subr.bf16.mxu1 %v9061_v27  ;;  %10585 = vst [vmem:[#allocation64_spill] sm:$0xff] %v9073_v48  ;;  %10586 = vst [vmem:[#allocation65_spill] sm:$0xff] %v9075_v7  ;;  %v9083_v27 = vld [vmem:[#allocation12 + $0x1c4] ss:$16 sps:$4 sm:$0xff]   ;;  %v9089_v26 = vld [vmem:[#allocation12 + $0x1c8] ss:$16 sps:$4 sm:$0xff]  }
 0x2dc   :  { %10588 = vst [vmem:[#allocation67_spill] sm:$0xff] %v9083_v27  ;;  %10591 = vst [vmem:[#allocation70_spill] sm:$0xff] %v9089_v26 }
 0x2de   :  { %2541 = vmatpush1.bf16.msra.mxu0 %v9063_v37  ;;  %2582 = vmatpush1.bf16.msra.mxu1 %v9065_v53  ;;  %v9085_v37 = vld [vmem:[#allocation12 + $0x1cc] ss:$16 sps:$4 sm:$0xff]   ;;  %v9087_v53 = vld [vmem:[#allocation12 + $0x1c0] ss:$16 sps:$4 sm:$0xff]  }
 0x2df   :  { %2542 = vmatprep.subr.bf16.mxu0 %v9071_v46  ;;  %2583 = vmatprep.subr.bf16.mxu1 %v9073_v48  ;;  %10589 = vst [vmem:[#allocation68_spill] sm:$0xff] %v9085_v37  ;;  %10590 = vst [vmem:[#allocation69_spill] sm:$0xff] %v9087_v53  ;;  %v9095_v48 = vld [vmem:[#allocation12 + $0x1a4] ss:$16 sps:$4 sm:$0xff]   ;;  %v9101_v46 = vld [vmem:[#allocation12 + $0x1a8] ss:$16 sps:$4 sm:$0xff]  }
 0x2e0   :  { %10592 = vst [vmem:[#allocation71_spill] sm:$0xff] %v9095_v48  ;;  %10595 = vst [vmem:[#allocation74_spill] sm:$0xff] %v9101_v46 }
 0x2e2   :  { %2543 = vmatpush2.bf16.msra.mxu0 %v9075_v7  ;;  %2584 = vmatpush2.bf16.msra.mxu1 %v9077_v31  ;;  %v9097_v7 = vld [vmem:[#allocation12 + $0x1ac] ss:$16 sps:$4 sm:$0xff]   ;;  %v9099_v31 = vld [vmem:[#allocation12 + $0x1a0] ss:$16 sps:$4 sm:$0xff]  }
 0x2e3   :  { %2544 = vmatprep.subr.bf16.mxu0 %v9083_v27  ;;  %2585 = vmatprep.subr.bf16.mxu1 %v9085_v37  ;;  %10593 = vst [vmem:[#allocation72_spill] sm:$0xff] %v9097_v7  ;;  %10594 = vst [vmem:[#allocation73_spill] sm:$0xff] %v9099_v31  ;;  %v9107_v37 = vld [vmem:[#allocation12 + $0x184] ss:$16 sps:$4 sm:$0xff]   ;;  %v9113_v27 = vld [vmem:[#allocation12 + $0x188] ss:$16 sps:$4 sm:$0xff]  }
 0x2e4   :  { %10596 = vst [vmem:[#allocation75_spill] sm:$0xff] %v9107_v37  ;;  %10599 = vst [vmem:[#allocation78_spill] sm:$0xff] %v9113_v27 }
 0x2e6   :  { %2545 = vmatpush2.bf16.msra.mxu0 %v9087_v53  ;;  %2586 = vmatpush2.bf16.msra.mxu1 %v9089_v26  ;;  %v9109_v53 = vld [vmem:[#allocation12 + $0x18c] ss:$16 sps:$4 sm:$0xff]   ;;  %v9111_v26 = vld [vmem:[#allocation12 + $0x180] ss:$16 sps:$4 sm:$0xff]  }
 0x2e7   :  { %2546 = vmatprep.subr.bf16.mxu0 %v9095_v48  ;;  %2587 = vmatprep.subr.bf16.mxu1 %v9097_v7  ;;  %10597 = vst [vmem:[#allocation76_spill] sm:$0xff] %v9109_v53  ;;  %10598 = vst [vmem:[#allocation77_spill] sm:$0xff] %v9111_v26  ;;  %v9119_v7 = vld [vmem:[#allocation12 + $0x164] ss:$16 sps:$4 sm:$0xff]   ;;  %v9125_v48 = vld [vmem:[#allocation12 + $0x168] ss:$16 sps:$4 sm:$0xff]  }
 0x2e8   :  { %10600 = vst [vmem:[#allocation79_spill] sm:$0xff] %v9119_v7  ;;  %10603 = vst [vmem:[#allocation82_spill] sm:$0xff] %v9125_v48 }
 0x2ea   :  { %2547 = vmatpush2.bf16.msra.mxu0 %v9099_v31  ;;  %2588 = vmatpush2.bf16.msra.mxu1 %v9101_v46  ;;  %v9121_v31 = vld [vmem:[#allocation12 + $0x16c] ss:$16 sps:$4 sm:$0xff]   ;;  %v9123_v46 = vld [vmem:[#allocation12 + $0x160] ss:$16 sps:$4 sm:$0xff]  }
 0x2eb   :  { %2548 = vmatprep.subr.bf16.mxu0 %v9107_v37  ;;  %2589 = vmatprep.subr.bf16.mxu1 %v9109_v53  ;;  %10601 = vst [vmem:[#allocation80_spill] sm:$0xff] %v9121_v31  ;;  %10602 = vst [vmem:[#allocation81_spill] sm:$0xff] %v9123_v46  ;;  %v9131_v53 = vld [vmem:[#allocation12 + $0x144] ss:$16 sps:$4 sm:$0xff]   ;;  %v9137_v37 = vld [vmem:[#allocation12 + $0x148] ss:$16 sps:$4 sm:$0xff]  }
 0x2ec   :  { %10604 = vst [vmem:[#allocation83_spill] sm:$0xff] %v9131_v53  ;;  %10607 = vst [vmem:[#allocation86_spill] sm:$0xff] %v9137_v37 }
 0x2ee   :  { %2549 = vmatpush2.bf16.msra.mxu0 %v9111_v26  ;;  %2590 = vmatpush2.bf16.msra.mxu1 %v9113_v27  ;;  %v9133_v26 = vld [vmem:[#allocation12 + $0x14c] ss:$16 sps:$4 sm:$0xff]   ;;  %v9135_v27 = vld [vmem:[#allocation12 + $0x140] ss:$16 sps:$4 sm:$0xff]  }
 0x2ef   :  { %2550 = vmatprep.subr.bf16.mxu0 %v9119_v7  ;;  %2591 = vmatprep.subr.bf16.mxu1 %v9121_v31  ;;  %10605 = vst [vmem:[#allocation84_spill] sm:$0xff] %v9133_v26  ;;  %10606 = vst [vmem:[#allocation85_spill] sm:$0xff] %v9135_v27  ;;  %v9143_v31 = vld [vmem:[#allocation12 + $0x120] ss:$16 sps:$4 sm:$0xff]   ;;  %v9149_v7 = vld [vmem:[#allocation12 + $0x12c] ss:$16 sps:$4 sm:$0xff]  }
 0x2f0   :  { %10608 = vst [vmem:[#allocation87_spill] sm:$0xff] %v9143_v31  ;;  %10611 = vst [vmem:[#allocation90_spill] sm:$0xff] %v9149_v7 }
 0x2f2   :  { %2551 = vmatpush2.bf16.msra.mxu0 %v9123_v46  ;;  %2592 = vmatpush2.bf16.msra.mxu1 %v9125_v48  ;;  %v9145_v46 = vld [vmem:[#allocation12 + $0x124] ss:$16 sps:$4 sm:$0xff]   ;;  %v9147_v48 = vld [vmem:[#allocation12 + $0x128] ss:$16 sps:$4 sm:$0xff]  }
 0x2f3   :  { %2552 = vmatprep.subr.bf16.mxu0 %v9131_v53  ;;  %2593 = vmatprep.subr.bf16.mxu1 %v9133_v26  ;;  %10609 = vst [vmem:[#allocation88_spill] sm:$0xff] %v9145_v46  ;;  %10610 = vst [vmem:[#allocation89_spill] sm:$0xff] %v9147_v48 }
 0x2f6   :  { %2553 = vmatpush2.bf16.msra.mxu0 %v9135_v27  ;;  %2594 = vmatpush2.bf16.msra.mxu1 %v9137_v37  ;;  %v9159_v37 = vld [vmem:[#allocation12 + $0x100] ss:$16 sps:$4 sm:$0xff]   ;;  %v9161_v27 = vld [vmem:[#allocation12 + $0x108] ss:$16 sps:$4 sm:$0xff]  }
 0x2f7   :  { %2554 = vmatprep.subr.bf16.mxu0 %v9145_v46  ;;  %2595 = vmatprep.subr.bf16.mxu1 %v9149_v7  ;;  %10614 = vst [vmem:[#allocation93_spill] sm:$0xff] %v9159_v37  ;;  %10615 = vst [vmem:[#allocation94_spill] sm:$0xff] %v9161_v27 }
 0x2fa   :  { %2555 = vmatpush2.bf16.msra.mxu0 %v9143_v31  ;;  %2596 = vmatpush2.bf16.msra.mxu1 %v9147_v48 }
 0x2fb   :  { %2556 = vmatprep.subr.bf16.mxu0 %v9151_v43  ;;  %2597 = vmatprep.subr.bf16.mxu1 %v9154_v44 }
 0x2fe   :  { %2557 = vmatpush2.bf16.msra.mxu0 %v9159_v37  ;;  %2598 = vmatpush2.bf16.msra.mxu1 %v9161_v27 }
 0x2ff   :  { %2848 = vmatprep.subr.bf16.mxu0 %v8815_v4  ;;  %2889 = vmatprep.subr.bf16.mxu1 %v8817_v5 }
 0x32d   :  { %v1740_v7 = vpop.f32.mrf.mxu0  ;;  %v1781_v31 = vpop.f32.mrf.mxu1 }
 0x32e   :  { %v1741_v48 = vadd.f32 %v1740_v7, %v8825_v8  ;;  %v1782_v27 = vadd.f32 %v1781_v31, %v8832_v18 }
 0x32f   :  { %v1742_v46 = vpop.f32.mrf.mxu0  ;;  %v1783_v26 = vpop.f32.mrf.mxu1 }
 0x330   :  { %v1788_v53 = vmul.f32 0.5, %v1741_v48  ;;  %v1743_v30 = vadd.f32 %v1742_v46, %v8828_v10  ;;  %v1784_v4 = vadd.f32 %v1783_v26, %v8837_v41  ;;  %v1828_v26 = vmul.f32 %v8953_v42, %v10538_v29 }
 0x331   :  { %v1744_v43 = vpop.f32.mrf.mxu0  ;;  %v1785_v33 = vpop.f32.mrf.mxu1 }
 0x332   :  { %8183 = vtanh.f32 %v1788_v53  ;;  %v1792_v44 = vmul.f32 0.5, %v1743_v30  ;;  %v1797_v5 = vmul.f32 0.5, %v1784_v4 }
 0x333   :  { %v1745_v37 = vpop.f32.mrf.mxu0  ;;  %v1786_v36 = vpop.f32.mrf.mxu1 }
 0x334   :  { %8185 = vtanh.f32 %v1792_v44  ;;  %v1827_v36 = vmul.f32 %v8953_v42, %v10537_v21 }
 0x335   :  { %8187 = vtanh.f32 %v1782_v27  ;;  %v1832_v27 = vadd.f32 %v1828_v26, %v10541_v51 }
 0x336   :  { %8189 = vtanh.f32 %v1797_v5 }
 0x33f   :  { %v8184_v40 = vpop.eup %8183 }
 0x340   :  { %v1790_v7 = vmul.f32 0.5, %v8184_v40  ;;  %v1831_v40 = vadd.f32 %v1827_v36, %v10539_v47  ;;  %v1830_v36 = vmul.f32 %v8953_v42, %v10542_v3 }
 0x341   :  { %v8186_v8 = vpop.eup %8185 }
 0x342   :  { %v1791_v24 = vadd.f32 0.5, %v1790_v7  ;;  %v1794_v48 = vmul.f32 0.5, %v8186_v8  ;;  %v8188_v43 = vpop.eup %8187  ;;  %v1829_v8 = vmul.f32 %v8953_v42, %v10540_v49 }
 0x343   :  { %v8190_v30 = vpop.eup %8189 }
 0x344   :  { %v1795_v46 = vadd.f32 0.5, %v1794_v48  ;;  %v1802_v53 = vmul.f32 %v8188_v43, %v1791_v24  ;;  %v1833_v7 = vadd.f32 %v1829_v8, %v8742_v35 }
 0x346   :  { %v1801_v33 = vmul.f32 %v1795_v46, %v8841_v45 }
 0x348   :  { %v9176_v31 = vadd.f32 %v1802_v53, %v1801_v33  ;;  %v1799_v33 = vmul.f32 0.5, %v8190_v30 }
 0x34a   :  { %8191 = vtanh.f32 %v9176_v31 }
 0x34d   :  { %v2062_v44 = vpop.f32.mrf.mxu0  ;;  %v2103_v45 = vpop.f32.mrf.mxu1 }
 0x34e   :  { %v2110_v24 = vadd.f32 %v2062_v44, %v1831_v40  ;;  %v2112_v51 = vadd.f32 %v2103_v45, %v1833_v7  ;;  %v1834_v40 = vadd.f32 %v1830_v36, %v8751_v32  ;;  %v1800_v44 = vadd.f32 0.5, %v1799_v33 }
 0x34f   :  { %v2064_v37 = vpop.f32.mrf.mxu0  ;;  %v2105_v4 = vpop.f32.mrf.mxu1 }
 0x350   :  { %v2114_v5 = vmul.f32 0.5, %v2110_v24  ;;  %v2111_v48 = vadd.f32 %v2064_v37, %v1832_v27  ;;  %v2113_v8 = vadd.f32 %v2105_v4, %v1834_v40 }
 0x351   :  { %v2066_v46 = vpop.f32.mrf.mxu0  ;;  %v2107_v43 = vpop.f32.mrf.mxu1 }
 0x352   :  { %8193 = vtanh.f32 %v2114_v5  ;;  %v2118_v53 = vmul.f32 0.5, %v2111_v48  ;;  %v2123_v30 = vmul.f32 0.5, %v2113_v8 }
 0x353   :  { %v2067_v49 = vpop.f32.mrf.mxu0  ;;  %v2108_v26 = vpop.f32.mrf.mxu1 }
 0x354   :  { %8195 = vtanh.f32 %v2118_v53 }
 0x355   :  { %8197 = vtanh.f32 %v2112_v51 }
 0x356   :  { %8199 = vtanh.f32 %v2123_v30  ;;  %v10648_v30 = vld [vmem:[#allocation63_spill] sm:$0xff] }
 0x357   :  { %v8192_v47 = vpop.eup %8191 }
 0x358   :  { %v1805_v24 = vmul.f32 %v8192_v47, %v1800_v44 }
 0x35a   :  { %v1808_v27 = vmul.f32 %v8854_v16, %v1805_v24  ;;  %v1806_v37 = vpack.c.bf16 %v1805_v24, %v1805_v24 }
 0x35c   :  { %1809 = vadd.xlane.f32.xlu1 %v1808_v27  ;;  %1807 = vst [vmem:[#allocation4 + $0x4] sm:$0xf] %v1806_v37  ;;  %v10646_v27 = vld [vmem:[#allocation61_spill] sm:$0xff]  ;;  %v10647_v37 = vld [vmem:[#allocation62_spill] sm:$0xff] }
 0x35f   :  { %v8194_v5 = vpop.eup %8193 }
 0x360   :  { %v2116_v48 = vmul.f32 0.5, %v8194_v5  ;;  %v10649_v5 = vld [vmem:[#allocation64_spill] sm:$0xff] }
 0x361   :  { %v8196_v42 = vpop.eup %8195 }
 0x362   :  { %v2117_v49 = vadd.f32 0.5, %v2116_v48  ;;  %v2120_v46 = vmul.f32 0.5, %v8196_v42  ;;  %v8198_v7 = vpop.eup %8197  ;;  %v10650_v48 = vld [vmem:[#allocation65_spill] sm:$0xff]  ;;  %v10651_v42 = vld [vmem:[#allocation66_spill] sm:$0xff] }
 0x363   :  { %v8200_v47 = vpop.eup %8199 }
 0x364   :  { %v2121_v45 = vadd.f32 0.5, %v2120_v46  ;;  %v2128_v33 = vmul.f32 %v8198_v7, %v2117_v49  ;;  %v2125_v4 = vmul.f32 0.5, %v8200_v47  ;;  %v10652_v49 = vld [vmem:[#allocation67_spill] sm:$0xff]  ;;  %v10653_v46 = vld [vmem:[#allocation68_spill] sm:$0xff]  ;;  %v10655_v7 = vld [vmem:[#allocation70_spill] sm:$0xff] }
 0x365   :  { %v10658_v47 = vld [vmem:[#allocation73_spill] sm:$0xff] }
 0x366   :  { %v2127_v43 = vmul.f32 %v2121_v45, %v8858_v38  ;;  %v2126_v53 = vadd.f32 0.5, %v2125_v4  ;;  %v10616_v38 = vld [vmem:[#allocation24_spill] sm:$0xff]  ;;  %v10654_v45 = vld [vmem:[#allocation69_spill] sm:$0xff]  ;;  %v10659_v4 = vld [vmem:[#allocation74_spill] sm:$0xff] }
 0x368   :  { %v9191_v51 = vadd.f32 %v2128_v33, %v2127_v43  ;;  %v10656_v43 = vld [vmem:[#allocation71_spill] sm:$0xff]  ;;  %v10657_v33 = vld [vmem:[#allocation72_spill] sm:$0xff] }
 0x36a   :  { %8201 = vtanh.f32 %v9191_v51 }
 0x377   :  { %v8202_v36 = vpop.eup %8201 }
 0x378   :  { %v2131_v26 = vmul.f32 %v8202_v36, %v2126_v53  ;;  %v10660_v53 = vld [vmem:[#allocation75_spill] sm:$0xff]  ;;  %v10661_v36 = vld [vmem:[#allocation76_spill] sm:$0xff] }
 0x37a   :  { %v2132_v40 = vpack.c.bf16 %v2131_v26, %v2131_v26  ;;  %v10662_v26 = vld [vmem:[#allocation77_spill] sm:$0xff] }
 0x37c   :  { %2133 = vst [vmem:[#allocation4] sm:$0xf] %v2132_v40  ;;  %v10663_v40 = vld [vmem:[#allocation78_spill] sm:$0xff] }
 0x383   :  { %v2134_v44 = vld [vmem:[#allocation4] sm:$0xff] }
 0x384   :  { %v6991_v24 = vcombine.high %v2134_v44, %v2134_v44  ;;  %v6990_v8 = vcombine.low %v2134_v44, %v2134_v44  ;;  %v10664_v44 = vld [vmem:[#allocation79_spill] sm:$0xff] }
 0x386   :  { %2558 = vmatprep.mubr.bf16.mxu0 %v6991_v24  ;;  %2599 = vmatprep.mubr.bf16.mxu1 %v6991_v24  ;;  %v10665_v24 = vld [vmem:[#allocation80_spill] sm:$0xff] }
 0x387   :  { %2559 = vmatmul.mubr.bf16.vlgmr.msra.gmra.mxu0 %v6990_v8  ;;  %2600 = vmatmul.mubr.bf16.vlgmr.msra.gmra.mxu1 %v6990_v8  ;;  %v10666_v8 = vld [vmem:[#allocation81_spill] sm:$0xff] }
 0x388   :  { %2849 = vmatpush1.bf16.msra.mxu0 %v8861_v50  ;;  %2890 = vmatpush1.bf16.msra.mxu1 %v8863_v52  ;;  %v10617_v50 = vld [vmem:[#allocation25_spill] sm:$0xff]  ;;  %v2655_v52 = vld [vmem:[#allocation4] sm:$0xf] }
 0x389   :  { %2850 = vmatprep.subr.bf16.mxu0 %v8865_v39  ;;  %2891 = vmatprep.subr.bf16.mxu1 %v8867_v54  ;;  %v10618_v39 = vld [vmem:[#allocation27_spill] sm:$0xff]  ;;  %v10619_v54 = vld [vmem:[#allocation28_spill] sm:$0xff] }
 0x38a   :  { %2880 = vmatprep.mubr.bf16.mxu0 %v10516_v34  ;;  %2921 = vmatprep.mubr.bf16.mxu1 %v10516_v34 }
 0x38c   :  { %2851 = vmatpush1.bf16.msra.mxu0 %v8871_v55  ;;  %2892 = vmatpush1.bf16.msra.mxu1 %v8873_v56  ;;  %v10620_v55 = vld [vmem:[#allocation30_spill] sm:$0xff]  ;;  %v10621_v56 = vld [vmem:[#allocation31_spill] sm:$0xff] }
 0x38d   :  { %2852 = vmatprep.subr.bf16.mxu0 %v8877_v57  ;;  %2893 = vmatprep.subr.bf16.mxu1 %v8879_v58  ;;  %v10622_v57 = vld [vmem:[#allocation32_spill] sm:$0xff]  ;;  %v10623_v58 = vld [vmem:[#allocation33_spill] sm:$0xff] }
 0x390   :  { %2853 = vmatpush1.bf16.msra.mxu0 %v8885_v59  ;;  %2894 = vmatpush1.bf16.msra.mxu1 %v8887_v60  ;;  %v10624_v59 = vld [vmem:[#allocation36_spill] sm:$0xff]  ;;  %v10625_v60 = vld [vmem:[#allocation37_spill] sm:$0xff] }
 0x391   :  { %2854 = vmatprep.subr.bf16.mxu0 %v8891_v61  ;;  %2895 = vmatprep.subr.bf16.mxu1 %v8893_v62  ;;  %v10626_v61 = vld [vmem:[#allocation39_spill] sm:$0xff]  ;;  %v10627_v62 = vld [vmem:[#allocation38_spill] sm:$0xff] }
 0x394   :  { %2855 = vmatpush1.bf16.msra.mxu0 %v8897_v63  ;;  %2896 = vmatpush1.bf16.msra.mxu1 %v8899_v0  ;;  %v10628_v63 = vld [vmem:[#allocation44_spill] sm:$0xff]  ;;  %v10629_v0 = vld [vmem:[#allocation35_spill] sm:$0xff] }
 0x395   :  { %2856 = vmatprep.subr.bf16.mxu0 %v8903_v2  ;;  %2897 = vmatprep.subr.bf16.mxu1 %v8905_v6  ;;  %v10630_v2 = vld [vmem:[#allocation45_spill] sm:$0xff]  ;;  %v10631_v6 = vld [vmem:[#allocation46_spill] sm:$0xff] }
 0x398   :  { %2857 = vmatpush1.bf16.msra.mxu0 %v8909_v9  ;;  %2898 = vmatpush1.bf16.msra.mxu1 %v8911_v11  ;;  %v10632_v9 = vld [vmem:[#allocation47_spill] sm:$0xff]  ;;  %v10633_v11 = vld [vmem:[#allocation48_spill] sm:$0xff] }
 0x399   :  { %2858 = vmatprep.subr.bf16.mxu0 %v8915_v12  ;;  %2899 = vmatprep.subr.bf16.mxu1 %v8917_v13  ;;  %v10634_v12 = vld [vmem:[#allocation49_spill] sm:$0xff]  ;;  %v10635_v13 = vld [vmem:[#allocation50_spill] sm:$0xff] }
 0x39c   :  { %2859 = vmatpush1.bf16.msra.mxu0 %v8921_v14  ;;  %2900 = vmatpush1.bf16.msra.mxu1 %v8923_v15  ;;  %v10636_v14 = vld [vmem:[#allocation51_spill] sm:$0xff]  ;;  %v10637_v15 = vld [vmem:[#allocation52_spill] sm:$0xff] }
 0x39d   :  { %2860 = vmatprep.subr.bf16.mxu0 %v8927_v17  ;;  %2901 = vmatprep.subr.bf16.mxu1 %v8929_v19  ;;  %v10638_v17 = vld [vmem:[#allocation53_spill] sm:$0xff]  ;;  %v10639_v19 = vld [vmem:[#allocation54_spill] sm:$0xff] }
 0x3a0   :  { %2861 = vmatpush1.bf16.msra.mxu0 %v8933_v20  ;;  %2902 = vmatpush1.bf16.msra.mxu1 %v8935_v25  ;;  %v10640_v20 = vld [vmem:[#allocation55_spill] sm:$0xff]  ;;  %v10641_v25 = vld [vmem:[#allocation56_spill] sm:$0xff] }
 0x3a1   :  { %2862 = vmatprep.subr.bf16.mxu0 %v8939_v28  ;;  %2903 = vmatprep.subr.bf16.mxu1 %v8941_v1  ;;  %v10642_v28 = vld [vmem:[#allocation57_spill] sm:$0xff]  ;;  %v10643_v1 = vld [vmem:[#allocation58_spill] sm:$0xff] }
 0x3a4   :  { %2863 = vmatpush1.bf16.msra.mxu0 %v8945_v22  ;;  %2904 = vmatpush1.bf16.msra.mxu1 %v8947_v23  ;;  %v10644_v22 = vld [vmem:[#allocation59_spill] sm:$0xff]  ;;  %v10645_v23 = vld [vmem:[#allocation60_spill] sm:$0xff] }
 0x3a5   :  { %3346 = vmatprep.subr.bf16.mxu0 %v10616_v38  ;;  %3387 = vmatprep.subr.bf16.mxu1 %v10617_v50  ;;  %v10667_v38 = vld [vmem:[#allocation82_spill] sm:$0xff]  ;;  %v10668_v50 = vld [vmem:[#allocation83_spill] sm:$0xff] }
 0x3a7   :  { %2881 = vmatmul.mubr.bf16.vlgmr.msra.gmra.mxu0 %v2655_v52  ;;  %2922 = vmatmul.mubr.bf16.vlgmr.msra.gmra.mxu1 %v2655_v52  ;;  %v10669_v52 = vld [vmem:[#allocation84_spill] sm:$0xff] }
 0x3a8   :  { %3347 = vmatpush1.bf16.msra.mxu0 %v10618_v39  ;;  %3388 = vmatpush1.bf16.msra.mxu1 %v10619_v54  ;;  %v10670_v39 = vld [vmem:[#allocation85_spill] sm:$0xff]  ;;  %v10671_v54 = vld [vmem:[#allocation86_spill] sm:$0xff] }
 0x3a9   :  { %3348 = vmatprep.subr.bf16.mxu0 %v10620_v55  ;;  %3389 = vmatprep.subr.bf16.mxu1 %v10621_v56  ;;  %v10672_v55 = vld [vmem:[#allocation88_spill] sm:$0xff]  ;;  %v10673_v56 = vld [vmem:[#allocation90_spill] sm:$0xff] }
 0x3ac   :  { %3349 = vmatpush1.bf16.msra.mxu0 %v10622_v57  ;;  %3390 = vmatpush1.bf16.msra.mxu1 %v10623_v58  ;;  %v10674_v57 = vld [vmem:[#allocation87_spill] sm:$0xff]  ;;  %v10675_v58 = vld [vmem:[#allocation89_spill] sm:$0xff] }
 0x3ad   :  { %3350 = vmatprep.subr.bf16.mxu0 %v10624_v59  ;;  %3391 = vmatprep.subr.bf16.mxu1 %v10625_v60  ;;  %v10676_v59 = vld [vmem:[#allocation91_spill] sm:$0xff]  ;;  %v10677_v60 = vld [vmem:[#allocation92_spill] sm:$0xff] }
 0x3b0   :  { %3351 = vmatpush1.bf16.msra.mxu0 %v10626_v61  ;;  %3392 = vmatpush1.bf16.msra.mxu1 %v10627_v62  ;;  %v10678_v61 = vld [vmem:[#allocation93_spill] sm:$0xff]  ;;  %v10679_v62 = vld [vmem:[#allocation94_spill] sm:$0xff] }
 0x3b1   :  { %3352 = vmatprep.subr.bf16.mxu0 %v10628_v63  ;;  %3393 = vmatprep.subr.bf16.mxu1 %v10629_v0  ;;  %v10680_v0 = vld [vmem:[#allocation29_spill] sm:$0xff] }
 0x3b4   :  { %3353 = vmatpush1.bf16.msra.mxu0 %v10630_v2  ;;  %3394 = vmatpush1.bf16.msra.mxu1 %v10631_v6  ;;  %v10681_v6 = vld [vmem:[#allocation34_spill] sm:$0xff] }
 0x3b5   :  { %3354 = vmatprep.subr.bf16.mxu0 %v10632_v9  ;;  %3395 = vmatprep.subr.bf16.mxu1 %v10633_v11  ;;  %v9293_v11 = vld [vmem:[#allocation11 + $0xe4] ss:$16 sps:$4 sm:$0xff]  }
 0x3b8   :  { %3355 = vmatpush1.bf16.msra.mxu0 %v10634_v12  ;;  %3396 = vmatpush1.bf16.msra.mxu1 %v10635_v13  ;;  %v9295_v12 = vld [vmem:[#allocation11 + $0xec] ss:$16 sps:$4 sm:$0xff]  }
 0x3b9   :  { %3356 = vmatprep.subr.bf16.mxu0 %v10636_v14  ;;  %3397 = vmatprep.subr.bf16.mxu1 %v10637_v15  ;;  %v10682_v15 = vld [vmem:[#allocation19_spill] sm:$0xff] }
 0x3bc   :  { %3357 = vmatpush1.bf16.msra.mxu0 %v10638_v17  ;;  %3398 = vmatpush1.bf16.msra.mxu1 %v10639_v19 }
 0x3bd   :  { %3358 = vmatprep.subr.bf16.mxu0 %v10640_v20  ;;  %3399 = vmatprep.subr.bf16.mxu1 %v10641_v25 }
 0x3c0   :  { %3359 = vmatpush1.bf16.msra.mxu0 %v10642_v28  ;;  %3400 = vmatpush1.bf16.msra.mxu1 %v10643_v1 }
 0x3c1   :  { %3360 = vmatprep.subr.bf16.mxu0 %v10644_v22  ;;  %3401 = vmatprep.subr.bf16.mxu1 %v10645_v23 }
 0x3c4   :  { %3361 = vmatpush1.bf16.msra.mxu0 %v10646_v27  ;;  %3402 = vmatpush1.bf16.msra.mxu1 %v10647_v37 }
 0x3c5   :  { %3362 = vmatprep.subr.bf16.mxu0 %v10648_v30  ;;  %3403 = vmatprep.subr.bf16.mxu1 %v10649_v5 }
 0x3c8   :  { %3363 = vmatpush2.bf16.msra.mxu0 %v10650_v48  ;;  %3404 = vmatpush2.bf16.msra.mxu1 %v10651_v42 }
 0x3c9   :  { %3364 = vmatprep.subr.bf16.mxu0 %v10652_v49  ;;  %3405 = vmatprep.subr.bf16.mxu1 %v10653_v46 }
 0x3cc   :  { %3365 = vmatpush2.bf16.msra.mxu0 %v10654_v45  ;;  %3406 = vmatpush2.bf16.msra.mxu1 %v10655_v7 }
 0x3cd   :  { %3366 = vmatprep.subr.bf16.mxu0 %v10656_v43  ;;  %3407 = vmatprep.subr.bf16.mxu1 %v10657_v33 }
 0x3d0   :  { %3367 = vmatpush2.bf16.msra.mxu0 %v10658_v47  ;;  %3408 = vmatpush2.bf16.msra.mxu1 %v10659_v4 }
 0x3d1   :  { %3368 = vmatprep.subr.bf16.mxu0 %v10660_v53  ;;  %3409 = vmatprep.subr.bf16.mxu1 %v10661_v36  ;;  %v10683_v53 = vld [vmem:[#allocation20_spill] sm:$0xff] }
 0x3d2   :  { %v2647_v36 = vmul.f32 %v10683_v53, %v10537_v21 }
 0x3d4   :  { %3369 = vmatpush2.bf16.msra.mxu0 %v10662_v26  ;;  %3410 = vmatpush2.bf16.msra.mxu1 %v10663_v40  ;;  %v2648_v40 = vmul.f32 %v10683_v53, %v10538_v29 }
 0x3d5   :  { %3370 = vmatprep.subr.bf16.mxu0 %v10664_v44  ;;  %3411 = vmatprep.subr.bf16.mxu1 %v10665_v24  ;;  %v10684_v44 = vld [vmem:[#allocation41_spill] sm:$0xff] }
 0x3d6   :  { %v2651_v24 = vadd.f32 %v2647_v36, %v10684_v44 }
 0x3d8   :  { %3371 = vmatpush2.bf16.msra.mxu0 %v10666_v8  ;;  %3412 = vmatpush2.bf16.msra.mxu1 %v10667_v38  ;;  %v10685_v8 = vld [vmem:[#allocation42_spill] sm:$0xff] }
 0x3d9   :  { %3372 = vmatprep.subr.bf16.mxu0 %v10668_v50  ;;  %3413 = vmatprep.subr.bf16.mxu1 %v10669_v52  ;;  %v2649_v38 = vmul.f32 %v10683_v53, %v10685_v8  ;;  %v10686_v50 = vld [vmem:[#allocation43_spill] sm:$0xff] }
 0x3da   :  { %v2652_v52 = vadd.f32 %v2648_v40, %v10686_v50 }
 0x3dc   :  { %3373 = vmatpush2.bf16.msra.mxu0 %v10670_v39  ;;  %3414 = vmatpush2.bf16.msra.mxu1 %v10671_v54 }
 0x3dd   :  { %3374 = vmatprep.subr.bf16.mxu0 %v10672_v55  ;;  %3415 = vmatprep.subr.bf16.mxu1 %v10673_v56 }
 0x3e0   :  { %3375 = vmatpush2.bf16.msra.mxu0 %v10674_v57  ;;  %3416 = vmatpush2.bf16.msra.mxu1 %v10675_v58 }
 0x3e1   :  { %3376 = vmatprep.subr.bf16.mxu0 %v10676_v59  ;;  %3417 = vmatprep.subr.bf16.mxu1 %v10677_v60  ;;  %v2653_v59 = vadd.f32 %v2649_v38, %v8742_v35  ;;  %v9324_v38 = vld [vmem:[#allocation11 + $0xe0] ss:$16 sps:$4 sm:$0xff]  }
 0x3e4   :  { %3377 = vmatpush2.bf16.msra.mxu0 %v10678_v61  ;;  %3418 = vmatpush2.bf16.msra.mxu1 %v10679_v62 }
 0x3e5   :  { %v1810_v63 = vpop.xlane.xlu1 %1809  ;;  %3668 = vmatprep.subr.bf16.mxu0 %v9293_v11  ;;  %3709 = vmatprep.subr.bf16.mxu1 %v9295_v12 }
 0x3e6   :  { %v1811_v2 = vadd.f32 %v1810_v63, %v10680_v0 }
 0x3e8   :  { %v1816_v9 = vrot.slane %v1811_v2, %v10681_v6 }
 0x3ea   :  { %1818 = vst.msk [vmem:[#allocation14 + $0x1] sm:$0x1] %vm997_vm0, %v1816_v9  ;;  %v2650_v9 = vmul.f32 %v10683_v53, %v10542_v3 }
 0x447   :  { %v2560_v13 = vpop.f32.mrf.mxu0  ;;  %v2601_v14 = vpop.f32.mrf.mxu1 }
 0x448   :  { %v2561_v17 = vadd.f32 %v2560_v13, %v10682_v15  ;;  %v2602_v30 = vadd.f32 %v2601_v14, %v8832_v18 }
 0x449   :  { %v2562_v19 = vpop.f32.mrf.mxu0  ;;  %v2603_v20 = vpop.f32.mrf.mxu1 }
 0x44a   :  { %v2608_v25 = vmul.f32 0.5, %v2561_v17  ;;  %v2563_v28 = vadd.f32 %v2562_v19, %v8828_v10  ;;  %v2604_v5 = vadd.f32 %v2603_v20, %v8837_v41  ;;  %v2654_v19 = vadd.f32 %v2650_v9, %v8751_v32  ;;  %v9368_v9 = vld [vmem:[#allocation11 + $0x6c] ss:$16 sps:$4 sm:$0xff]  }
 0x44b   :  { %v2564_v1 = vpop.f32.mrf.mxu0  ;;  %v2605_v22 = vpop.f32.mrf.mxu1 }
 0x44c   :  { %8203 = vtanh.f32 %v2608_v25  ;;  %v2612_v23 = vmul.f32 0.5, %v2563_v28  ;;  %v2617_v48 = vmul.f32 0.5, %v2604_v5 }
 0x44d   :  { %v2565_v27 = vpop.f32.mrf.mxu0  ;;  %v2606_v37 = vpop.f32.mrf.mxu1 }
 0x44e   :  { %8205 = vtanh.f32 %v2612_v23 }
 0x44f   :  { %8207 = vtanh.f32 %v2602_v30 }
 0x450   :  { %8209 = vtanh.f32 %v2617_v48 }
 0x459   :  { %v8204_v42 = vpop.eup %8203 }
 0x45a   :  { %v2610_v49 = vmul.f32 0.5, %v8204_v42 }
 0x45b   :  { %v8206_v46 = vpop.eup %8205 }
 0x45c   :  { %v2611_v45 = vadd.f32 0.5, %v2610_v49  ;;  %v2614_v7 = vmul.f32 0.5, %v8206_v46  ;;  %v8208_v33 = vpop.eup %8207 }
 0x45d   :  { %v8210_v55 = vpop.eup %8209 }
 0x45e   :  { %v2615_v43 = vadd.f32 0.5, %v2614_v7  ;;  %v2622_v4 = vmul.f32 %v8208_v33, %v2611_v45  ;;  %v2619_v63 = vmul.f32 0.5, %v8210_v55  ;;  %v9336_v55 = vld [vmem:[#allocation11 + $0xc8] ss:$16 sps:$4 sm:$0xff]  }
 0x460   :  { %v2621_v47 = vmul.f32 %v2615_v43, %v9176_v31  ;;  %v2620_v20 = vadd.f32 0.5, %v2619_v63  ;;  %v9362_v63 = vld [vmem:[#allocation11 + $0x88] ss:$16 sps:$4 sm:$0xff]  }
 0x462   :  { %v9306_v26 = vadd.f32 %v2622_v4, %v2621_v47 }
 0x464   :  { %8211 = vtanh.f32 %v9306_v26 }
 0x467   :  { %v2882_v39 = vpop.f32.mrf.mxu0  ;;  %v2923_v31 = vpop.f32.mrf.mxu1 }
 0x468   :  { %v2930_v54 = vadd.f32 %v2882_v39, %v2651_v24  ;;  %v2932_v17 = vadd.f32 %v2923_v31, %v2653_v59  ;;  %v9330_v31 = vld [vmem:[#allocation11 + $0xcc] ss:$16 sps:$4 sm:$0xff]   ;;  %v9350_v59 = vld [vmem:[#allocation11 + $0xa8] ss:$16 sps:$4 sm:$0xff]  }
 0x469   :  { %v2884_v56 = vpop.f32.mrf.mxu0  ;;  %v2925_v57 = vpop.f32.mrf.mxu1 }
 0x46a   :  { %v2934_v58 = vmul.f32 0.5, %v2930_v54  ;;  %v2931_v60 = vadd.f32 %v2884_v56, %v2652_v52  ;;  %v2933_v1 = vadd.f32 %v2925_v57, %v2654_v19  ;;  %v9326_v52 = vld [vmem:[#allocation11 + $0xe8] ss:$16 sps:$4 sm:$0xff]   ;;  %v9334_v54 = vld [vmem:[#allocation11 + $0xc0] ss:$16 sps:$4 sm:$0xff]  }
 0x46b   :  { %v2886_v61 = vpop.f32.mrf.mxu0  ;;  %v2927_v62 = vpop.f32.mrf.mxu1  ;;  %v9340_v56 = vld [vmem:[#allocation11 + $0xa4] ss:$16 sps:$4 sm:$0xff]   ;;  %v9342_v57 = vld [vmem:[#allocation11 + $0xac] ss:$16 sps:$4 sm:$0xff]  }
 0x46c   :  { %8213 = vtanh.f32 %v2934_v58  ;;  %v2938_v2 = vmul.f32 0.5, %v2931_v60  ;;  %v2943_v27 = vmul.f32 0.5, %v2933_v1  ;;  %v9348_v58 = vld [vmem:[#allocation11 + $0xa0] ss:$16 sps:$4 sm:$0xff]   ;;  %v9354_v60 = vld [vmem:[#allocation11 + $0x84] ss:$16 sps:$4 sm:$0xff]  }
 0x46d   :  { %v2887_v13 = vpop.f32.mrf.mxu0  ;;  %v2928_v14 = vpop.f32.mrf.mxu1  ;;  %v9356_v61 = vld [vmem:[#allocation11 + $0x8c] ss:$16 sps:$4 sm:$0xff]   ;;  %v9360_v62 = vld [vmem:[#allocation11 + $0x80] ss:$16 sps:$4 sm:$0xff]  }
 0x46e   :  { %8215 = vtanh.f32 %v2938_v2  ;;  %v9366_v2 = vld [vmem:[#allocation11 + $0x64] ss:$16 sps:$4 sm:$0xff]   ;;  %v9372_v13 = vld [vmem:[#allocation11 + $0x60] ss:$16 sps:$4 sm:$0xff]   ;;  %v9374_v14 = vld [vmem:[#allocation11 + $0x68] ss:$16 sps:$4 sm:$0xff]  }
 0x46f   :  { %8217 = vtanh.f32 %v2932_v17  ;;  %v9378_v17 = vld [vmem:[#allocation11 + $0x44] ss:$16 sps:$4 sm:$0xff]   ;;  %v9380_v19 = vld [vmem:[#allocation11 + $0x4c] ss:$16 sps:$4 sm:$0xff]  }
 0x470   :  { %8219 = vtanh.f32 %v2943_v27  ;;  %v9392_v1 = vld [vmem:[#allocation11 + $0x2c] ss:$16 sps:$4 sm:$0xff]   ;;  %v9402_v27 = vld [vmem:[#allocation11 + $0x4] ss:$16 sps:$4 sm:$0xff]  }
 0x471   :  { %v8212_v25 = vpop.eup %8211 }
 0x472   :  { %v2625_v28 = vmul.f32 %v8212_v25, %v2620_v20  ;;  %v9384_v20 = vld [vmem:[#allocation11 + $0x40] ss:$16 sps:$4 sm:$0xff]   ;;  %v9386_v25 = vld [vmem:[#allocation11 + $0x48] ss:$16 sps:$4 sm:$0xff]  }
 0x474   :  { %v2628_v22 = vmul.f32 %v8854_v16, %v2625_v28  ;;  %v2626_v23 = vpack.c.bf16 %v2625_v28, %v2625_v28  ;;  %v9390_v28 = vld [vmem:[#allocation11 + $0x24] ss:$16 sps:$4 sm:$0xff]  }
 0x476   :  { %2629 = vadd.xlane.f32.xlu0 %v2628_v22  ;;  %2627 = vst [vmem:[#allocation4 + $0x4] sm:$0xf] %v2626_v23  ;;  %v9396_v22 = vld [vmem:[#allocation11 + $0x20] ss:$16 sps:$4 sm:$0xff]   ;;  %v9398_v23 = vld [vmem:[#allocation11 + $0x28] ss:$16 sps:$4 sm:$0xff]  }
 0x479   :  { %v8214_v37 = vpop.eup %8213 }
 0x47a   :  { %v2936_v30 = vmul.f32 0.5, %v8214_v37  ;;  %v9404_v37 = vld [vmem:[#allocation11 + $0xc] ss:$16 sps:$4 sm:$0xff]  }
 0x47b   :  { %v8216_v5 = vpop.eup %8215 }
 0x47c   :  { %v2937_v48 = vadd.f32 0.5, %v2936_v30  ;;  %v2940_v42 = vmul.f32 0.5, %v8216_v5  ;;  %v8218_v46 = vpop.eup %8217  ;;  %v9408_v30 = vld [vmem:[#allocation11] ss:$16 sps:$4 sm:$0xff]   ;;  %v9410_v5 = vld [vmem:[#allocation11 + $0x8] ss:$16 sps:$4 sm:$0xff]  }
 0x47d   :  { %v8220_v16 = vpop.eup %8219 }
 0x47e   :  { %v2941_v49 = vadd.f32 0.5, %v2940_v42  ;;  %v2948_v7 = vmul.f32 %v8218_v46, %v2937_v48  ;;  %v2945_v33 = vmul.f32 0.5, %v8220_v16  ;;  %v9416_v42 = vld [vmem:[#allocation12 + $0xe4] ss:$16 sps:$4 sm:$0xff]   ;;  %v9420_v46 = vld [vmem:[#allocation12 + $0xe0] ss:$16 sps:$4 sm:$0xff]  }
 0x47f   :  { %10687 = vst [vmem:[#allocation24_spill] sm:$0xff] %v9420_v46  ;;  %v9430_v16 = vld [vmem:[#allocation12 + $0xcc] ss:$16 sps:$4 sm:$0xff]  }
 0x480   :  { %v2947_v45 = vmul.f32 %v2941_v49, %v9191_v51  ;;  %v2946_v47 = vadd.f32 0.5, %v2945_v33  ;;  %v9328_v51 = vld [vmem:[#allocation11 + $0xc4] ss:$16 sps:$4 sm:$0xff]   ;;  %v9418_v49 = vld [vmem:[#allocation12 + $0xec] ss:$16 sps:$4 sm:$0xff]   ;;  %10690 = vst [vmem:[#allocation28_spill] sm:$0xff] %v9430_v16 }
 0x481   :  { %v9432_v33 = vld [vmem:[#allocation12 + $0xc0] ss:$16 sps:$4 sm:$0xff]  }
 0x482   :  { %v9321_v43 = vadd.f32 %v2948_v7, %v2947_v45  ;;  %v9422_v45 = vld [vmem:[#allocation12 + $0xe8] ss:$16 sps:$4 sm:$0xff]   ;;  %v9428_v7 = vld [vmem:[#allocation12 + $0xc4] ss:$16 sps:$4 sm:$0xff]   ;;  %10691 = vst [vmem:[#allocation30_spill] sm:$0xff] %v9432_v33 }
 0x483   :  { %10688 = vst [vmem:[#allocation25_spill] sm:$0xff] %v9422_v45  ;;  %10689 = vst [vmem:[#allocation27_spill] sm:$0xff] %v9428_v7 }
 0x484   :  { %8221 = vtanh.f32 %v9321_v43 }
 0x491   :  { %v8222_v4 = vpop.eup %8221 }
 0x492   :  { %v2951_v53 = vmul.f32 %v8222_v4, %v2946_v47  ;;  %v9434_v47 = vld [vmem:[#allocation12 + $0xc8] ss:$16 sps:$4 sm:$0xff]  }
 0x493   :  { %10692 = vst [vmem:[#allocation31_spill] sm:$0xff] %v9434_v47 }
 0x494   :  { %v2952_v36 = vpack.c.bf16 %v2951_v53, %v2951_v53 }
 0x496   :  { %2953 = vst [vmem:[#allocation4] sm:$0xf] %v2952_v36  ;;  %v9441_v36 = vld [vmem:[#allocation12 + $0xa4] ss:$16 sps:$4 sm:$0xff]  }
 0x497   :  { %10693 = vst [vmem:[#allocation32_spill] sm:$0xff] %v9441_v36 }
 0x49d   :  { %v2954_v40 = vld [vmem:[#allocation4] sm:$0xff] }
 0x49e   :  { %v7090_v24 = vcombine.high %v2954_v40, %v2954_v40  ;;  %v7089_v39 = vcombine.low %v2954_v40, %v2954_v40  ;;  %v3475_v48 = vld [vmem:[#allocation4] sm:$0xf] }
 0x49f   :  { %v9443_v40 = vld [vmem:[#allocation12 + $0xac] ss:$16 sps:$4 sm:$0xff]  }
 0x4a0   :  { %3378 = vmatprep.mubr.bf16.mxu0 %v7090_v24  ;;  %3419 = vmatprep.mubr.bf16.mxu1 %v7090_v24  ;;  %10694 = vst [vmem:[#allocation33_spill] sm:$0xff] %v9443_v40  ;;  %v9445_v24 = vld [vmem:[#allocation12 + $0xa0] ss:$16 sps:$4 sm:$0xff]  }
 0x4a1   :  { %3379 = vmatmul.mubr.bf16.vlgmr.msra.gmra.mxu0 %v7089_v39  ;;  %3420 = vmatmul.mubr.bf16.vlgmr.msra.gmra.mxu1 %v7089_v39  ;;  %10695 = vst [vmem:[#allocation36_spill] sm:$0xff] %v9445_v24  ;;  %v9447_v39 = vld [vmem:[#allocation12 + $0xa8] ss:$16 sps:$4 sm:$0xff]  }
 0x4a2   :  { %3669 = vmatpush1.bf16.msra.mxu0 %v9324_v38  ;;  %3710 = vmatpush1.bf16.msra.mxu1 %v9326_v52  ;;  %10696 = vst [vmem:[#allocation37_spill] sm:$0xff] %v9447_v39 }
 0x4a3   :  { %3670 = vmatprep.subr.bf16.mxu0 %v9328_v51  ;;  %3711 = vmatprep.subr.bf16.mxu1 %v9330_v31 }
 0x4a4   :  { %3700 = vmatprep.mubr.bf16.mxu0 %v10516_v34  ;;  %3741 = vmatprep.mubr.bf16.mxu1 %v10516_v34 }
 0x4a6   :  { %3671 = vmatpush1.bf16.msra.mxu0 %v9334_v54  ;;  %3712 = vmatpush1.bf16.msra.mxu1 %v9336_v55 }
 0x4a7   :  { %3672 = vmatprep.subr.bf16.mxu0 %v9340_v56  ;;  %3713 = vmatprep.subr.bf16.mxu1 %v9342_v57 }
 0x4aa   :  { %3673 = vmatpush1.bf16.msra.mxu0 %v9348_v58  ;;  %3714 = vmatpush1.bf16.msra.mxu1 %v9350_v59 }
 0x4ab   :  { %3674 = vmatprep.subr.bf16.mxu0 %v9354_v60  ;;  %3715 = vmatprep.subr.bf16.mxu1 %v9356_v61 }
 0x4ae   :  { %3675 = vmatpush1.bf16.msra.mxu0 %v9360_v62  ;;  %3716 = vmatpush1.bf16.msra.mxu1 %v9362_v63 }
 0x4af   :  { %3676 = vmatprep.subr.bf16.mxu0 %v9366_v2  ;;  %3717 = vmatprep.subr.bf16.mxu1 %v9368_v9 }
 0x4b2   :  { %3677 = vmatpush1.bf16.msra.mxu0 %v9372_v13  ;;  %3718 = vmatpush1.bf16.msra.mxu1 %v9374_v14 }
 0x4b3   :  { %3678 = vmatprep.subr.bf16.mxu0 %v9378_v17  ;;  %3719 = vmatprep.subr.bf16.mxu1 %v9380_v19 }
 0x4b6   :  { %3679 = vmatpush1.bf16.msra.mxu0 %v9384_v20  ;;  %3720 = vmatpush1.bf16.msra.mxu1 %v9386_v25 }
 0x4b7   :  { %3680 = vmatprep.subr.bf16.mxu0 %v9390_v28  ;;  %3721 = vmatprep.subr.bf16.mxu1 %v9392_v1 }
 0x4ba   :  { %3681 = vmatpush1.bf16.msra.mxu0 %v9396_v22  ;;  %3722 = vmatpush1.bf16.msra.mxu1 %v9398_v23 }
 0x4bb   :  { %3682 = vmatprep.subr.bf16.mxu0 %v9402_v27  ;;  %3723 = vmatprep.subr.bf16.mxu1 %v9404_v37 }
 0x4be   :  { %3683 = vmatpush1.bf16.msra.mxu0 %v9408_v30  ;;  %3724 = vmatpush1.bf16.msra.mxu1 %v9410_v5 }
 0x4bf   :  { %4166 = vmatprep.subr.bf16.mxu0 %v9416_v42  ;;  %4207 = vmatprep.subr.bf16.mxu1 %v9418_v49 }
 0x4c1   :  { %3701 = vmatmul.mubr.bf16.vlgmr.msra.gmra.mxu0 %v3475_v48  ;;  %3742 = vmatmul.mubr.bf16.vlgmr.msra.gmra.mxu1 %v3475_v48 }
 0x4c2   :  { %4167 = vmatpush1.bf16.msra.mxu0 %v9420_v46  ;;  %4208 = vmatpush1.bf16.msra.mxu1 %v9422_v45 }
 0x4c3   :  { %4168 = vmatprep.subr.bf16.mxu0 %v9428_v7  ;;  %4209 = vmatprep.subr.bf16.mxu1 %v9430_v16 }
 0x4c6   :  { %4169 = vmatpush1.bf16.msra.mxu0 %v9432_v33  ;;  %4210 = vmatpush1.bf16.msra.mxu1 %v9434_v47  ;;  %v9459_v47 = vld [vmem:[#allocation12 + $0x80] ss:$16 sps:$4 sm:$0xff]   ;;  %v9461_v33 = vld [vmem:[#allocation12 + $0x88] ss:$16 sps:$4 sm:$0xff]  }
 0x4c7   :  { %4170 = vmatprep.subr.bf16.mxu0 %v9441_v36  ;;  %4211 = vmatprep.subr.bf16.mxu1 %v9443_v40  ;;  %10699 = vst [vmem:[#allocation44_spill] sm:$0xff] %v9459_v47  ;;  %10700 = vst [vmem:[#allocation35_spill] sm:$0xff] %v9461_v33  ;;  %v9598_v40 = vld [vmem:[#allocation12 + $0x10c] ss:$16 sps:$4 sm:$0xff]  }
 0x4c8   :  { %10746 = vst [vmem:[#allocation89_spill] sm:$0xff] %v9598_v40 }
 0x4ca   :  { %4171 = vmatpush1.bf16.msra.mxu0 %v9445_v24  ;;  %4212 = vmatpush1.bf16.msra.mxu1 %v9447_v39  ;;  %v9473_v39 = vld [vmem:[#allocation12 + $0x68] ss:$16 sps:$4 sm:$0xff]   ;;  %v9595_v24 = vld [vmem:[#allocation12 + $0x104] ss:$16 sps:$4 sm:$0xff]  }
 0x4cb   :  { %10704 = vst [vmem:[#allocation48_spill] sm:$0xff] %v9473_v39  ;;  %10745 = vst [vmem:[#allocation87_spill] sm:$0xff] %v9595_v24 }
 0x4ff   :  { %v2630_v4 = vpop.xlane.xlu0 %2629 }
 0x500   :  { %v2631_v53 = vadd.f32 %v2630_v4, %v10680_v0  ;;  %v9455_v4 = vld [vmem:[#allocation12 + $0x84] ss:$16 sps:$4 sm:$0xff]   ;;  %v9457_v0 = vld [vmem:[#allocation12 + $0x8c] ss:$16 sps:$4 sm:$0xff]  }
 0x501   :  { %10697 = vst [vmem:[#allocation39_spill] sm:$0xff] %v9455_v4  ;;  %10698 = vst [vmem:[#allocation38_spill] sm:$0xff] %v9457_v0  ;;  %4172 = vmatprep.subr.bf16.mxu0 %v9455_v4  ;;  %4213 = vmatprep.subr.bf16.mxu1 %v9457_v0  ;;  %v9479_v0 = vld [vmem:[#allocation12 + $0x44] ss:$16 sps:$4 sm:$0xff]   ;;  %v9485_v4 = vld [vmem:[#allocation12 + $0x48] ss:$16 sps:$4 sm:$0xff]  }
 0x502   :  { %v2636_v48 = vrot.slane %v2631_v53, %v10681_v6  ;;  %4173 = vmatpush1.bf16.msra.mxu0 %v9459_v47  ;;  %4214 = vmatpush1.bf16.msra.mxu1 %v9461_v33  ;;  %v9467_v53 = vld [vmem:[#allocation12 + $0x64] ss:$16 sps:$4 sm:$0xff]   ;;  %v9469_v6 = vld [vmem:[#allocation12 + $0x6c] ss:$16 sps:$4 sm:$0xff]   ;;  %10705 = vst [vmem:[#allocation49_spill] sm:$0xff] %v9479_v0  ;;  %10708 = vst [vmem:[#allocation52_spill] sm:$0xff] %v9485_v4 }
 0x503   :  { %10701 = vst [vmem:[#allocation45_spill] sm:$0xff] %v9467_v53  ;;  %10702 = vst [vmem:[#allocation46_spill] sm:$0xff] %v9469_v6  ;;  %4174 = vmatprep.subr.bf16.mxu0 %v9467_v53  ;;  %4215 = vmatprep.subr.bf16.mxu1 %v9469_v6  ;;  %v9481_v47 = vld [vmem:[#allocation12 + $0x4c] ss:$16 sps:$4 sm:$0xff]   ;;  %v9483_v33 = vld [vmem:[#allocation12 + $0x40] ss:$16 sps:$4 sm:$0xff]  }
 0x504   :  { %2638 = vst.msk [vmem:[#allocation14 + $0x2] sm:$0x1] %vm997_vm0, %v2636_v48  ;;  %v9471_v48 = vld [vmem:[#allocation12 + $0x60] ss:$16 sps:$4 sm:$0xff]   ;;  %10706 = vst [vmem:[#allocation50_spill] sm:$0xff] %v9481_v47 }
 0x505   :  { %10703 = vst [vmem:[#allocation47_spill] sm:$0xff] %v9471_v48  ;;  %10707 = vst [vmem:[#allocation51_spill] sm:$0xff] %v9483_v33  ;;  %v9491_v6 = vld [vmem:[#allocation12 + $0x24] ss:$16 sps:$4 sm:$0xff]   ;;  %v9497_v53 = vld [vmem:[#allocation12 + $0x28] ss:$16 sps:$4 sm:$0xff]  }
 0x506   :  { %4175 = vmatpush1.bf16.msra.mxu0 %v9471_v48  ;;  %4216 = vmatpush1.bf16.msra.mxu1 %v9473_v39  ;;  %10709 = vst [vmem:[#allocation53_spill] sm:$0xff] %v9491_v6  ;;  %v9493_v48 = vld [vmem:[#allocation12 + $0x2c] ss:$16 sps:$4 sm:$0xff]   ;;  %v9495_v39 = vld [vmem:[#allocation12 + $0x20] ss:$16 sps:$4 sm:$0xff]   ;;  %10712 = vst [vmem:[#allocation56_spill] sm:$0xff] %v9497_v53 }
 0x507   :  { %4176 = vmatprep.subr.bf16.mxu0 %v9479_v0  ;;  %4217 = vmatprep.subr.bf16.mxu1 %v9481_v47  ;;  %10710 = vst [vmem:[#allocation54_spill] sm:$0xff] %v9493_v48  ;;  %10711 = vst [vmem:[#allocation55_spill] sm:$0xff] %v9495_v39  ;;  %v9503_v47 = vld [vmem:[#allocation12 + $0x4] ss:$16 sps:$4 sm:$0xff]   ;;  %v9509_v0 = vld [vmem:[#allocation12 + $0x8] ss:$16 sps:$4 sm:$0xff]  }
 0x508   :  { %10713 = vst [vmem:[#allocation57_spill] sm:$0xff] %v9503_v47  ;;  %10716 = vst [vmem:[#allocation60_spill] sm:$0xff] %v9509_v0 }
 0x50a   :  { %4177 = vmatpush1.bf16.msra.mxu0 %v9483_v33  ;;  %4218 = vmatpush1.bf16.msra.mxu1 %v9485_v4  ;;  %v9505_v33 = vld [vmem:[#allocation12 + $0xc] ss:$16 sps:$4 sm:$0xff]   ;;  %v9507_v4 = vld [vmem:[#allocation12] ss:$16 sps:$4 sm:$0xff]  }
 0x50b   :  { %4178 = vmatprep.subr.bf16.mxu0 %v9491_v6  ;;  %4219 = vmatprep.subr.bf16.mxu1 %v9493_v48  ;;  %10714 = vst [vmem:[#allocation58_spill] sm:$0xff] %v9505_v33  ;;  %10715 = vst [vmem:[#allocation59_spill] sm:$0xff] %v9507_v4  ;;  %v9515_v48 = vld [vmem:[#allocation12 + $0x1e4] ss:$16 sps:$4 sm:$0xff]   ;;  %v9521_v6 = vld [vmem:[#allocation12 + $0x1e8] ss:$16 sps:$4 sm:$0xff]  }
 0x50c   :  { %10717 = vst [vmem:[#allocation61_spill] sm:$0xff] %v9515_v48  ;;  %10720 = vst [vmem:[#allocation64_spill] sm:$0xff] %v9521_v6 }
 0x50e   :  { %4179 = vmatpush1.bf16.msra.mxu0 %v9495_v39  ;;  %4220 = vmatpush1.bf16.msra.mxu1 %v9497_v53  ;;  %v9517_v39 = vld [vmem:[#allocation12 + $0x1ec] ss:$16 sps:$4 sm:$0xff]   ;;  %v9519_v53 = vld [vmem:[#allocation12 + $0x1e0] ss:$16 sps:$4 sm:$0xff]  }
 0x50f   :  { %4180 = vmatprep.subr.bf16.mxu0 %v9503_v47  ;;  %4221 = vmatprep.subr.bf16.mxu1 %v9505_v33  ;;  %10718 = vst [vmem:[#allocation62_spill] sm:$0xff] %v9517_v39  ;;  %10719 = vst [vmem:[#allocation63_spill] sm:$0xff] %v9519_v53  ;;  %v9527_v33 = vld [vmem:[#allocation12 + $0x1c4] ss:$16 sps:$4 sm:$0xff]   ;;  %v9533_v47 = vld [vmem:[#allocation12 + $0x1c8] ss:$16 sps:$4 sm:$0xff]  }
 0x510   :  { %10721 = vst [vmem:[#allocation65_spill] sm:$0xff] %v9527_v33  ;;  %10724 = vst [vmem:[#allocation68_spill] sm:$0xff] %v9533_v47 }
 0x512   :  { %4181 = vmatpush1.bf16.msra.mxu0 %v9507_v4  ;;  %4222 = vmatpush1.bf16.msra.mxu1 %v9509_v0  ;;  %v9529_v4 = vld [vmem:[#allocation12 + $0x1cc] ss:$16 sps:$4 sm:$0xff]   ;;  %v9531_v0 = vld [vmem:[#allocation12 + $0x1c0] ss:$16 sps:$4 sm:$0xff]  }
 0x513   :  { %4182 = vmatprep.subr.bf16.mxu0 %v9515_v48  ;;  %4223 = vmatprep.subr.bf16.mxu1 %v9517_v39  ;;  %10722 = vst [vmem:[#allocation66_spill] sm:$0xff] %v9529_v4  ;;  %10723 = vst [vmem:[#allocation67_spill] sm:$0xff] %v9531_v0  ;;  %v9539_v39 = vld [vmem:[#allocation12 + $0x1a4] ss:$16 sps:$4 sm:$0xff]   ;;  %v9545_v48 = vld [vmem:[#allocation12 + $0x1a8] ss:$16 sps:$4 sm:$0xff]  }
 0x514   :  { %10725 = vst [vmem:[#allocation69_spill] sm:$0xff] %v9539_v39  ;;  %10728 = vst [vmem:[#allocation72_spill] sm:$0xff] %v9545_v48 }
 0x516   :  { %4183 = vmatpush2.bf16.msra.mxu0 %v9519_v53  ;;  %4224 = vmatpush2.bf16.msra.mxu1 %v9521_v6  ;;  %v9541_v53 = vld [vmem:[#allocation12 + $0x1ac] ss:$16 sps:$4 sm:$0xff]   ;;  %v9543_v6 = vld [vmem:[#allocation12 + $0x1a0] ss:$16 sps:$4 sm:$0xff]  }
 0x517   :  { %4184 = vmatprep.subr.bf16.mxu0 %v9527_v33  ;;  %4225 = vmatprep.subr.bf16.mxu1 %v9529_v4  ;;  %10726 = vst [vmem:[#allocation70_spill] sm:$0xff] %v9541_v53  ;;  %10727 = vst [vmem:[#allocation71_spill] sm:$0xff] %v9543_v6  ;;  %v9551_v4 = vld [vmem:[#allocation12 + $0x184] ss:$16 sps:$4 sm:$0xff]   ;;  %v9557_v33 = vld [vmem:[#allocation12 + $0x188] ss:$16 sps:$4 sm:$0xff]  }
 0x518   :  { %10729 = vst [vmem:[#allocation73_spill] sm:$0xff] %v9551_v4  ;;  %10732 = vst [vmem:[#allocation76_spill] sm:$0xff] %v9557_v33 }
 0x51a   :  { %4185 = vmatpush2.bf16.msra.mxu0 %v9531_v0  ;;  %4226 = vmatpush2.bf16.msra.mxu1 %v9533_v47  ;;  %v9553_v0 = vld [vmem:[#allocation12 + $0x18c] ss:$16 sps:$4 sm:$0xff]   ;;  %v9555_v47 = vld [vmem:[#allocation12 + $0x180] ss:$16 sps:$4 sm:$0xff]  }
 0x51b   :  { %4186 = vmatprep.subr.bf16.mxu0 %v9539_v39  ;;  %4227 = vmatprep.subr.bf16.mxu1 %v9541_v53  ;;  %10730 = vst [vmem:[#allocation74_spill] sm:$0xff] %v9553_v0  ;;  %10731 = vst [vmem:[#allocation75_spill] sm:$0xff] %v9555_v47  ;;  %v9563_v53 = vld [vmem:[#allocation12 + $0x164] ss:$16 sps:$4 sm:$0xff]   ;;  %v9569_v39 = vld [vmem:[#allocation12 + $0x168] ss:$16 sps:$4 sm:$0xff]  }
 0x51c   :  { %10733 = vst [vmem:[#allocation77_spill] sm:$0xff] %v9563_v53  ;;  %10736 = vst [vmem:[#allocation80_spill] sm:$0xff] %v9569_v39 }
 0x51e   :  { %4187 = vmatpush2.bf16.msra.mxu0 %v9543_v6  ;;  %4228 = vmatpush2.bf16.msra.mxu1 %v9545_v48  ;;  %v9565_v6 = vld [vmem:[#allocation12 + $0x16c] ss:$16 sps:$4 sm:$0xff]   ;;  %v9567_v48 = vld [vmem:[#allocation12 + $0x160] ss:$16 sps:$4 sm:$0xff]  }
 0x51f   :  { %4188 = vmatprep.subr.bf16.mxu0 %v9551_v4  ;;  %4229 = vmatprep.subr.bf16.mxu1 %v9553_v0  ;;  %10734 = vst [vmem:[#allocation78_spill] sm:$0xff] %v9565_v6  ;;  %10735 = vst [vmem:[#allocation79_spill] sm:$0xff] %v9567_v48  ;;  %v9575_v0 = vld [vmem:[#allocation12 + $0x144] ss:$16 sps:$4 sm:$0xff]   ;;  %v9581_v4 = vld [vmem:[#allocation12 + $0x148] ss:$16 sps:$4 sm:$0xff]  }
 0x520   :  { %10737 = vst [vmem:[#allocation81_spill] sm:$0xff] %v9575_v0  ;;  %10740 = vst [vmem:[#allocation84_spill] sm:$0xff] %v9581_v4 }
 0x522   :  { %4189 = vmatpush2.bf16.msra.mxu0 %v9555_v47  ;;  %4230 = vmatpush2.bf16.msra.mxu1 %v9557_v33  ;;  %v9577_v47 = vld [vmem:[#allocation12 + $0x14c] ss:$16 sps:$4 sm:$0xff]   ;;  %v9579_v33 = vld [vmem:[#allocation12 + $0x140] ss:$16 sps:$4 sm:$0xff]  }
 0x523   :  { %4190 = vmatprep.subr.bf16.mxu0 %v9563_v53  ;;  %4231 = vmatprep.subr.bf16.mxu1 %v9565_v6  ;;  %10738 = vst [vmem:[#allocation82_spill] sm:$0xff] %v9577_v47  ;;  %10739 = vst [vmem:[#allocation83_spill] sm:$0xff] %v9579_v33  ;;  %v9587_v6 = vld [vmem:[#allocation12 + $0x120] ss:$16 sps:$4 sm:$0xff]   ;;  %v9593_v53 = vld [vmem:[#allocation12 + $0x12c] ss:$16 sps:$4 sm:$0xff]  }
 0x524   :  { %10741 = vst [vmem:[#allocation85_spill] sm:$0xff] %v9587_v6  ;;  %10744 = vst [vmem:[#allocation90_spill] sm:$0xff] %v9593_v53 }
 0x526   :  { %4191 = vmatpush2.bf16.msra.mxu0 %v9567_v48  ;;  %4232 = vmatpush2.bf16.msra.mxu1 %v9569_v39  ;;  %v9589_v48 = vld [vmem:[#allocation12 + $0x124] ss:$16 sps:$4 sm:$0xff]   ;;  %v9591_v39 = vld [vmem:[#allocation12 + $0x128] ss:$16 sps:$4 sm:$0xff]  }
 0x527   :  { %4192 = vmatprep.subr.bf16.mxu0 %v9575_v0  ;;  %4233 = vmatprep.subr.bf16.mxu1 %v9577_v47  ;;  %10742 = vst [vmem:[#allocation86_spill] sm:$0xff] %v9589_v48  ;;  %10743 = vst [vmem:[#allocation88_spill] sm:$0xff] %v9591_v39 }
 0x52a   :  { %4193 = vmatpush2.bf16.msra.mxu0 %v9579_v33  ;;  %4234 = vmatpush2.bf16.msra.mxu1 %v9581_v4  ;;  %v9603_v4 = vld [vmem:[#allocation12 + $0x100] ss:$16 sps:$4 sm:$0xff]   ;;  %v9605_v33 = vld [vmem:[#allocation12 + $0x108] ss:$16 sps:$4 sm:$0xff]  }
 0x52b   :  { %4194 = vmatprep.subr.bf16.mxu0 %v9589_v48  ;;  %4235 = vmatprep.subr.bf16.mxu1 %v9593_v53  ;;  %10747 = vst [vmem:[#allocation91_spill] sm:$0xff] %v9603_v4  ;;  %10748 = vst [vmem:[#allocation92_spill] sm:$0xff] %v9605_v33 }
 0x52e   :  { %4195 = vmatpush2.bf16.msra.mxu0 %v9587_v6  ;;  %4236 = vmatpush2.bf16.msra.mxu1 %v9591_v39 }
 0x52f   :  { %4196 = vmatprep.subr.bf16.mxu0 %v9595_v24  ;;  %4237 = vmatprep.subr.bf16.mxu1 %v9598_v40 }
 0x532   :  { %4197 = vmatpush2.bf16.msra.mxu0 %v9603_v4  ;;  %4238 = vmatpush2.bf16.msra.mxu1 %v9605_v33 }
 0x533   :  { %4488 = vmatprep.subr.bf16.mxu0 %v9293_v11  ;;  %4529 = vmatprep.subr.bf16.mxu1 %v9295_v12 }
 0x561   :  { %v3380_v53 = vpop.f32.mrf.mxu0  ;;  %v3421_v6 = vpop.f32.mrf.mxu1 }
 0x562   :  { %v3381_v39 = vadd.f32 %v3380_v53, %v10682_v15  ;;  %v3422_v33 = vadd.f32 %v3421_v6, %v8832_v18 }
 0x563   :  { %v3382_v48 = vpop.f32.mrf.mxu0  ;;  %v3423_v47 = vpop.f32.mrf.mxu1 }
 0x564   :  { %v3428_v0 = vmul.f32 0.5, %v3381_v39  ;;  %v3383_v36 = vadd.f32 %v3382_v48, %v8828_v10  ;;  %v3424_v11 = vadd.f32 %v3423_v47, %v8837_v41 }
 0x565   :  { %v3384_v24 = vpop.f32.mrf.mxu0  ;;  %v3425_v16 = vpop.f32.mrf.mxu1 }
 0x566   :  { %8223 = vtanh.f32 %v3428_v0  ;;  %v3432_v40 = vmul.f32 0.5, %v3383_v36  ;;  %v3437_v12 = vmul.f32 0.5, %v3424_v11 }
 0x567   :  { %v3385_v4 = vpop.f32.mrf.mxu0  ;;  %v3426_v7 = vpop.f32.mrf.mxu1 }
 0x568   :  { %8225 = vtanh.f32 %v3432_v40  ;;  %v10749_v7 = vld [vmem:[#allocation22_spill] sm:$0xff] }
 0x569   :  { %8227 = vtanh.f32 %v3422_v33  ;;  %v3467_v36 = vmul.f32 %v10749_v7, %v10537_v21  ;;  %v3468_v33 = vmul.f32 %v10749_v7, %v10538_v29 }
 0x56a   :  { %8229 = vtanh.f32 %v3437_v12 }
 0x56b   :  { %v3472_v47 = vadd.f32 %v3468_v33, %v10686_v50 }
 0x573   :  { %v8224_v45 = vpop.eup %8223 }
 0x574   :  { %v3430_v53 = vmul.f32 0.5, %v8224_v45  ;;  %v3471_v45 = vadd.f32 %v3467_v36, %v10684_v44 }
 0x575   :  { %v8226_v15 = vpop.eup %8225 }
 0x576   :  { %v3431_v46 = vadd.f32 0.5, %v3430_v53  ;;  %v3434_v39 = vmul.f32 0.5, %v8226_v15  ;;  %v8228_v24 = vpop.eup %8227  ;;  %v3469_v15 = vmul.f32 %v10749_v7, %v10685_v8  ;;  %v3470_v8 = vmul.f32 %v10749_v7, %v10542_v3 }
 0x577   :  { %v8230_v4 = vpop.eup %8229 }
 0x578   :  { %v3435_v48 = vadd.f32 0.5, %v3434_v39  ;;  %v3442_v16 = vmul.f32 %v8228_v24, %v3431_v46  ;;  %v3473_v39 = vadd.f32 %v3469_v15, %v8742_v35 }
 0x57a   :  { %v3441_v0 = vmul.f32 %v3435_v48, %v9306_v26 }
 0x57c   :  { %v9620_v6 = vadd.f32 %v3442_v16, %v3441_v0  ;;  %v3439_v16 = vmul.f32 0.5, %v8230_v4 }
 0x57e   :  { %8231 = vtanh.f32 %v9620_v6 }
 0x581   :  { %v3702_v40 = vpop.f32.mrf.mxu0  ;;  %v3743_v26 = vpop.f32.mrf.mxu1 }
 0x582   :  { %v3750_v46 = vadd.f32 %v3702_v40, %v3471_v45  ;;  %v3752_v50 = vadd.f32 %v3743_v26, %v3473_v39  ;;  %v3474_v45 = vadd.f32 %v3470_v8, %v8751_v32  ;;  %v3440_v40 = vadd.f32 0.5, %v3439_v16 }
 0x583   :  { %v3704_v11 = vpop.f32.mrf.mxu0  ;;  %v3745_v12 = vpop.f32.mrf.mxu1 }
 0x584   :  { %v3754_v53 = vmul.f32 0.5, %v3750_v46  ;;  %v3751_v48 = vadd.f32 %v3704_v11, %v3472_v47  ;;  %v3753_v15 = vadd.f32 %v3745_v12, %v3474_v45  ;;  %v9636_v47 = vld [vmem:[%s10234_s6] ss:$0 sm:$0xff] }
 0x585   :  { %v3706_v24 = vpop.f32.mrf.mxu0  ;;  %v3747_v0 = vpop.f32.mrf.mxu1 }
 0x586   :  { %8233 = vtanh.f32 %v3754_v53  ;;  %v3758_v36 = vmul.f32 0.5, %v3751_v48 }
 0x587   :  { %v3707_v44 = vpop.f32.mrf.mxu0  ;;  %v3748_v33 = vpop.f32.mrf.mxu1 }
 0x588   :  { %8235 = vtanh.f32 %v3758_v36  ;;  %v3763_v44 = vmul.f32 0.5, %v3753_v15 }
 0x589   :  { %8237 = vtanh.f32 %v3752_v50 }
 0x58a   :  { %8239 = vtanh.f32 %v3763_v44  ;;  %v10783_v44 = vld [vmem:[#allocation64_spill] sm:$0xff] }
 0x58b   :  { %v8232_v29 = vpop.eup %8231 }
 0x58c   :  { %v3445_v46 = vmul.f32 %v8232_v29, %v3440_v40 }
 0x58e   :  { %v3448_v4 = vmul.f32 %v9636_v47, %v3445_v46  ;;  %v3446_v11 = vpack.c.bf16 %v3445_v46, %v3445_v46 }
 0x590   :  { %3449 = vadd.xlane.f32.xlu0 %v3448_v4  ;;  %3447 = vst [vmem:[#allocation4 + $0x4] sm:$0xf] %v3446_v11  ;;  %v10782_v11 = vld [vmem:[#allocation63_spill] sm:$0xff] }
 0x593   :  { %v8234_v7 = vpop.eup %8233 }
 0x594   :  { %v3756_v26 = vmul.f32 0.5, %v8234_v7  ;;  %v10784_v7 = vld [vmem:[#allocation65_spill] sm:$0xff] }
 0x595   :  { %v8236_v53 = vpop.eup %8235 }
 0x596   :  { %v3757_v8 = vadd.f32 0.5, %v3756_v26  ;;  %v3760_v39 = vmul.f32 0.5, %v8236_v53  ;;  %v8238_v29 = vpop.eup %8237  ;;  %v10785_v26 = vld [vmem:[#allocation66_spill] sm:$0xff]  ;;  %v10786_v53 = vld [vmem:[#allocation67_spill] sm:$0xff] }
 0x597   :  { %v8240_v0 = vpop.eup %8239 }
 0x598   :  { %v3761_v50 = vadd.f32 0.5, %v3760_v39  ;;  %v3768_v48 = vmul.f32 %v8238_v29, %v3757_v8  ;;  %v3765_v16 = vmul.f32 0.5, %v8240_v0  ;;  %v10787_v8 = vld [vmem:[#allocation68_spill] sm:$0xff]  ;;  %v10788_v39 = vld [vmem:[#allocation69_spill] sm:$0xff]  ;;  %v10790_v29 = vld [vmem:[#allocation71_spill] sm:$0xff] }
 0x599   :  { %v10793_v0 = vld [vmem:[#allocation74_spill] sm:$0xff] }
 0x59a   :  { %v3767_v12 = vmul.f32 %v3761_v50, %v9321_v43  ;;  %v3766_v36 = vadd.f32 0.5, %v3765_v16  ;;  %v10789_v50 = vld [vmem:[#allocation70_spill] sm:$0xff]  ;;  %v10794_v16 = vld [vmem:[#allocation75_spill] sm:$0xff] }
 0x59c   :  { %v9640_v24 = vadd.f32 %v3768_v48, %v3767_v12  ;;  %v10791_v12 = vld [vmem:[#allocation72_spill] sm:$0xff]  ;;  %v10792_v48 = vld [vmem:[#allocation73_spill] sm:$0xff] }
 0x59e   :  { %8241 = vtanh.f32 %v9640_v24 }
 0x5ab   :  { %v8242_v33 = vpop.eup %8241 }
 0x5ac   :  { %v3771_v45 = vmul.f32 %v8242_v33, %v3766_v36  ;;  %v10795_v36 = vld [vmem:[#allocation76_spill] sm:$0xff]  ;;  %v10796_v33 = vld [vmem:[#allocation77_spill] sm:$0xff] }
 0x5ae   :  { %v3772_v40 = vpack.c.bf16 %v3771_v45, %v3771_v45  ;;  %v10797_v45 = vld [vmem:[#allocation78_spill] sm:$0xff] }
 0x5b0   :  { %3773 = vst [vmem:[#allocation4] sm:$0xf] %v3772_v40  ;;  %v10798_v40 = vld [vmem:[#allocation79_spill] sm:$0xff] }
 0x5b7   :  { %v3774_v46 = vld [vmem:[#allocation4] sm:$0xff] }
 0x5b8   :  { %v7189_v15 = vcombine.high %v3774_v46, %v3774_v46  ;;  %v7188_v4 = vcombine.low %v3774_v46, %v3774_v46  ;;  %v4295_v43 = vld [vmem:[#allocation4] sm:$0xf]  ;;  %v10799_v46 = vld [vmem:[#allocation80_spill] sm:$0xff] }
 0x5ba   :  { %4198 = vmatprep.mubr.bf16.mxu0 %v7189_v15  ;;  %4239 = vmatprep.mubr.bf16.mxu1 %v7189_v15  ;;  %v10800_v15 = vld [vmem:[#allocation81_spill] sm:$0xff] }
 0x5bb   :  { %4199 = vmatmul.mubr.bf16.vlgmr.msra.gmra.mxu0 %v7188_v4  ;;  %4240 = vmatmul.mubr.bf16.vlgmr.msra.gmra.mxu1 %v7188_v4  ;;  %v10801_v4 = vld [vmem:[#allocation82_spill] sm:$0xff] }
 0x5bc   :  { %4489 = vmatpush1.bf16.msra.mxu0 %v9324_v38  ;;  %4530 = vmatpush1.bf16.msra.mxu1 %v9326_v52  ;;  %v10750_v38 = vld [vmem:[#allocation24_spill] sm:$0xff]  ;;  %v10751_v52 = vld [vmem:[#allocation25_spill] sm:$0xff] }
 0x5bd   :  { %4490 = vmatprep.subr.bf16.mxu0 %v9328_v51  ;;  %4531 = vmatprep.subr.bf16.mxu1 %v9330_v31  ;;  %v10752_v51 = vld [vmem:[#allocation27_spill] sm:$0xff]  ;;  %v10753_v31 = vld [vmem:[#allocation28_spill] sm:$0xff] }
 0x5be   :  { %4520 = vmatprep.mubr.bf16.mxu0 %v10516_v34  ;;  %4561 = vmatprep.mubr.bf16.mxu1 %v10516_v34 }
 0x5c0   :  { %4491 = vmatpush1.bf16.msra.mxu0 %v9334_v54  ;;  %4532 = vmatpush1.bf16.msra.mxu1 %v9336_v55  ;;  %v10754_v54 = vld [vmem:[#allocation30_spill] sm:$0xff]  ;;  %v10755_v55 = vld [vmem:[#allocation31_spill] sm:$0xff] }
 0x5c1   :  { %4492 = vmatprep.subr.bf16.mxu0 %v9340_v56  ;;  %4533 = vmatprep.subr.bf16.mxu1 %v9342_v57  ;;  %v10756_v56 = vld [vmem:[#allocation32_spill] sm:$0xff]  ;;  %v10757_v57 = vld [vmem:[#allocation33_spill] sm:$0xff] }
 0x5c4   :  { %4493 = vmatpush1.bf16.msra.mxu0 %v9348_v58  ;;  %4534 = vmatpush1.bf16.msra.mxu1 %v9350_v59  ;;  %v10758_v58 = vld [vmem:[#allocation36_spill] sm:$0xff]  ;;  %v10759_v59 = vld [vmem:[#allocation37_spill] sm:$0xff] }
 0x5c5   :  { %4494 = vmatprep.subr.bf16.mxu0 %v9354_v60  ;;  %4535 = vmatprep.subr.bf16.mxu1 %v9356_v61  ;;  %v10760_v60 = vld [vmem:[#allocation39_spill] sm:$0xff]  ;;  %v10761_v61 = vld [vmem:[#allocation38_spill] sm:$0xff] }
 0x5c8   :  { %4495 = vmatpush1.bf16.msra.mxu0 %v9360_v62  ;;  %4536 = vmatpush1.bf16.msra.mxu1 %v9362_v63  ;;  %v10762_v62 = vld [vmem:[#allocation44_spill] sm:$0xff]  ;;  %v10763_v63 = vld [vmem:[#allocation35_spill] sm:$0xff] }
 0x5c9   :  { %4496 = vmatprep.subr.bf16.mxu0 %v9366_v2  ;;  %4537 = vmatprep.subr.bf16.mxu1 %v9368_v9  ;;  %v10764_v2 = vld [vmem:[#allocation45_spill] sm:$0xff]  ;;  %v10765_v9 = vld [vmem:[#allocation46_spill] sm:$0xff] }
 0x5cc   :  { %4497 = vmatpush1.bf16.msra.mxu0 %v9372_v13  ;;  %4538 = vmatpush1.bf16.msra.mxu1 %v9374_v14  ;;  %v10766_v13 = vld [vmem:[#allocation47_spill] sm:$0xff]  ;;  %v10767_v14 = vld [vmem:[#allocation48_spill] sm:$0xff] }
 0x5cd   :  { %4498 = vmatprep.subr.bf16.mxu0 %v9378_v17  ;;  %4539 = vmatprep.subr.bf16.mxu1 %v9380_v19  ;;  %v10768_v17 = vld [vmem:[#allocation49_spill] sm:$0xff]  ;;  %v10769_v19 = vld [vmem:[#allocation50_spill] sm:$0xff] }
 0x5d0   :  { %4499 = vmatpush1.bf16.msra.mxu0 %v9384_v20  ;;  %4540 = vmatpush1.bf16.msra.mxu1 %v9386_v25  ;;  %v10770_v20 = vld [vmem:[#allocation51_spill] sm:$0xff]  ;;  %v10771_v25 = vld [vmem:[#allocation52_spill] sm:$0xff] }
 0x5d1   :  { %4500 = vmatprep.subr.bf16.mxu0 %v9390_v28  ;;  %4541 = vmatprep.subr.bf16.mxu1 %v9392_v1  ;;  %v10772_v28 = vld [vmem:[#allocation53_spill] sm:$0xff]  ;;  %v10773_v1 = vld [vmem:[#allocation54_spill] sm:$0xff] }
 0x5d4   :  { %4501 = vmatpush1.bf16.msra.mxu0 %v9396_v22  ;;  %4542 = vmatpush1.bf16.msra.mxu1 %v9398_v23  ;;  %v10774_v22 = vld [vmem:[#allocation55_spill] sm:$0xff]  ;;  %v10775_v23 = vld [vmem:[#allocation56_spill] sm:$0xff] }
 0x5d5   :  { %4502 = vmatprep.subr.bf16.mxu0 %v9402_v27  ;;  %4543 = vmatprep.subr.bf16.mxu1 %v9404_v37  ;;  %v10776_v27 = vld [vmem:[#allocation57_spill] sm:$0xff]  ;;  %v10777_v37 = vld [vmem:[#allocation58_spill] sm:$0xff] }
 0x5d8   :  { %4503 = vmatpush1.bf16.msra.mxu0 %v9408_v30  ;;  %4544 = vmatpush1.bf16.msra.mxu1 %v9410_v5  ;;  %v10778_v30 = vld [vmem:[#allocation59_spill] sm:$0xff]  ;;  %v10779_v5 = vld [vmem:[#allocation60_spill] sm:$0xff] }
 0x5d9   :  { %4986 = vmatprep.subr.bf16.mxu0 %v9416_v42  ;;  %5027 = vmatprep.subr.bf16.mxu1 %v9418_v49  ;;  %v10780_v42 = vld [vmem:[#allocation61_spill] sm:$0xff]  ;;  %v10781_v49 = vld [vmem:[#allocation62_spill] sm:$0xff] }
 0x5db   :  { %4521 = vmatmul.mubr.bf16.vlgmr.msra.gmra.mxu0 %v4295_v43  ;;  %4562 = vmatmul.mubr.bf16.vlgmr.msra.gmra.mxu1 %v4295_v43  ;;  %v10802_v43 = vld [vmem:[#allocation83_spill] sm:$0xff] }
 0x5dc   :  { %4987 = vmatpush1.bf16.msra.mxu0 %v10750_v38  ;;  %5028 = vmatpush1.bf16.msra.mxu1 %v10751_v52  ;;  %v10803_v38 = vld [vmem:[#allocation84_spill] sm:$0xff]  ;;  %v10804_v52 = vld [vmem:[#allocation86_spill] sm:$0xff] }
 0x5dd   :  { %4988 = vmatprep.subr.bf16.mxu0 %v10752_v51  ;;  %5029 = vmatprep.subr.bf16.mxu1 %v10753_v31  ;;  %v10805_v51 = vld [vmem:[#allocation90_spill] sm:$0xff]  ;;  %v10806_v31 = vld [vmem:[#allocation85_spill] sm:$0xff] }
 0x5e0   :  { %4989 = vmatpush1.bf16.msra.mxu0 %v10754_v54  ;;  %5030 = vmatpush1.bf16.msra.mxu1 %v10755_v55  ;;  %v10807_v54 = vld [vmem:[#allocation88_spill] sm:$0xff]  ;;  %v10808_v55 = vld [vmem:[#allocation87_spill] sm:$0xff] }
 0x5e1   :  { %4990 = vmatprep.subr.bf16.mxu0 %v10756_v56  ;;  %5031 = vmatprep.subr.bf16.mxu1 %v10757_v57  ;;  %v10809_v56 = vld [vmem:[#allocation89_spill] sm:$0xff]  ;;  %v10810_v57 = vld [vmem:[#allocation91_spill] sm:$0xff] }
 0x5e4   :  { %4991 = vmatpush1.bf16.msra.mxu0 %v10758_v58  ;;  %5032 = vmatpush1.bf16.msra.mxu1 %v10759_v59  ;;  %v10811_v58 = vld [vmem:[#allocation92_spill] sm:$0xff] }
 0x5e5   :  { %4992 = vmatprep.subr.bf16.mxu0 %v10760_v60  ;;  %5033 = vmatprep.subr.bf16.mxu1 %v10761_v61  ;;  %v10812_v60 = vld [vmem:[#allocation29_spill] sm:$0xff] }
 0x5e8   :  { %4993 = vmatpush1.bf16.msra.mxu0 %v10762_v62  ;;  %5034 = vmatpush1.bf16.msra.mxu1 %v10763_v63  ;;  %v10813_v62 = vld [vmem:[#allocation34_spill] sm:$0xff] }
 0x5e9   :  { %4994 = vmatprep.subr.bf16.mxu0 %v10764_v2  ;;  %5035 = vmatprep.subr.bf16.mxu1 %v10765_v9  ;;  %v9742_v2 = vld [vmem:[#allocation11 + $0xe4] ss:$16 sps:$4 sm:$0xff]   ;;  %v9744_v9 = vld [vmem:[#allocation11 + $0xec] ss:$16 sps:$4 sm:$0xff]  }
 0x5ec   :  { %4995 = vmatpush1.bf16.msra.mxu0 %v10766_v13  ;;  %5036 = vmatpush1.bf16.msra.mxu1 %v10767_v14 }
 0x5ed   :  { %4996 = vmatprep.subr.bf16.mxu0 %v10768_v17  ;;  %5037 = vmatprep.subr.bf16.mxu1 %v10769_v19  ;;  %v10814_v17 = vld [vmem:[#allocation19_spill] sm:$0xff] }
 0x5f0   :  { %4997 = vmatpush1.bf16.msra.mxu0 %v10770_v20  ;;  %5038 = vmatpush1.bf16.msra.mxu1 %v10771_v25 }
 0x5f1   :  { %4998 = vmatprep.subr.bf16.mxu0 %v10772_v28  ;;  %5039 = vmatprep.subr.bf16.mxu1 %v10773_v1 }
 0x5f4   :  { %4999 = vmatpush1.bf16.msra.mxu0 %v10774_v22  ;;  %5040 = vmatpush1.bf16.msra.mxu1 %v10775_v23 }
 0x5f5   :  { %5000 = vmatprep.subr.bf16.mxu0 %v10776_v27  ;;  %5041 = vmatprep.subr.bf16.mxu1 %v10777_v37 }
 0x5f8   :  { %5001 = vmatpush1.bf16.msra.mxu0 %v10778_v30  ;;  %5042 = vmatpush1.bf16.msra.mxu1 %v10779_v5 }
 0x5f9   :  { %5002 = vmatprep.subr.bf16.mxu0 %v10780_v42  ;;  %5043 = vmatprep.subr.bf16.mxu1 %v10781_v49 }
 0x5fc   :  { %5003 = vmatpush2.bf16.msra.mxu0 %v10782_v11  ;;  %5044 = vmatpush2.bf16.msra.mxu1 %v10783_v44 }
 0x5fd   :  { %5004 = vmatprep.subr.bf16.mxu0 %v10784_v7  ;;  %5045 = vmatprep.subr.bf16.mxu1 %v10785_v26 }
 0x600   :  { %5005 = vmatpush2.bf16.msra.mxu0 %v10786_v53  ;;  %5046 = vmatpush2.bf16.msra.mxu1 %v10787_v8 }
 0x601   :  { %5006 = vmatprep.subr.bf16.mxu0 %v10788_v39  ;;  %5047 = vmatprep.subr.bf16.mxu1 %v10789_v50 }
 0x604   :  { %5007 = vmatpush2.bf16.msra.mxu0 %v10790_v29  ;;  %5048 = vmatpush2.bf16.msra.mxu1 %v10791_v12  ;;  %v10815_v12 = vld [vmem:[#allocation21_spill] sm:$0xff] }
 0x605   :  { %5008 = vmatprep.subr.bf16.mxu0 %v10792_v48  ;;  %5049 = vmatprep.subr.bf16.mxu1 %v10793_v0  ;;  %v4287_v48 = vmul.f32 %v10815_v12, %v10537_v21 }
 0x608   :  { %5009 = vmatpush2.bf16.msra.mxu0 %v10794_v16  ;;  %5050 = vmatpush2.bf16.msra.mxu1 %v10795_v36  ;;  %v10816_v16 = vld [vmem:[#allocation40_spill] sm:$0xff] }
 0x609   :  { %5010 = vmatprep.subr.bf16.mxu0 %v10796_v33  ;;  %5051 = vmatprep.subr.bf16.mxu1 %v10797_v45  ;;  %v4288_v36 = vmul.f32 %v10815_v12, %v10816_v16  ;;  %v10817_v33 = vld [vmem:[#allocation41_spill] sm:$0xff] }
 0x60a   :  { %v4291_v45 = vadd.f32 %v4287_v48, %v10817_v33 }
 0x60c   :  { %5011 = vmatpush2.bf16.msra.mxu0 %v10798_v40  ;;  %5052 = vmatpush2.bf16.msra.mxu1 %v10799_v46  ;;  %v10818_v40 = vld [vmem:[#allocation42_spill] sm:$0xff] }
 0x60d   :  { %5012 = vmatprep.subr.bf16.mxu0 %v10800_v15  ;;  %5053 = vmatprep.subr.bf16.mxu1 %v10801_v4  ;;  %v4289_v46 = vmul.f32 %v10815_v12, %v10818_v40  ;;  %v10819_v15 = vld [vmem:[#allocation43_spill] sm:$0xff] }
 0x60e   :  { %v4292_v4 = vadd.f32 %v4288_v36, %v10819_v15 }
 0x610   :  { %5013 = vmatpush2.bf16.msra.mxu0 %v10802_v43  ;;  %5054 = vmatpush2.bf16.msra.mxu1 %v10803_v38 }
 0x611   :  { %5014 = vmatprep.subr.bf16.mxu0 %v10804_v52  ;;  %5055 = vmatprep.subr.bf16.mxu1 %v10805_v51 }
 0x614   :  { %5015 = vmatpush2.bf16.msra.mxu0 %v10806_v31  ;;  %5056 = vmatpush2.bf16.msra.mxu1 %v10807_v54 }
 0x615   :  { %5016 = vmatprep.subr.bf16.mxu0 %v10808_v55  ;;  %5057 = vmatprep.subr.bf16.mxu1 %v10809_v56  ;;  %v4293_v55 = vadd.f32 %v4289_v46, %v8742_v35 }
 0x618   :  { %5017 = vmatpush2.bf16.msra.mxu0 %v10810_v57  ;;  %5058 = vmatpush2.bf16.msra.mxu1 %v10811_v58 }
 0x619   :  { %v3450_v59 = vpop.xlane.xlu0 %3449  ;;  %5308 = vmatprep.subr.bf16.mxu0 %v9742_v2  ;;  %5349 = vmatprep.subr.bf16.mxu1 %v9744_v9 }
 0x61a   :  { %v3451_v61 = vadd.f32 %v3450_v59, %v10812_v60 }
 0x61c   :  { %v3456_v63 = vrot.slane %v3451_v61, %v10813_v62 }
 0x61e   :  { %3458 = vst.msk [vmem:[#allocation14 + $0x3] sm:$0x1] %vm997_vm0, %v3456_v63  ;;  %v4290_v63 = vmul.f32 %v10815_v12, %v10542_v3 }
 0x67b   :  { %v4200_v13 = vpop.f32.mrf.mxu0  ;;  %v4241_v14 = vpop.f32.mrf.mxu1 }
 0x67c   :  { %v4201_v19 = vadd.f32 %v4200_v13, %v10814_v17  ;;  %v4242_v5 = vadd.f32 %v4241_v14, %v8832_v18 }
 0x67d   :  { %v4202_v20 = vpop.f32.mrf.mxu0  ;;  %v4243_v25 = vpop.f32.mrf.mxu1 }
 0x67e   :  { %v4248_v28 = vmul.f32 0.5, %v4201_v19  ;;  %v4203_v1 = vadd.f32 %v4202_v20, %v8828_v10  ;;  %v4244_v42 = vadd.f32 %v4243_v25, %v8837_v41  ;;  %v4294_v20 = vadd.f32 %v4290_v63, %v8751_v32  ;;  %v9815_v63 = vld [vmem:[#allocation11 + $0x64] ss:$16 sps:$4 sm:$0xff]  }
 0x67f   :  { %v4204_v22 = vpop.f32.mrf.mxu0  ;;  %v4245_v23 = vpop.f32.mrf.mxu1 }
 0x680   :  { %8243 = vtanh.f32 %v4248_v28  ;;  %v4252_v27 = vmul.f32 0.5, %v4203_v1  ;;  %v4257_v49 = vmul.f32 0.5, %v4244_v42 }
 0x681   :  { %v4205_v37 = vpop.f32.mrf.mxu0  ;;  %v4246_v30 = vpop.f32.mrf.mxu1 }
 0x682   :  { %8245 = vtanh.f32 %v4252_v27 }
 0x683   :  { %8247 = vtanh.f32 %v4242_v5 }
 0x684   :  { %8249 = vtanh.f32 %v4257_v49 }
 0x68d   :  { %v8244_v11 = vpop.eup %8243 }
 0x68e   :  { %v4250_v44 = vmul.f32 0.5, %v8244_v11 }
 0x68f   :  { %v8246_v7 = vpop.eup %8245 }
 0x690   :  { %v4251_v26 = vadd.f32 0.5, %v4250_v44  ;;  %v4254_v53 = vmul.f32 0.5, %v8246_v7  ;;  %v8248_v39 = vpop.eup %8247 }
 0x691   :  { %v8250_v52 = vpop.eup %8249 }
 0x692   :  { %v4255_v8 = vadd.f32 0.5, %v4254_v53  ;;  %v4262_v29 = vmul.f32 %v8248_v39, %v4251_v26  ;;  %v4259_v59 = vmul.f32 0.5, %v8250_v52  ;;  %v9783_v52 = vld [vmem:[#allocation11 + $0xc0] ss:$16 sps:$4 sm:$0xff]  }
 0x694   :  { %v4261_v50 = vmul.f32 %v4255_v8, %v9620_v6  ;;  %v4260_v25 = vadd.f32 0.5, %v4259_v59  ;;  %v9809_v59 = vld [vmem:[#allocation11 + $0x80] ss:$16 sps:$4 sm:$0xff]  }
 0x696   :  { %v9755_v0 = vadd.f32 %v4262_v29, %v4261_v50 }
 0x698   :  { %8251 = vtanh.f32 %v9755_v0 }
 0x69b   :  { %v4522_v43 = vpop.f32.mrf.mxu0  ;;  %v4563_v6 = vpop.f32.mrf.mxu1 }
 0x69c   :  { %v4570_v38 = vadd.f32 %v4522_v43, %v4291_v45  ;;  %v4572_v19 = vadd.f32 %v4563_v6, %v4293_v55  ;;  %v9775_v43 = vld [vmem:[#allocation11 + $0xe8] ss:$16 sps:$4 sm:$0xff]   ;;  %v9797_v55 = vld [vmem:[#allocation11 + $0xa0] ss:$16 sps:$4 sm:$0xff]  }
 0x69d   :  { %v4524_v51 = vpop.f32.mrf.mxu0  ;;  %v4565_v31 = vpop.f32.mrf.mxu1 }
 0x69e   :  { %v4574_v54 = vmul.f32 0.5, %v4570_v38  ;;  %v4571_v56 = vadd.f32 %v4524_v51, %v4292_v4  ;;  %v4573_v22 = vadd.f32 %v4565_v31, %v4294_v20  ;;  %v9773_v4 = vld [vmem:[#allocation11 + $0xe0] ss:$16 sps:$4 sm:$0xff]   ;;  %v9779_v38 = vld [vmem:[#allocation11 + $0xcc] ss:$16 sps:$4 sm:$0xff]  }
 0x69f   :  { %v4526_v57 = vpop.f32.mrf.mxu0  ;;  %v4567_v58 = vpop.f32.mrf.mxu1  ;;  %v9785_v51 = vld [vmem:[#allocation11 + $0xc8] ss:$16 sps:$4 sm:$0xff]   ;;  %v9789_v31 = vld [vmem:[#allocation11 + $0xa4] ss:$16 sps:$4 sm:$0xff]  }
 0x6a0   :  { %8253 = vtanh.f32 %v4574_v54  ;;  %v4578_v61 = vmul.f32 0.5, %v4571_v56  ;;  %v4583_v37 = vmul.f32 0.5, %v4573_v22  ;;  %v9791_v54 = vld [vmem:[#allocation11 + $0xac] ss:$16 sps:$4 sm:$0xff]   ;;  %v9799_v56 = vld [vmem:[#allocation11 + $0xa8] ss:$16 sps:$4 sm:$0xff]  }
 0x6a1   :  { %v4527_v13 = vpop.f32.mrf.mxu0  ;;  %v4568_v14 = vpop.f32.mrf.mxu1  ;;  %v9803_v57 = vld [vmem:[#allocation11 + $0x84] ss:$16 sps:$4 sm:$0xff]   ;;  %v9805_v58 = vld [vmem:[#allocation11 + $0x8c] ss:$16 sps:$4 sm:$0xff]  }
 0x6a2   :  { %8255 = vtanh.f32 %v4578_v61  ;;  %v9811_v61 = vld [vmem:[#allocation11 + $0x88] ss:$16 sps:$4 sm:$0xff]   ;;  %v9817_v13 = vld [vmem:[#allocation11 + $0x6c] ss:$16 sps:$4 sm:$0xff]   ;;  %v9821_v14 = vld [vmem:[#allocation11 + $0x60] ss:$16 sps:$4 sm:$0xff]  }
 0x6a3   :  { %8257 = vtanh.f32 %v4572_v19  ;;  %v9823_v19 = vld [vmem:[#allocation11 + $0x68] ss:$16 sps:$4 sm:$0xff]   ;;  %v9827_v20 = vld [vmem:[#allocation11 + $0x44] ss:$16 sps:$4 sm:$0xff]  }
 0x6a4   :  { %8259 = vtanh.f32 %v4583_v37  ;;  %v9839_v22 = vld [vmem:[#allocation11 + $0x24] ss:$16 sps:$4 sm:$0xff]   ;;  %v9847_v37 = vld [vmem:[#allocation11 + $0x28] ss:$16 sps:$4 sm:$0xff]  }
 0x6a5   :  { %v8252_v28 = vpop.eup %8251 }
 0x6a6   :  { %v4265_v1 = vmul.f32 %v8252_v28, %v4260_v25  ;;  %v9829_v25 = vld [vmem:[#allocation11 + $0x4c] ss:$16 sps:$4 sm:$0xff]   ;;  %v9833_v28 = vld [vmem:[#allocation11 + $0x40] ss:$16 sps:$4 sm:$0xff]  }
 0x6a8   :  { %v4268_v23 = vmul.f32 %v9636_v47, %v4265_v1  ;;  %v4266_v27 = vpack.c.bf16 %v4265_v1, %v4265_v1  ;;  %v9835_v1 = vld [vmem:[#allocation11 + $0x48] ss:$16 sps:$4 sm:$0xff]  }
 0x6aa   :  { %4269 = vadd.xlane.f32.xlu0 %v4268_v23  ;;  %4267 = vst [vmem:[#allocation4 + $0x4] sm:$0xf] %v4266_v27  ;;  %v9841_v23 = vld [vmem:[#allocation11 + $0x2c] ss:$16 sps:$4 sm:$0xff]   ;;  %v9845_v27 = vld [vmem:[#allocation11 + $0x20] ss:$16 sps:$4 sm:$0xff]  }
 0x6ad   :  { %v8254_v30 = vpop.eup %8253 }
 0x6ae   :  { %v4576_v5 = vmul.f32 0.5, %v8254_v30  ;;  %v9851_v30 = vld [vmem:[#allocation11 + $0x4] ss:$16 sps:$4 sm:$0xff]  }
 0x6af   :  { %v8256_v42 = vpop.eup %8255 }
 0x6b0   :  { %v4577_v49 = vadd.f32 0.5, %v4576_v5  ;;  %v4580_v11 = vmul.f32 0.5, %v8256_v42  ;;  %v8258_v7 = vpop.eup %8257  ;;  %v9853_v5 = vld [vmem:[#allocation11 + $0xc] ss:$16 sps:$4 sm:$0xff]   ;;  %v9857_v42 = vld [vmem:[#allocation11] ss:$16 sps:$4 sm:$0xff]  }
 0x6b1   :  { %v8260_v39 = vpop.eup %8259 }
 0x6b2   :  { %v4581_v44 = vadd.f32 0.5, %v4580_v11  ;;  %v4588_v53 = vmul.f32 %v8258_v7, %v4577_v49  ;;  %v4585_v50 = vmul.f32 0.5, %v8260_v39  ;;  %v9859_v49 = vld [vmem:[#allocation11 + $0x8] ss:$16 sps:$4 sm:$0xff]   ;;  %v9867_v7 = vld [vmem:[#allocation12 + $0xec] ss:$16 sps:$4 sm:$0xff]  }
 0x6b3   :  { %10820 = vst [vmem:[#allocation93_spill] sm:$0xff] %v9867_v7  ;;  %v9877_v39 = vld [vmem:[#allocation12 + $0xc4] ss:$16 sps:$4 sm:$0xff]  }
 0x6b4   :  { %v4587_v26 = vmul.f32 %v4581_v44, %v9640_v24  ;;  %v4586_v29 = vadd.f32 0.5, %v4585_v50  ;;  %v9777_v24 = vld [vmem:[#allocation11 + $0xc4] ss:$16 sps:$4 sm:$0xff]   ;;  %10823 = vst [vmem:[#allocation22_spill] sm:$0xff] %v9877_v39  ;;  %v9879_v50 = vld [vmem:[#allocation12 + $0xcc] ss:$16 sps:$4 sm:$0xff]  }
 0x6b5   :  { %v9865_v44 = vld [vmem:[#allocation12 + $0xe4] ss:$16 sps:$4 sm:$0xff]   ;;  %10824 = vst [vmem:[#allocation24_spill] sm:$0xff] %v9879_v50 }
 0x6b6   :  { %v9770_v8 = vadd.f32 %v4588_v53, %v4587_v26  ;;  %v9869_v26 = vld [vmem:[#allocation12 + $0xe0] ss:$16 sps:$4 sm:$0xff]   ;;  %v9871_v53 = vld [vmem:[#allocation12 + $0xe8] ss:$16 sps:$4 sm:$0xff]  }
 0x6b7   :  { %10821 = vst [vmem:[#allocation94_spill] sm:$0xff] %v9869_v26  ;;  %10822 = vst [vmem:[#allocation20_spill] sm:$0xff] %v9871_v53 }
 0x6b8   :  { %8261 = vtanh.f32 %v9770_v8 }
 0x6c5   :  { %v8262_v12 = vpop.eup %8261 }
 0x6c6   :  { %v4591_v48 = vmul.f32 %v8262_v12, %v4586_v29  ;;  %v9881_v29 = vld [vmem:[#allocation12 + $0xc0] ss:$16 sps:$4 sm:$0xff]   ;;  %v9883_v12 = vld [vmem:[#allocation12 + $0xc8] ss:$16 sps:$4 sm:$0xff]  }
 0x6c7   :  { %10825 = vst [vmem:[#allocation25_spill] sm:$0xff] %v9881_v29  ;;  %10826 = vst [vmem:[#allocation27_spill] sm:$0xff] %v9883_v12 }
 0x6c8   :  { %v4592_v36 = vpack.c.bf16 %v4591_v48, %v4591_v48 }
 0x6ca   :  { %4593 = vst [vmem:[#allocation4] sm:$0xf] %v4592_v36 }
 0x6d1   :  { %v4594_v45 = vld [vmem:[#allocation4] sm:$0xff] }
 0x6d2   :  { %v7288_v46 = vcombine.high %v4594_v45, %v4594_v45  ;;  %v7287_v6 = vcombine.low %v4594_v45, %v4594_v45  ;;  %v5115_v11 = vld [vmem:[#allocation4] sm:$0xf]  ;;  %v9890_v45 = vld [vmem:[#allocation12 + $0xa4] ss:$16 sps:$4 sm:$0xff]  }
 0x6d3   :  { %10827 = vst [vmem:[#allocation28_spill] sm:$0xff] %v9890_v45 }
 0x6d4   :  { %5018 = vmatprep.mubr.bf16.mxu0 %v7288_v46  ;;  %5059 = vmatprep.mubr.bf16.mxu1 %v7288_v46  ;;  %v9892_v46 = vld [vmem:[#allocation12 + $0xac] ss:$16 sps:$4 sm:$0xff]  }
 0x6d5   :  { %5019 = vmatmul.mubr.bf16.vlgmr.msra.gmra.mxu0 %v7287_v6  ;;  %5060 = vmatmul.mubr.bf16.vlgmr.msra.gmra.mxu1 %v7287_v6  ;;  %10828 = vst [vmem:[#allocation30_spill] sm:$0xff] %v9892_v46  ;;  %v9894_v6 = vld [vmem:[#allocation12 + $0xa0] ss:$16 sps:$4 sm:$0xff]  }
 0x6d6   :  { %5309 = vmatpush1.bf16.msra.mxu0 %v9773_v4  ;;  %5350 = vmatpush1.bf16.msra.mxu1 %v9775_v43  ;;  %10829 = vst [vmem:[#allocation31_spill] sm:$0xff] %v9894_v6 }
 0x6d7   :  { %5310 = vmatprep.subr.bf16.mxu0 %v9777_v24  ;;  %5351 = vmatprep.subr.bf16.mxu1 %v9779_v38 }
 0x6d8   :  { %5340 = vmatprep.mubr.bf16.mxu0 %v10516_v34  ;;  %5381 = vmatprep.mubr.bf16.mxu1 %v10516_v34 }
 0x6da   :  { %5311 = vmatpush1.bf16.msra.mxu0 %v9783_v52  ;;  %5352 = vmatpush1.bf16.msra.mxu1 %v9785_v51 }
 0x6db   :  { %5312 = vmatprep.subr.bf16.mxu0 %v9789_v31  ;;  %5353 = vmatprep.subr.bf16.mxu1 %v9791_v54 }
 0x6de   :  { %5313 = vmatpush1.bf16.msra.mxu0 %v9797_v55  ;;  %5354 = vmatpush1.bf16.msra.mxu1 %v9799_v56 }
 0x6df   :  { %5314 = vmatprep.subr.bf16.mxu0 %v9803_v57  ;;  %5355 = vmatprep.subr.bf16.mxu1 %v9805_v58 }
 0x6e2   :  { %5315 = vmatpush1.bf16.msra.mxu0 %v9809_v59  ;;  %5356 = vmatpush1.bf16.msra.mxu1 %v9811_v61 }
 0x6e3   :  { %5316 = vmatprep.subr.bf16.mxu0 %v9815_v63  ;;  %5357 = vmatprep.subr.bf16.mxu1 %v9817_v13 }
 0x6e6   :  { %5317 = vmatpush1.bf16.msra.mxu0 %v9821_v14  ;;  %5358 = vmatpush1.bf16.msra.mxu1 %v9823_v19 }
 0x6e7   :  { %5318 = vmatprep.subr.bf16.mxu0 %v9827_v20  ;;  %5359 = vmatprep.subr.bf16.mxu1 %v9829_v25 }
 0x6ea   :  { %5319 = vmatpush1.bf16.msra.mxu0 %v9833_v28  ;;  %5360 = vmatpush1.bf16.msra.mxu1 %v9835_v1 }
 0x6eb   :  { %5320 = vmatprep.subr.bf16.mxu0 %v9839_v22  ;;  %5361 = vmatprep.subr.bf16.mxu1 %v9841_v23 }
 0x6ee   :  { %5321 = vmatpush1.bf16.msra.mxu0 %v9845_v27  ;;  %5362 = vmatpush1.bf16.msra.mxu1 %v9847_v37 }
 0x6ef   :  { %5322 = vmatprep.subr.bf16.mxu0 %v9851_v30  ;;  %5363 = vmatprep.subr.bf16.mxu1 %v9853_v5 }
 0x6f2   :  { %5323 = vmatpush1.bf16.msra.mxu0 %v9857_v42  ;;  %5364 = vmatpush1.bf16.msra.mxu1 %v9859_v49 }
 0x6f3   :  { %5806 = vmatprep.subr.bf16.mxu0 %v9865_v44  ;;  %5847 = vmatprep.subr.bf16.mxu1 %v9867_v7 }
 0x6f5   :  { %5341 = vmatmul.mubr.bf16.vlgmr.msra.gmra.mxu0 %v5115_v11  ;;  %5382 = vmatmul.mubr.bf16.vlgmr.msra.gmra.mxu1 %v5115_v11  ;;  %v9896_v11 = vld [vmem:[#allocation12 + $0xa8] ss:$16 sps:$4 sm:$0xff]  }
 0x6f6   :  { %5807 = vmatpush1.bf16.msra.mxu0 %v9869_v26  ;;  %5848 = vmatpush1.bf16.msra.mxu1 %v9871_v53  ;;  %10830 = vst [vmem:[#allocation32_spill] sm:$0xff] %v9896_v11 }
 0x6f7   :  { %5808 = vmatprep.subr.bf16.mxu0 %v9877_v39  ;;  %5849 = vmatprep.subr.bf16.mxu1 %v9879_v50 }
 0x6fa   :  { %5809 = vmatpush1.bf16.msra.mxu0 %v9881_v29  ;;  %5850 = vmatpush1.bf16.msra.mxu1 %v9883_v12  ;;  %v9908_v12 = vld [vmem:[#allocation12 + $0x80] ss:$16 sps:$4 sm:$0xff]   ;;  %v9910_v29 = vld [vmem:[#allocation12 + $0x88] ss:$16 sps:$4 sm:$0xff]  }
 0x6fb   :  { %5810 = vmatprep.subr.bf16.mxu0 %v9890_v45  ;;  %5851 = vmatprep.subr.bf16.mxu1 %v9892_v46  ;;  %10833 = vst [vmem:[#allocation37_spill] sm:$0xff] %v9908_v12  ;;  %10834 = vst [vmem:[#allocation39_spill] sm:$0xff] %v9910_v29  ;;  %v10047_v46 = vld [vmem:[#allocation12 + $0x10c] ss:$16 sps:$4 sm:$0xff]  }
 0x6fc   :  { %10880 = vst [vmem:[#allocation85_spill] sm:$0xff] %v10047_v46 }
 0x6fe   :  { %5811 = vmatpush1.bf16.msra.mxu0 %v9894_v6  ;;  %5852 = vmatpush1.bf16.msra.mxu1 %v9896_v11  ;;  %v9922_v11 = vld [vmem:[#allocation12 + $0x68] ss:$16 sps:$4 sm:$0xff]   ;;  %v10044_v6 = vld [vmem:[#allocation12 + $0x104] ss:$16 sps:$4 sm:$0xff]  }
 0x6ff   :  { %10838 = vst [vmem:[#allocation45_spill] sm:$0xff] %v9922_v11  ;;  %10879 = vst [vmem:[#allocation90_spill] sm:$0xff] %v10044_v6 }
 0x733   :  { %v4270_v48 = vpop.xlane.xlu0 %4269 }
 0x734   :  { %v4271_v36 = vadd.f32 %v4270_v48, %v10812_v60  ;;  %v9904_v48 = vld [vmem:[#allocation12 + $0x84] ss:$16 sps:$4 sm:$0xff]   ;;  %v9906_v60 = vld [vmem:[#allocation12 + $0x8c] ss:$16 sps:$4 sm:$0xff]  }
 0x735   :  { %10831 = vst [vmem:[#allocation33_spill] sm:$0xff] %v9904_v48  ;;  %10832 = vst [vmem:[#allocation36_spill] sm:$0xff] %v9906_v60  ;;  %5812 = vmatprep.subr.bf16.mxu0 %v9904_v48  ;;  %5853 = vmatprep.subr.bf16.mxu1 %v9906_v60  ;;  %v9928_v60 = vld [vmem:[#allocation12 + $0x44] ss:$16 sps:$4 sm:$0xff]   ;;  %v9934_v48 = vld [vmem:[#allocation12 + $0x48] ss:$16 sps:$4 sm:$0xff]  }
 0x736   :  { %v4276_v53 = vrot.slane %v4271_v36, %v10813_v62  ;;  %5813 = vmatpush1.bf16.msra.mxu0 %v9908_v12  ;;  %5854 = vmatpush1.bf16.msra.mxu1 %v9910_v29  ;;  %v9916_v36 = vld [vmem:[#allocation12 + $0x64] ss:$16 sps:$4 sm:$0xff]   ;;  %v9918_v62 = vld [vmem:[#allocation12 + $0x6c] ss:$16 sps:$4 sm:$0xff]   ;;  %10839 = vst [vmem:[#allocation46_spill] sm:$0xff] %v9928_v60  ;;  %10842 = vst [vmem:[#allocation49_spill] sm:$0xff] %v9934_v48 }
 0x737   :  { %10835 = vst [vmem:[#allocation38_spill] sm:$0xff] %v9916_v36  ;;  %10836 = vst [vmem:[#allocation44_spill] sm:$0xff] %v9918_v62  ;;  %5814 = vmatprep.subr.bf16.mxu0 %v9916_v36  ;;  %5855 = vmatprep.subr.bf16.mxu1 %v9918_v62  ;;  %v9930_v12 = vld [vmem:[#allocation12 + $0x4c] ss:$16 sps:$4 sm:$0xff]   ;;  %v9932_v29 = vld [vmem:[#allocation12 + $0x40] ss:$16 sps:$4 sm:$0xff]  }
 0x738   :  { %4278 = vst.msk [vmem:[#allocation14 + $0x4] sm:$0x1] %vm997_vm0, %v4276_v53  ;;  %v9920_v53 = vld [vmem:[#allocation12 + $0x60] ss:$16 sps:$4 sm:$0xff]   ;;  %10840 = vst [vmem:[#allocation47_spill] sm:$0xff] %v9930_v12 }
 0x739   :  { %10837 = vst [vmem:[#allocation35_spill] sm:$0xff] %v9920_v53  ;;  %10841 = vst [vmem:[#allocation48_spill] sm:$0xff] %v9932_v29  ;;  %v9940_v62 = vld [vmem:[#allocation12 + $0x24] ss:$16 sps:$4 sm:$0xff]   ;;  %v9946_v36 = vld [vmem:[#allocation12 + $0x28] ss:$16 sps:$4 sm:$0xff]  }
 0x73a   :  { %5815 = vmatpush1.bf16.msra.mxu0 %v9920_v53  ;;  %5856 = vmatpush1.bf16.msra.mxu1 %v9922_v11  ;;  %10843 = vst [vmem:[#allocation50_spill] sm:$0xff] %v9940_v62  ;;  %v9942_v53 = vld [vmem:[#allocation12 + $0x2c] ss:$16 sps:$4 sm:$0xff]   ;;  %v9944_v11 = vld [vmem:[#allocation12 + $0x20] ss:$16 sps:$4 sm:$0xff]   ;;  %10846 = vst [vmem:[#allocation53_spill] sm:$0xff] %v9946_v36 }
 0x73b   :  { %5816 = vmatprep.subr.bf16.mxu0 %v9928_v60  ;;  %5857 = vmatprep.subr.bf16.mxu1 %v9930_v12  ;;  %10844 = vst [vmem:[#allocation51_spill] sm:$0xff] %v9942_v53  ;;  %10845 = vst [vmem:[#allocation52_spill] sm:$0xff] %v9944_v11  ;;  %v9952_v12 = vld [vmem:[#allocation12 + $0x4] ss:$16 sps:$4 sm:$0xff]   ;;  %v9958_v60 = vld [vmem:[#allocation12 + $0x8] ss:$16 sps:$4 sm:$0xff]  }
 0x73c   :  { %10847 = vst [vmem:[#allocation54_spill] sm:$0xff] %v9952_v12  ;;  %10850 = vst [vmem:[#allocation57_spill] sm:$0xff] %v9958_v60 }
 0x73e   :  { %5817 = vmatpush1.bf16.msra.mxu0 %v9932_v29  ;;  %5858 = vmatpush1.bf16.msra.mxu1 %v9934_v48  ;;  %v9954_v29 = vld [vmem:[#allocation12 + $0xc] ss:$16 sps:$4 sm:$0xff]   ;;  %v9956_v48 = vld [vmem:[#allocation12] ss:$16 sps:$4 sm:$0xff]  }
 0x73f   :  { %5818 = vmatprep.subr.bf16.mxu0 %v9940_v62  ;;  %5859 = vmatprep.subr.bf16.mxu1 %v9942_v53  ;;  %10848 = vst [vmem:[#allocation55_spill] sm:$0xff] %v9954_v29  ;;  %10849 = vst [vmem:[#allocation56_spill] sm:$0xff] %v9956_v48  ;;  %v9964_v53 = vld [vmem:[#allocation12 + $0x1e4] ss:$16 sps:$4 sm:$0xff]   ;;  %v9970_v62 = vld [vmem:[#allocation12 + $0x1e8] ss:$16 sps:$4 sm:$0xff]  }
 0x740   :  { %10851 = vst [vmem:[#allocation58_spill] sm:$0xff] %v9964_v53  ;;  %10854 = vst [vmem:[#allocation61_spill] sm:$0xff] %v9970_v62 }
 0x742   :  { %5819 = vmatpush1.bf16.msra.mxu0 %v9944_v11  ;;  %5860 = vmatpush1.bf16.msra.mxu1 %v9946_v36  ;;  %v9966_v11 = vld [vmem:[#allocation12 + $0x1ec] ss:$16 sps:$4 sm:$0xff]   ;;  %v9968_v36 = vld [vmem:[#allocation12 + $0x1e0] ss:$16 sps:$4 sm:$0xff]  }
 0x743   :  { %5820 = vmatprep.subr.bf16.mxu0 %v9952_v12  ;;  %5861 = vmatprep.subr.bf16.mxu1 %v9954_v29  ;;  %10852 = vst [vmem:[#allocation59_spill] sm:$0xff] %v9966_v11  ;;  %10853 = vst [vmem:[#allocation60_spill] sm:$0xff] %v9968_v36  ;;  %v9976_v29 = vld [vmem:[#allocation12 + $0x1c4] ss:$16 sps:$4 sm:$0xff]   ;;  %v9982_v12 = vld [vmem:[#allocation12 + $0x1c8] ss:$16 sps:$4 sm:$0xff]  }
 0x744   :  { %10855 = vst [vmem:[#allocation62_spill] sm:$0xff] %v9976_v29  ;;  %10858 = vst [vmem:[#allocation65_spill] sm:$0xff] %v9982_v12 }
 0x746   :  { %5821 = vmatpush1.bf16.msra.mxu0 %v9956_v48  ;;  %5862 = vmatpush1.bf16.msra.mxu1 %v9958_v60  ;;  %v9978_v48 = vld [vmem:[#allocation12 + $0x1cc] ss:$16 sps:$4 sm:$0xff]   ;;  %v9980_v60 = vld [vmem:[#allocation12 + $0x1c0] ss:$16 sps:$4 sm:$0xff]  }
 0x747   :  { %5822 = vmatprep.subr.bf16.mxu0 %v9964_v53  ;;  %5863 = vmatprep.subr.bf16.mxu1 %v9966_v11  ;;  %10856 = vst [vmem:[#allocation63_spill] sm:$0xff] %v9978_v48  ;;  %10857 = vst [vmem:[#allocation64_spill] sm:$0xff] %v9980_v60  ;;  %v9988_v11 = vld [vmem:[#allocation12 + $0x1a4] ss:$16 sps:$4 sm:$0xff]   ;;  %v9994_v53 = vld [vmem:[#allocation12 + $0x1a8] ss:$16 sps:$4 sm:$0xff]  }
 0x748   :  { %10859 = vst [vmem:[#allocation66_spill] sm:$0xff] %v9988_v11  ;;  %10862 = vst [vmem:[#allocation69_spill] sm:$0xff] %v9994_v53 }
 0x74a   :  { %5823 = vmatpush2.bf16.msra.mxu0 %v9968_v36  ;;  %5864 = vmatpush2.bf16.msra.mxu1 %v9970_v62  ;;  %v9990_v36 = vld [vmem:[#allocation12 + $0x1ac] ss:$16 sps:$4 sm:$0xff]   ;;  %v9992_v62 = vld [vmem:[#allocation12 + $0x1a0] ss:$16 sps:$4 sm:$0xff]  }
 0x74b   :  { %5824 = vmatprep.subr.bf16.mxu0 %v9976_v29  ;;  %5865 = vmatprep.subr.bf16.mxu1 %v9978_v48  ;;  %10860 = vst [vmem:[#allocation67_spill] sm:$0xff] %v9990_v36  ;;  %10861 = vst [vmem:[#allocation68_spill] sm:$0xff] %v9992_v62  ;;  %v10000_v48 = vld [vmem:[#allocation12 + $0x184] ss:$16 sps:$4 sm:$0xff]   ;;  %v10006_v29 = vld [vmem:[#allocation12 + $0x188] ss:$16 sps:$4 sm:$0xff]  }
 0x74c   :  { %10863 = vst [vmem:[#allocation70_spill] sm:$0xff] %v10000_v48  ;;  %10866 = vst [vmem:[#allocation73_spill] sm:$0xff] %v10006_v29 }
 0x74e   :  { %5825 = vmatpush2.bf16.msra.mxu0 %v9980_v60  ;;  %5866 = vmatpush2.bf16.msra.mxu1 %v9982_v12  ;;  %v10002_v60 = vld [vmem:[#allocation12 + $0x18c] ss:$16 sps:$4 sm:$0xff]   ;;  %v10004_v12 = vld [vmem:[#allocation12 + $0x180] ss:$16 sps:$4 sm:$0xff]  }
 0x74f   :  { %5826 = vmatprep.subr.bf16.mxu0 %v9988_v11  ;;  %5867 = vmatprep.subr.bf16.mxu1 %v9990_v36  ;;  %10864 = vst [vmem:[#allocation71_spill] sm:$0xff] %v10002_v60  ;;  %10865 = vst [vmem:[#allocation72_spill] sm:$0xff] %v10004_v12  ;;  %v10012_v36 = vld [vmem:[#allocation12 + $0x164] ss:$16 sps:$4 sm:$0xff]   ;;  %v10018_v11 = vld [vmem:[#allocation12 + $0x168] ss:$16 sps:$4 sm:$0xff]  }
 0x750   :  { %10867 = vst [vmem:[#allocation74_spill] sm:$0xff] %v10012_v36  ;;  %10870 = vst [vmem:[#allocation77_spill] sm:$0xff] %v10018_v11 }
 0x752   :  { %5827 = vmatpush2.bf16.msra.mxu0 %v9992_v62  ;;  %5868 = vmatpush2.bf16.msra.mxu1 %v9994_v53  ;;  %v10014_v62 = vld [vmem:[#allocation12 + $0x16c] ss:$16 sps:$4 sm:$0xff]   ;;  %v10016_v53 = vld [vmem:[#allocation12 + $0x160] ss:$16 sps:$4 sm:$0xff]  }
 0x753   :  { %5828 = vmatprep.subr.bf16.mxu0 %v10000_v48  ;;  %5869 = vmatprep.subr.bf16.mxu1 %v10002_v60  ;;  %10868 = vst [vmem:[#allocation75_spill] sm:$0xff] %v10014_v62  ;;  %10869 = vst [vmem:[#allocation76_spill] sm:$0xff] %v10016_v53  ;;  %v10024_v60 = vld [vmem:[#allocation12 + $0x144] ss:$16 sps:$4 sm:$0xff]   ;;  %v10030_v48 = vld [vmem:[#allocation12 + $0x148] ss:$16 sps:$4 sm:$0xff]  }
 0x754   :  { %10871 = vst [vmem:[#allocation78_spill] sm:$0xff] %v10024_v60  ;;  %10874 = vst [vmem:[#allocation81_spill] sm:$0xff] %v10030_v48 }
 0x756   :  { %5829 = vmatpush2.bf16.msra.mxu0 %v10004_v12  ;;  %5870 = vmatpush2.bf16.msra.mxu1 %v10006_v29  ;;  %v10026_v12 = vld [vmem:[#allocation12 + $0x14c] ss:$16 sps:$4 sm:$0xff]   ;;  %v10028_v29 = vld [vmem:[#allocation12 + $0x140] ss:$16 sps:$4 sm:$0xff]  }
 0x757   :  { %5830 = vmatprep.subr.bf16.mxu0 %v10012_v36  ;;  %5871 = vmatprep.subr.bf16.mxu1 %v10014_v62  ;;  %10872 = vst [vmem:[#allocation79_spill] sm:$0xff] %v10026_v12  ;;  %10873 = vst [vmem:[#allocation80_spill] sm:$0xff] %v10028_v29  ;;  %v10036_v62 = vld [vmem:[#allocation12 + $0x120] ss:$16 sps:$4 sm:$0xff]   ;;  %v10042_v36 = vld [vmem:[#allocation12 + $0x12c] ss:$16 sps:$4 sm:$0xff]  }
 0x758   :  { %10875 = vst [vmem:[#allocation82_spill] sm:$0xff] %v10036_v62  ;;  %10878 = vst [vmem:[#allocation86_spill] sm:$0xff] %v10042_v36 }
 0x75a   :  { %5831 = vmatpush2.bf16.msra.mxu0 %v10016_v53  ;;  %5872 = vmatpush2.bf16.msra.mxu1 %v10018_v11  ;;  %v10038_v53 = vld [vmem:[#allocation12 + $0x124] ss:$16 sps:$4 sm:$0xff]   ;;  %v10040_v11 = vld [vmem:[#allocation12 + $0x128] ss:$16 sps:$4 sm:$0xff]  }
 0x75b   :  { %5832 = vmatprep.subr.bf16.mxu0 %v10024_v60  ;;  %5873 = vmatprep.subr.bf16.mxu1 %v10026_v12  ;;  %10876 = vst [vmem:[#allocation83_spill] sm:$0xff] %v10038_v53  ;;  %10877 = vst [vmem:[#allocation84_spill] sm:$0xff] %v10040_v11 }
 0x75e   :  { %5833 = vmatpush2.bf16.msra.mxu0 %v10028_v29  ;;  %5874 = vmatpush2.bf16.msra.mxu1 %v10030_v48  ;;  %v10052_v48 = vld [vmem:[#allocation12 + $0x100] ss:$16 sps:$4 sm:$0xff]   ;;  %v10054_v29 = vld [vmem:[#allocation12 + $0x108] ss:$16 sps:$4 sm:$0xff]  }
 0x75f   :  { %5834 = vmatprep.subr.bf16.mxu0 %v10038_v53  ;;  %5875 = vmatprep.subr.bf16.mxu1 %v10042_v36  ;;  %10881 = vst [vmem:[#allocation88_spill] sm:$0xff] %v10052_v48  ;;  %10882 = vst [vmem:[#allocation87_spill] sm:$0xff] %v10054_v29 }
 0x762   :  { %5835 = vmatpush2.bf16.msra.mxu0 %v10036_v62  ;;  %5876 = vmatpush2.bf16.msra.mxu1 %v10040_v11 }
 0x763   :  { %5836 = vmatprep.subr.bf16.mxu0 %v10044_v6  ;;  %5877 = vmatprep.subr.bf16.mxu1 %v10047_v46 }
 0x766   :  { %5837 = vmatpush2.bf16.msra.mxu0 %v10052_v48  ;;  %5878 = vmatpush2.bf16.msra.mxu1 %v10054_v29 }
 0x767   :  { %6128 = vmatprep.subr.bf16.mxu0 %v9742_v2  ;;  %6169 = vmatprep.subr.bf16.mxu1 %v9744_v9 }
 0x795   :  { %v5020_v36 = vpop.f32.mrf.mxu0  ;;  %v5061_v62 = vpop.f32.mrf.mxu1 }
 0x796   :  { %v5021_v11 = vadd.f32 %v5020_v36, %v10814_v17  ;;  %v5062_v29 = vadd.f32 %v5061_v62, %v8832_v18 }
 0x797   :  { %v5022_v53 = vpop.f32.mrf.mxu0  ;;  %v5063_v12 = vpop.f32.mrf.mxu1 }
 0x798   :  { %v5068_v60 = vmul.f32 0.5, %v5021_v11  ;;  %v5023_v45 = vadd.f32 %v5022_v53, %v8828_v10  ;;  %v5064_v2 = vadd.f32 %v5063_v12, %v8837_v41 }
 0x799   :  { %v5024_v6 = vpop.f32.mrf.mxu0  ;;  %v5065_v50 = vpop.f32.mrf.mxu1 }
 0x79a   :  { %8263 = vtanh.f32 %v5068_v60  ;;  %v5072_v46 = vmul.f32 0.5, %v5023_v45  ;;  %v5077_v9 = vmul.f32 0.5, %v5064_v2 }
 0x79b   :  { %v5025_v48 = vpop.f32.mrf.mxu0  ;;  %v5066_v39 = vpop.f32.mrf.mxu1 }
 0x79c   :  { %8265 = vtanh.f32 %v5072_v46  ;;  %v10883_v39 = vld [vmem:[#allocation26_spill] sm:$0xff] }
 0x79d   :  { %8267 = vtanh.f32 %v5062_v29  ;;  %v5107_v45 = vmul.f32 %v10883_v39, %v10537_v21  ;;  %v5108_v29 = vmul.f32 %v10883_v39, %v10816_v16 }
 0x79e   :  { %8269 = vtanh.f32 %v5077_v9 }
 0x79f   :  { %v5112_v12 = vadd.f32 %v5108_v29, %v10819_v15 }
 0x7a7   :  { %v8264_v26 = vpop.eup %8263 }
 0x7a8   :  { %v5070_v36 = vmul.f32 0.5, %v8264_v26  ;;  %v5111_v26 = vadd.f32 %v5107_v45, %v10817_v33 }
 0x7a9   :  { %v8266_v17 = vpop.eup %8265 }
 0x7aa   :  { %v5071_v7 = vadd.f32 0.5, %v5070_v36  ;;  %v5074_v11 = vmul.f32 0.5, %v8266_v17  ;;  %v8268_v6 = vpop.eup %8267  ;;  %v5109_v17 = vmul.f32 %v10883_v39, %v10818_v40  ;;  %v5110_v40 = vmul.f32 %v10883_v39, %v10542_v3 }
 0x7ab   :  { %v8270_v48 = vpop.eup %8269 }
 0x7ac   :  { %v5075_v53 = vadd.f32 0.5, %v5074_v11  ;;  %v5082_v50 = vmul.f32 %v8268_v6, %v5071_v7  ;;  %v5113_v11 = vadd.f32 %v5109_v17, %v8742_v35 }
 0x7ae   :  { %v5081_v60 = vmul.f32 %v5075_v53, %v9755_v0 }
 0x7b0   :  { %v10069_v62 = vadd.f32 %v5082_v50, %v5081_v60  ;;  %v5079_v50 = vmul.f32 0.5, %v8270_v48 }
 0x7b2   :  { %8271 = vtanh.f32 %v10069_v62 }
 0x7b5   :  { %v5342_v46 = vpop.f32.mrf.mxu0  ;;  %v5383_v0 = vpop.f32.mrf.mxu1 }
 0x7b6   :  { %v5390_v7 = vadd.f32 %v5342_v46, %v5111_v26  ;;  %v5392_v15 = vadd.f32 %v5383_v0, %v5113_v11  ;;  %v5114_v26 = vadd.f32 %v5110_v40, %v8751_v32  ;;  %v5080_v46 = vadd.f32 0.5, %v5079_v50 }
 0x7b7   :  { %v5344_v2 = vpop.f32.mrf.mxu0  ;;  %v5385_v9 = vpop.f32.mrf.mxu1 }
 0x7b8   :  { %v5394_v36 = vmul.f32 0.5, %v5390_v7  ;;  %v5391_v53 = vadd.f32 %v5344_v2, %v5112_v12  ;;  %v5393_v17 = vadd.f32 %v5385_v9, %v5114_v26 }
 0x7b9   :  { %v5346_v6 = vpop.f32.mrf.mxu0  ;;  %v5387_v60 = vpop.f32.mrf.mxu1 }
 0x7ba   :  { %8273 = vtanh.f32 %v5394_v36  ;;  %v5398_v45 = vmul.f32 0.5, %v5391_v53  ;;  %v5403_v48 = vmul.f32 0.5, %v5393_v17  ;;  %v10916_v17 = vld [vmem:[#allocation59_spill] sm:$0xff] }
 0x7bb   :  { %v5347_v33 = vpop.f32.mrf.mxu0  ;;  %v5388_v29 = vpop.f32.mrf.mxu1 }
 0x7bc   :  { %8275 = vtanh.f32 %v5398_v45 }
 0x7bd   :  { %8277 = vtanh.f32 %v5392_v15 }
 0x7be   :  { %8279 = vtanh.f32 %v5403_v48  ;;  %v10919_v48 = vld [vmem:[#allocation62_spill] sm:$0xff] }
 0x7bf   :  { %v8272_v16 = vpop.eup %8271 }
 0x7c0   :  { %v5085_v7 = vmul.f32 %v8272_v16, %v5080_v46 }
 0x7c2   :  { %v5088_v12 = vmul.f32 %v9636_v47, %v5085_v7  ;;  %v5086_v2 = vpack.c.bf16 %v5085_v7, %v5085_v7 }
 0x7c4   :  { %5089 = vadd.xlane.f32.xlu1 %v5088_v12  ;;  %5087 = vst [vmem:[#allocation4 + $0x4] sm:$0xf] %v5086_v2  ;;  %v10917_v12 = vld [vmem:[#allocation60_spill] sm:$0xff]  ;;  %v10918_v2 = vld [vmem:[#allocation61_spill] sm:$0xff] }
 0x7c7   :  { %v8274_v36 = vpop.eup %8273 }
 0x7c8   :  { %v5396_v53 = vmul.f32 0.5, %v8274_v36  ;;  %v10920_v36 = vld [vmem:[#allocation63_spill] sm:$0xff] }
 0x7c9   :  { %v8276_v39 = vpop.eup %8275 }
 0x7ca   :  { %v5397_v33 = vadd.f32 0.5, %v5396_v53  ;;  %v5400_v6 = vmul.f32 0.5, %v8276_v39  ;;  %v8278_v11 = vpop.eup %8277  ;;  %v10921_v53 = vld [vmem:[#allocation64_spill] sm:$0xff]  ;;  %v10922_v39 = vld [vmem:[#allocation65_spill] sm:$0xff] }
 0x7cb   :  { %v8280_v47 = vpop.eup %8279 }
 0x7cc   :  { %v5401_v0 = vadd.f32 0.5, %v5400_v6  ;;  %v5408_v60 = vmul.f32 %v8278_v11, %v5397_v33  ;;  %v5405_v16 = vmul.f32 0.5, %v8280_v47  ;;  %v10923_v33 = vld [vmem:[#allocation66_spill] sm:$0xff]  ;;  %v10924_v6 = vld [vmem:[#allocation67_spill] sm:$0xff]  ;;  %v10926_v11 = vld [vmem:[#allocation69_spill] sm:$0xff] }
 0x7cd   :  { %v10929_v47 = vld [vmem:[#allocation72_spill] sm:$0xff] }
 0x7ce   :  { %v5407_v40 = vmul.f32 %v5401_v0, %v9770_v8  ;;  %v5406_v9 = vadd.f32 0.5, %v5405_v16  ;;  %v10925_v0 = vld [vmem:[#allocation68_spill] sm:$0xff]  ;;  %v10930_v16 = vld [vmem:[#allocation73_spill] sm:$0xff] }
 0x7d0   :  { %v10084_v15 = vadd.f32 %v5408_v60, %v5407_v40  ;;  %v10927_v40 = vld [vmem:[#allocation70_spill] sm:$0xff]  ;;  %v10928_v60 = vld [vmem:[#allocation71_spill] sm:$0xff] }
 0x7d2   :  { %8281 = vtanh.f32 %v10084_v15 }
 0x7df   :  { %v8282_v50 = vpop.eup %8281 }
 0x7e0   :  { %v5411_v45 = vmul.f32 %v8282_v50, %v5406_v9  ;;  %v10931_v9 = vld [vmem:[#allocation74_spill] sm:$0xff]  ;;  %v10932_v50 = vld [vmem:[#allocation75_spill] sm:$0xff] }
 0x7e2   :  { %v5412_v29 = vpack.c.bf16 %v5411_v45, %v5411_v45  ;;  %v10933_v45 = vld [vmem:[#allocation76_spill] sm:$0xff] }
 0x7e4   :  { %5413 = vst [vmem:[#allocation4] sm:$0xf] %v5412_v29  ;;  %v10934_v29 = vld [vmem:[#allocation77_spill] sm:$0xff] }
 0x7eb   :  { %v5414_v26 = vld [vmem:[#allocation4] sm:$0xff] }
 0x7ec   :  { %v7387_v46 = vcombine.high %v5414_v26, %v5414_v26  ;;  %v7386_v7 = vcombine.low %v5414_v26, %v5414_v26  ;;  %v5935_v8 = vld [vmem:[#allocation4] sm:$0xf]  ;;  %v10935_v26 = vld [vmem:[#allocation78_spill] sm:$0xff] }
 0x7ee   :  { %5838 = vmatprep.mubr.bf16.mxu0 %v7387_v46  ;;  %5879 = vmatprep.mubr.bf16.mxu1 %v7387_v46  ;;  %v10936_v46 = vld [vmem:[#allocation79_spill] sm:$0xff] }
 0x7ef   :  { %5839 = vmatmul.mubr.bf16.vlgmr.msra.gmra.mxu0 %v7386_v7  ;;  %5880 = vmatmul.mubr.bf16.vlgmr.msra.gmra.mxu1 %v7386_v7  ;;  %v10937_v7 = vld [vmem:[#allocation80_spill] sm:$0xff] }
 0x7f0   :  { %6129 = vmatpush1.bf16.msra.mxu0 %v9773_v4  ;;  %6170 = vmatpush1.bf16.msra.mxu1 %v9775_v43  ;;  %v10885_v4 = vld [vmem:[#allocation94_spill] sm:$0xff]  ;;  %v10886_v43 = vld [vmem:[#allocation20_spill] sm:$0xff] }
 0x7f1   :  { %6130 = vmatprep.subr.bf16.mxu0 %v9777_v24  ;;  %6171 = vmatprep.subr.bf16.mxu1 %v9779_v38  ;;  %v10887_v24 = vld [vmem:[#allocation22_spill] sm:$0xff]  ;;  %v10888_v38 = vld [vmem:[#allocation24_spill] sm:$0xff] }
 0x7f2   :  { %6160 = vmatprep.mubr.bf16.mxu0 %v10516_v34  ;;  %6201 = vmatprep.mubr.bf16.mxu1 %v10516_v34  ;;  %v10884_v34 = vld [vmem:[#allocation93_spill] sm:$0xff] }
 0x7f4   :  { %6131 = vmatpush1.bf16.msra.mxu0 %v9783_v52  ;;  %6172 = vmatpush1.bf16.msra.mxu1 %v9785_v51  ;;  %v10889_v52 = vld [vmem:[#allocation25_spill] sm:$0xff]  ;;  %v10890_v51 = vld [vmem:[#allocation27_spill] sm:$0xff] }
 0x7f5   :  { %6132 = vmatprep.subr.bf16.mxu0 %v9789_v31  ;;  %6173 = vmatprep.subr.bf16.mxu1 %v9791_v54  ;;  %v10891_v31 = vld [vmem:[#allocation28_spill] sm:$0xff]  ;;  %v10892_v54 = vld [vmem:[#allocation30_spill] sm:$0xff] }
 0x7f8   :  { %6133 = vmatpush1.bf16.msra.mxu0 %v9797_v55  ;;  %6174 = vmatpush1.bf16.msra.mxu1 %v9799_v56  ;;  %v10893_v55 = vld [vmem:[#allocation31_spill] sm:$0xff]  ;;  %v10894_v56 = vld [vmem:[#allocation32_spill] sm:$0xff] }
 0x7f9   :  { %6134 = vmatprep.subr.bf16.mxu0 %v9803_v57  ;;  %6175 = vmatprep.subr.bf16.mxu1 %v9805_v58  ;;  %v10895_v57 = vld [vmem:[#allocation33_spill] sm:$0xff]  ;;  %v10896_v58 = vld [vmem:[#allocation36_spill] sm:$0xff] }
 0x7fc   :  { %6135 = vmatpush1.bf16.msra.mxu0 %v9809_v59  ;;  %6176 = vmatpush1.bf16.msra.mxu1 %v9811_v61  ;;  %v10897_v59 = vld [vmem:[#allocation37_spill] sm:$0xff]  ;;  %v10898_v61 = vld [vmem:[#allocation39_spill] sm:$0xff] }
 0x7fd   :  { %6136 = vmatprep.subr.bf16.mxu0 %v9815_v63  ;;  %6177 = vmatprep.subr.bf16.mxu1 %v9817_v13  ;;  %v10899_v63 = vld [vmem:[#allocation38_spill] sm:$0xff]  ;;  %v10900_v13 = vld [vmem:[#allocation44_spill] sm:$0xff] }
 0x800   :  { %6137 = vmatpush1.bf16.msra.mxu0 %v9821_v14  ;;  %6178 = vmatpush1.bf16.msra.mxu1 %v9823_v19  ;;  %v10901_v14 = vld [vmem:[#allocation35_spill] sm:$0xff]  ;;  %v10902_v19 = vld [vmem:[#allocation45_spill] sm:$0xff] }
 0x801   :  { %6138 = vmatprep.subr.bf16.mxu0 %v9827_v20  ;;  %6179 = vmatprep.subr.bf16.mxu1 %v9829_v25  ;;  %v10903_v20 = vld [vmem:[#allocation46_spill] sm:$0xff]  ;;  %v10904_v25 = vld [vmem:[#allocation47_spill] sm:$0xff] }
 0x804   :  { %6139 = vmatpush1.bf16.msra.mxu0 %v9833_v28  ;;  %6180 = vmatpush1.bf16.msra.mxu1 %v9835_v1  ;;  %v10905_v28 = vld [vmem:[#allocation48_spill] sm:$0xff]  ;;  %v10906_v1 = vld [vmem:[#allocation49_spill] sm:$0xff] }
 0x805   :  { %6140 = vmatprep.subr.bf16.mxu0 %v9839_v22  ;;  %6181 = vmatprep.subr.bf16.mxu1 %v9841_v23  ;;  %v10907_v22 = vld [vmem:[#allocation50_spill] sm:$0xff]  ;;  %v10908_v23 = vld [vmem:[#allocation51_spill] sm:$0xff] }
 0x808   :  { %6141 = vmatpush1.bf16.msra.mxu0 %v9845_v27  ;;  %6182 = vmatpush1.bf16.msra.mxu1 %v9847_v37  ;;  %v10909_v27 = vld [vmem:[#allocation52_spill] sm:$0xff]  ;;  %v10910_v37 = vld [vmem:[#allocation53_spill] sm:$0xff] }
 0x809   :  { %6142 = vmatprep.subr.bf16.mxu0 %v9851_v30  ;;  %6183 = vmatprep.subr.bf16.mxu1 %v9853_v5  ;;  %v10911_v30 = vld [vmem:[#allocation54_spill] sm:$0xff]  ;;  %v10912_v5 = vld [vmem:[#allocation55_spill] sm:$0xff] }
 0x80c   :  { %6143 = vmatpush1.bf16.msra.mxu0 %v9857_v42  ;;  %6184 = vmatpush1.bf16.msra.mxu1 %v9859_v49  ;;  %v10913_v42 = vld [vmem:[#allocation56_spill] sm:$0xff]  ;;  %v10914_v49 = vld [vmem:[#allocation57_spill] sm:$0xff] }
 0x80d   :  { %6626 = vmatprep.subr.bf16.mxu0 %v9865_v44  ;;  %6667 = vmatprep.subr.bf16.mxu1 %v10884_v34  ;;  %v10915_v44 = vld [vmem:[#allocation58_spill] sm:$0xff]  ;;  %v10938_v34 = vld [vmem:[#allocation81_spill] sm:$0xff] }
 0x80f   :  { %6161 = vmatmul.mubr.bf16.vlgmr.msra.gmra.mxu0 %v5935_v8  ;;  %6202 = vmatmul.mubr.bf16.vlgmr.msra.gmra.mxu1 %v5935_v8  ;;  %v10939_v8 = vld [vmem:[#allocation83_spill] sm:$0xff] }
 0x810   :  { %6627 = vmatpush1.bf16.msra.mxu0 %v10885_v4  ;;  %6668 = vmatpush1.bf16.msra.mxu1 %v10886_v43  ;;  %v10940_v4 = vld [vmem:[#allocation86_spill] sm:$0xff] }
 0x811   :  { %6628 = vmatprep.subr.bf16.mxu0 %v10887_v24  ;;  %6669 = vmatprep.subr.bf16.mxu1 %v10888_v38  ;;  %v10941_v43 = vld [vmem:[#allocation82_spill] sm:$0xff]  ;;  %v10942_v24 = vld [vmem:[#allocation84_spill] sm:$0xff] }
 0x812   :  { %v10943_v38 = vld [vmem:[#allocation90_spill] sm:$0xff] }
 0x814   :  { %6629 = vmatpush1.bf16.msra.mxu0 %v10889_v52  ;;  %6670 = vmatpush1.bf16.msra.mxu1 %v10890_v51  ;;  %v10944_v52 = vld [vmem:[#allocation85_spill] sm:$0xff]  ;;  %v10945_v51 = vld [vmem:[#allocation88_spill] sm:$0xff] }
 0x815   :  { %6630 = vmatprep.subr.bf16.mxu0 %v10891_v31  ;;  %6671 = vmatprep.subr.bf16.mxu1 %v10892_v54  ;;  %v10946_v31 = vld [vmem:[#allocation87_spill] sm:$0xff] }
 0x818   :  { %6631 = vmatpush1.bf16.msra.mxu0 %v10893_v55  ;;  %6672 = vmatpush1.bf16.msra.mxu1 %v10894_v56  ;;  %v10947_v55 = vld [vmem:[#allocation29_spill] sm:$0xff] }
 0x819   :  { %6632 = vmatprep.subr.bf16.mxu0 %v10895_v57  ;;  %6673 = vmatprep.subr.bf16.mxu1 %v10896_v58  ;;  %v10948_v57 = vld [vmem:[#allocation34_spill] sm:$0xff] }
 0x81c   :  { %6633 = vmatpush1.bf16.msra.mxu0 %v10897_v59  ;;  %6674 = vmatpush1.bf16.msra.mxu1 %v10898_v61 }
 0x81d   :  { %6634 = vmatprep.subr.bf16.mxu0 %v10899_v63  ;;  %6675 = vmatprep.subr.bf16.mxu1 %v10900_v13  ;;  %v10949_v63 = vld [vmem:[#allocation19_spill] sm:$0xff] }
 0x820   :  { %6635 = vmatpush1.bf16.msra.mxu0 %v10901_v14  ;;  %6676 = vmatpush1.bf16.msra.mxu1 %v10902_v19 }
 0x821   :  { %6636 = vmatprep.subr.bf16.mxu0 %v10903_v20  ;;  %6677 = vmatprep.subr.bf16.mxu1 %v10904_v25 }
 0x824   :  { %6637 = vmatpush1.bf16.msra.mxu0 %v10905_v28  ;;  %6678 = vmatpush1.bf16.msra.mxu1 %v10906_v1 }
 0x825   :  { %6638 = vmatprep.subr.bf16.mxu0 %v10907_v22  ;;  %6679 = vmatprep.subr.bf16.mxu1 %v10908_v23 }
 0x828   :  { %6639 = vmatpush1.bf16.msra.mxu0 %v10909_v27  ;;  %6680 = vmatpush1.bf16.msra.mxu1 %v10910_v37 }
 0x829   :  { %6640 = vmatprep.subr.bf16.mxu0 %v10911_v30  ;;  %6681 = vmatprep.subr.bf16.mxu1 %v10912_v5 }
 0x82c   :  { %6641 = vmatpush1.bf16.msra.mxu0 %v10913_v42  ;;  %6682 = vmatpush1.bf16.msra.mxu1 %v10914_v49 }
 0x82d   :  { %6642 = vmatprep.subr.bf16.mxu0 %v10915_v44  ;;  %6683 = vmatprep.subr.bf16.mxu1 %v10916_v17 }
 0x830   :  { %6643 = vmatpush2.bf16.msra.mxu0 %v10917_v12  ;;  %6684 = vmatpush2.bf16.msra.mxu1 %v10918_v2 }
 0x831   :  { %6644 = vmatprep.subr.bf16.mxu0 %v10919_v48  ;;  %6685 = vmatprep.subr.bf16.mxu1 %v10920_v36 }
 0x834   :  { %6645 = vmatpush2.bf16.msra.mxu0 %v10921_v53  ;;  %6686 = vmatpush2.bf16.msra.mxu1 %v10922_v39  ;;  %v10950_v39 = vld [vmem:[#allocation23_spill] sm:$0xff] }
 0x835   :  { %6646 = vmatprep.subr.bf16.mxu0 %v10923_v33  ;;  %6687 = vmatprep.subr.bf16.mxu1 %v10924_v6  ;;  %v5927_v33 = vmul.f32 %v10950_v39, %v10537_v21 }
 0x838   :  { %6647 = vmatpush2.bf16.msra.mxu0 %v10925_v0  ;;  %6688 = vmatpush2.bf16.msra.mxu1 %v10926_v11  ;;  %v10951_v0 = vld [vmem:[#allocation40_spill] sm:$0xff] }
 0x839   :  { %6648 = vmatprep.subr.bf16.mxu0 %v10927_v40  ;;  %6689 = vmatprep.subr.bf16.mxu1 %v10928_v60  ;;  %v5928_v11 = vmul.f32 %v10950_v39, %v10951_v0  ;;  %v10952_v40 = vld [vmem:[#allocation41_spill] sm:$0xff] }
 0x83a   :  { %v5931_v60 = vadd.f32 %v5927_v33, %v10952_v40 }
 0x83c   :  { %6649 = vmatpush2.bf16.msra.mxu0 %v10929_v47  ;;  %6690 = vmatpush2.bf16.msra.mxu1 %v10930_v16  ;;  %v10953_v47 = vld [vmem:[#allocation42_spill] sm:$0xff] }
 0x83d   :  { %6650 = vmatprep.subr.bf16.mxu0 %v10931_v9  ;;  %6691 = vmatprep.subr.bf16.mxu1 %v10932_v50  ;;  %v5929_v16 = vmul.f32 %v10950_v39, %v10953_v47  ;;  %v10954_v9 = vld [vmem:[#allocation43_spill] sm:$0xff] }
 0x83e   :  { %v5932_v50 = vadd.f32 %v5928_v11, %v10954_v9 }
 0x840   :  { %6651 = vmatpush2.bf16.msra.mxu0 %v10933_v45  ;;  %6692 = vmatpush2.bf16.msra.mxu1 %v10934_v29 }
 0x841   :  { %6652 = vmatprep.subr.bf16.mxu0 %v10935_v26  ;;  %6693 = vmatprep.subr.bf16.mxu1 %v10936_v46 }
 0x844   :  { %6653 = vmatpush2.bf16.msra.mxu0 %v10937_v7  ;;  %6694 = vmatpush2.bf16.msra.mxu1 %v10938_v34  ;;  %v5933_v34 = vadd.f32 %v5929_v16, %v8742_v35 }
 0x845   :  { %6654 = vmatprep.subr.bf16.mxu0 %v10939_v8  ;;  %6695 = vmatprep.subr.bf16.mxu1 %v10940_v4 }
 0x848   :  { %6655 = vmatpush2.bf16.msra.mxu0 %v10941_v43  ;;  %6696 = vmatpush2.bf16.msra.mxu1 %v10942_v24 }
 0x849   :  { %6656 = vmatprep.subr.bf16.mxu0 %v10943_v38  ;;  %6697 = vmatprep.subr.bf16.mxu1 %v10944_v52  ;;  %v5930_v52 = vmul.f32 %v10950_v39, %v10542_v3 }
 0x84c   :  { %6657 = vmatpush2.bf16.msra.mxu0 %v10945_v51  ;;  %6698 = vmatpush2.bf16.msra.mxu1 %v10946_v31 }
 0x84d   :  { %v5090_v54 = vpop.xlane.xlu1 %5089 }
 0x84e   :  { %v5091_v56 = vadd.f32 %v5090_v54, %v10947_v55 }
 0x850   :  { %v5096_v58 = vrot.slane %v5091_v56, %v10948_v57  ;;  %v5934_v56 = vadd.f32 %v5930_v52, %v8751_v32 }
 0x852   :  { %5098 = vst.msk [vmem:[#allocation14 + $0x5] sm:$0x1] %vm997_vm0, %v5096_v58 }
 0x8af   :  { %v5840_v59 = vpop.f32.mrf.mxu0  ;;  %v5881_v61 = vpop.f32.mrf.mxu1 }
 0x8b0   :  { %v5841_v13 = vadd.f32 %v5840_v59, %v10949_v63  ;;  %v5882_v37 = vadd.f32 %v5881_v61, %v8832_v18 }
 0x8b1   :  { %v5842_v14 = vpop.f32.mrf.mxu0  ;;  %v5883_v19 = vpop.f32.mrf.mxu1 }
 0x8b2   :  { %v5888_v20 = vmul.f32 0.5, %v5841_v13  ;;  %v5843_v25 = vadd.f32 %v5842_v14, %v8828_v10  ;;  %v5884_v30 = vadd.f32 %v5883_v19, %v8837_v41  ;;  %v10209_v13 = vld [vmem:[%s10234_s6] ss:$0 sm:$0xff]  ;;  %s8470_s6 = smov [#allocation14]  }
 0x8b3   :  { %v5844_v28 = vpop.f32.mrf.mxu0  ;;  %v5885_v1 = vpop.f32.mrf.mxu1  ;;  %s6747_s10 = sshll.u32 %s8470_s6, 4  ;;  %s6748_s10 = int_to_ptr.vmem [resolvable:$true] %s6747_s10 }
 0x8b4   :  { %8283 = vtanh.f32 %v5888_v20  ;;  %v5892_v22 = vmul.f32 0.5, %v5843_v25  ;;  %v5897_v5 = vmul.f32 0.5, %v5884_v30  ;;  %s8435_s11 = scalar_lea.vmem %s6748_s10, 128  ;;  %p8440_p7 = scmp.lt.s32.totalorder %s6748_s10, %s6748_s10 }
 0x8b5   :  { %v5845_v23 = vpop.f32.mrf.mxu0  ;;  %v5886_v27 = vpop.f32.mrf.mxu1  ;;  %p8436_p6 = scmp.ne.s32.totalorder %s6748_s10, %s8435_s11  ;;  %p8441_p8 = scmp.lt.s32.totalorder %s8435_s11, %s8435_s11 }
 0x8b6   :  { %8285 = vtanh.f32 %v5892_v22 }
 0x8b7   :  { %8287 = vtanh.f32 %v5882_v37  ;;  %p8442_p9 = por %p8441_p8, %p8440_p7 }
 0x8b8   :  { %8289 = vtanh.f32 %v5897_v5 }
 0x8b9   :  { %p8443_p10 = pnand %p8442_p9, %p8436_p6 }
 0x8c1   :  { %v8284_v42 = vpop.eup %8283 }
 0x8c2   :  { %v5890_v49 = vmul.f32 0.5, %v8284_v42 }
 0x8c3   :  { %v8286_v44 = vpop.eup %8285 }
 0x8c4   :  { %v5891_v17 = vadd.f32 0.5, %v5890_v49  ;;  %v5894_v12 = vmul.f32 0.5, %v8286_v44  ;;  %v8288_v48 = vpop.eup %8287 }
 0x8c5   :  { %v8290_v26 = vpop.eup %8289 }
 0x8c6   :  { %v5895_v2 = vadd.f32 0.5, %v5894_v12  ;;  %v5902_v53 = vmul.f32 %v8288_v48, %v5891_v17  ;;  %v5899_v24 = vmul.f32 0.5, %v8290_v26 }
 0x8c8   :  { %v5901_v36 = vmul.f32 %v5895_v2, %v10069_v62  ;;  %v5900_v58 = vadd.f32 0.5, %v5899_v24 }
 0x8ca   :  { %v10193_v6 = vadd.f32 %v5902_v53, %v5901_v36 }
 0x8cc   :  { %8291 = vtanh.f32 %v10193_v6 }
 0x8cf   :  { %v6162_v45 = vpop.f32.mrf.mxu0  ;;  %v6203_v62 = vpop.f32.mrf.mxu1 }
 0x8d0   :  { %v6210_v29 = vadd.f32 %v6162_v45, %v5931_v60  ;;  %v6212_v54 = vadd.f32 %v6203_v62, %v5933_v34 }
 0x8d1   :  { %v6164_v46 = vpop.f32.mrf.mxu0  ;;  %v6205_v21 = vpop.f32.mrf.mxu1 }
 0x8d2   :  { %v6214_v7 = vmul.f32 0.5, %v6210_v29  ;;  %v6211_v8 = vadd.f32 %v6164_v46, %v5932_v50  ;;  %v6213_v35 = vadd.f32 %v6205_v21, %v5934_v56 }
 0x8d3   :  { %v6166_v4 = vpop.f32.mrf.mxu0  ;;  %v6207_v43 = vpop.f32.mrf.mxu1 }
 0x8d4   :  { %8293 = vtanh.f32 %v6214_v7  ;;  %v6218_v38 = vmul.f32 0.5, %v6211_v8  ;;  %v6223_v3 = vmul.f32 0.5, %v6213_v35 }
 0x8d5   :  { %v6167_v51 = vpop.f32.mrf.mxu0  ;;  %v6208_v31 = vpop.f32.mrf.mxu1 }
 0x8d6   :  { %8295 = vtanh.f32 %v6218_v38 }
 0x8d7   :  { %8297 = vtanh.f32 %v6212_v54 }
 0x8d8   :  { %8299 = vtanh.f32 %v6223_v3 }
 0x8d9   :  { %v8292_v59 = vpop.eup %8291 }
 0x8da   :  { %v5905_v61 = vmul.f32 %v8292_v59, %v5900_v58 }
 0x8dc   :  { %v5908_v14 = vmul.f32 %v10209_v13, %v5905_v61  ;;  %v5906_v19 = vpack.c.bf16 %v5905_v61, %v5905_v61 }
 0x8de   :  { %5909 = vadd.xlane.f32.xlu0 %v5908_v14  ;;  %5907 = vst [vmem:[#allocation4 + $0x4] sm:$0xf] %v5906_v19 }
 0x8e1   :  { %v8294_v20 = vpop.eup %8293 }
 0x8e2   :  { %v6216_v25 = vmul.f32 0.5, %v8294_v20 }
 0x8e3   :  { %v8296_v28 = vpop.eup %8295 }
 0x8e4   :  { %v6217_v32 = vadd.f32 0.5, %v6216_v25  ;;  %v6220_v1 = vmul.f32 0.5, %v8296_v28  ;;  %v8298_v23 = vpop.eup %8297 }
 0x8e5   :  { %v8300_v5 = vpop.eup %8299 }
 0x8e6   :  { %v6221_v22 = vadd.f32 0.5, %v6220_v1  ;;  %v6228_v37 = vmul.f32 %v8298_v23, %v6217_v32  ;;  %v6225_v42 = vmul.f32 0.5, %v8300_v5 }
 0x8e8   :  { %v6227_v27 = vmul.f32 %v6221_v22, %v10084_v15  ;;  %v6226_v49 = vadd.f32 0.5, %v6225_v42 }
 0x8ea   :  { %v6229_v30 = vadd.f32 %v6228_v37, %v6227_v27 }
 0x8ec   :  { %8301 = vtanh.f32 %v6229_v30 }
 0x8f9   :  { %v8302_v44 = vpop.eup %8301 }
 0x8fa   :  { %v6231_v17 = vmul.f32 %v8302_v44, %v6226_v49 }
 0x8fc   :  { %v6232_v12 = vpack.c.bf16 %v6231_v17, %v6231_v17 }
 0x8fe   :  { %6233 = vst [vmem:[#allocation4] sm:$0xf] %v6232_v12 }
 0x905   :  { %v6234_v2 = vld [vmem:[#allocation4] sm:$0xff] }
 0x906   :  { %v7486_v48 = vcombine.high %v6234_v2, %v6234_v2  ;;  %v7485_v36 = vcombine.low %v6234_v2, %v6234_v2 }
 0x908   :  { %6658 = vmatprep.mubr.bf16.mxu0 %v7486_v48  ;;  %6699 = vmatprep.mubr.bf16.mxu1 %v7486_v48 }
 0x909   :  { %6659 = vmatmul.mubr.bf16.vlgmr.msra.gmra.mxu0 %v7485_v36  ;;  %6700 = vmatmul.mubr.bf16.vlgmr.msra.gmra.mxu1 %v7485_v36 }
 0x967   :  { %v5910_v53 = vpop.xlane.xlu0 %5909 }
 0x968   :  { %v5911_v15 = vadd.f32 %v5910_v53, %v10947_v55 }
 0x96a   :  { %v5916_v39 = vrot.slane %v5911_v15, %v10948_v57 }
 0x96c   :  { %5918 = vst.msk [vmem:[#allocation14 + $0x6] sm:$0x1] %vm997_vm0, %v5916_v39 }
 0x9c9   :  { %v6660_v33 = vpop.f32.mrf.mxu0  ;;  %v6701_v0 = vpop.f32.mrf.mxu1 }
 0x9ca   :  { %v6661_v11 = vadd.f32 %v6660_v33, %v10949_v63  ;;  %v6702_v26 = vadd.f32 %v6701_v0, %v8832_v18 }
 0x9cb   :  { %v6662_v40 = vpop.f32.mrf.mxu0  ;;  %v6703_v60 = vpop.f32.mrf.mxu1 }
 0x9cc   :  { %v6708_v47 = vmul.f32 0.5, %v6661_v11  ;;  %v6663_v16 = vadd.f32 %v6662_v40, %v8828_v10  ;;  %v6704_v46 = vadd.f32 %v6703_v60, %v8837_v41 }
 0x9cd   :  { %v6664_v9 = vpop.f32.mrf.mxu0  ;;  %v6705_v50 = vpop.f32.mrf.mxu1 }
 0x9ce   :  { %8303 = vtanh.f32 %v6708_v47  ;;  %v6712_v45 = vmul.f32 0.5, %v6663_v16  ;;  %v6717_v21 = vmul.f32 0.5, %v6704_v46 }
 0x9cf   :  { %v6665_v62 = vpop.f32.mrf.mxu0  ;;  %v6706_v29 = vpop.f32.mrf.mxu1 }
 0x9d0   :  { %8305 = vtanh.f32 %v6712_v45 }
 0x9d1   :  { %8307 = vtanh.f32 %v6702_v26 }
 0x9d2   :  { %8309 = vtanh.f32 %v6717_v21 }
 0x9db   :  { %v8304_v7 = vpop.eup %8303 }
 0x9dc   :  { %v6710_v63 = vmul.f32 0.5, %v8304_v7 }
 0x9dd   :  { %v8306_v34 = vpop.eup %8305 }
 0x9de   :  { %v6711_v8 = vadd.f32 0.5, %v6710_v63  ;;  %v6714_v4 = vmul.f32 0.5, %v8306_v34  ;;  %v8308_v43 = vpop.eup %8307 }
 0x9df   :  { %v8310_v51 = vpop.eup %8309 }
 0x9e0   :  { %v6715_v10 = vadd.f32 0.5, %v6714_v4  ;;  %v6722_v38 = vmul.f32 %v8308_v43, %v6711_v8  ;;  %v6719_v18 = vmul.f32 0.5, %v8310_v51 }
 0x9e2   :  { %v6721_v24 = vmul.f32 %v6715_v10, %v10193_v6  ;;  %v6720_v31 = vadd.f32 0.5, %v6719_v18 }
 0x9e4   :  { %v6723_v52 = vadd.f32 %v6722_v38, %v6721_v24 }
 0x9e6   :  { %8311 = vtanh.f32 %v6723_v52 }
 0x9f3   :  { %v8312_v54 = vpop.eup %8311 }
 0x9f4   :  { %v6725_v56 = vmul.f32 %v8312_v54, %v6720_v31 }
 0x9f6   :  { %v6728_v41 = vmul.f32 %v10209_v13, %v6725_v56  ;;  %v6726_v58 = vpack.c.bf16 %v6725_v56, %v6725_v56 }
 0x9f8   :  { %6729 = vadd.xlane.f32.xlu1 %v6728_v41  ;;  %6727 = vst [vmem:[#allocation4 + $0x4] sm:$0xf] %v6726_v58 }
 0xa81   :  { %v6730_v59 = vpop.xlane.xlu1 %6729 }
 0xa82   :  { %v6731_v61 = vadd.f32 %v6730_v59, %v10947_v55 }
 0xa84   :  { %v6736_v6 = vrot.slane %v6731_v61, %v10948_v57 }
 0xa86   :  { %6738 = vst.msk [vmem:[#allocation14 + $0x7] sm:$0x1] %vm997_vm0, %v6736_v6 }
 0xa87   :  { %8446 = shalt.err (!%p8443_p10)
}
 0xa88   :  { %6750 = dma.vmem_to_hbm [thread:$0]  %s6748_s10, 128, %s10236_s8, [#allocation8]  }
 0xa89   :  { %8461 = dma.done.wait [#allocation8], 128  }
 0xa8a   :  { %8462 = vsyncadd [#allocation8], 4294967168 }
 0xa8b   :  { %6754 = vsyncpa [#allocation7], 1 }
 0xa8c   :  { %6755 = vsyncpa [#allocation10], 1 }
 0xa8d   :  { %6756 = vsyncpa [#allocation13], 1 }
 0xa8e   :  { %6757 = vsyncpa [#allocation8], 1 }

</bundles_post_ra>
